<compile_context>
chip_gen: v7x
topology: tpu7x:2x2x1
jax: 0.10.0
libtpu: 0.0.40
codegen_flags: <defaults>
</compile_context>

<pallas_src>
import functools

import jax
import jax.numpy as jnp
from jax import lax
from jax.experimental import pallas as pl
from jax.experimental.pallas import tpu as pltpu

F32 = jnp.float32
BF16 = jnp.bfloat16
NEG = -1e10          # matches PyTorch masked_fill(-1e10)
LN_EPS = 1e-5        # PyTorch nn.LayerNorm default


# ------------------------------ in-kernel helpers ----------------------------

def _layernorm(y, g, b):
    """LayerNorm over the last axis, f32 math (biased variance, eps=1e-5)."""
    mu = jnp.mean(y, axis=-1, keepdims=True)
    var = jnp.mean((y - mu) * (y - mu), axis=-1, keepdims=True)
    return (y - mu) * lax.rsqrt(var + LN_EPS) * g + b


def _attn_head(qh, kh, vh, madd, want_attn):
    """Single-head attention.  qh:[Lq,Dh] kh,vh:[Lk,Dh] madd:[Mq,Lk] additive.
    Scale is already folded into qh.  Returns (ctx [Lq,Dh], attn or None)."""
    e = lax.dot_general(qh, kh, (((1,), (1,)), ((), ())),
                        preferred_element_type=F32)          # [Lq, Lk]
    e = e + madd                                             # broadcast over Lq
    e = e - jnp.max(e, axis=-1, keepdims=True)
    p = jnp.exp(e)
    inv_l = pl.reciprocal(jnp.sum(p, axis=-1, keepdims=True), approx=True)
    ctx = jnp.dot(p, vh, preferred_element_type=F32) * inv_l  # [Lq, Dh]
    attn = p * inv_l if want_attn else None
    return ctx, attn


# --------------------------------- kernels -----------------------------------

def _self_attn_block_kernel(x_ref, madd_ref, wqkv_ref, bqkv_ref, wo_ref, bo_ref,
                            g_ref, b_ref, o_ref, *, n_heads, head_dim):
    """out = LayerNorm(x + MHA_self(x)); per-batch-element block."""
    hd = n_heads * head_dim
    x = x_ref[...]                                            # [Lq, Hd] f32
    qkv = jnp.dot(x.astype(BF16), wqkv_ref[...],
                  preferred_element_type=F32) + bqkv_ref[...]  # [Lq, 3*Hd]
    madd = madd_ref[...]                                      # [Lq, Lq]
    lq = x.shape[0]
    acc = jnp.zeros((lq, hd), F32)
    for h in range(n_heads):
        s0 = h * head_dim
        qh = qkv[:, s0:s0 + head_dim]
        kh = qkv[:, hd + s0:hd + s0 + head_dim]
        vh = qkv[:, 2 * hd + s0:2 * hd + s0 + head_dim]
        ctx, _ = _attn_head(qh, kh, vh, madd, want_attn=False)
        acc = acc + jnp.dot(ctx.astype(BF16), wo_ref[s0:s0 + head_dim, :],
                            preferred_element_type=F32)
    y = acc + bo_ref[...]
    o_ref[...] = _layernorm(x + y, g_ref[...], b_ref[...])


def _cross_attn_block_kernel(x_ref, enc_ref, madd_ref, wq_ref, bq_ref,
                             wkv_ref, bkv_ref, wo_ref, bo_ref, g_ref, b_ref,
                             *out_refs, n_heads, head_dim, return_attn):
    """out = LayerNorm(x + MHA(x, enc, enc)); optionally writes attn probs."""
    o_ref = out_refs[0]
    hd = n_heads * head_dim
    x = x_ref[...]                                            # [Lq, Hd]
    enc = enc_ref[...]                                        # [Lk, Hd]
    q = jnp.dot(x.astype(BF16), wq_ref[...],
                preferred_element_type=F32) + bq_ref[...]      # [Lq, Hd]
    kv = jnp.dot(enc.astype(BF16), wkv_ref[...],
                 preferred_element_type=F32) + bkv_ref[...]    # [Lk, 2*Hd]
    madd = madd_ref[...]                                      # [Mq, Lk]
    lq = x.shape[0]
    acc = jnp.zeros((lq, hd), F32)
    for h in range(n_heads):
        s0 = h * head_dim
        qh = q[:, s0:s0 + head_dim]
        kh = kv[:, s0:s0 + head_dim]
        vh = kv[:, hd + s0:hd + s0 + head_dim]
        ctx, attn = _attn_head(qh, kh, vh, madd, want_attn=return_attn)
        if return_attn:
            out_refs[1][h, :, :] = attn
        acc = acc + jnp.dot(ctx.astype(BF16), wo_ref[s0:s0 + head_dim, :],
                            preferred_element_type=F32)
    y = acc + bo_ref[...]
    o_ref[...] = _layernorm(x + y, g_ref[...], b_ref[...])


def _ffn_ln_kernel(x_ref, w1_ref, b1_ref, w2_ref, b2_ref, g_ref, b_ref, o_ref):
    """out = LayerNorm(x + FFN(x)), FFN = relu(x@w1+b1)@w2+b2."""
    x = x_ref[...]
    h = jnp.dot(x.astype(BF16), w1_ref[...],
                preferred_element_type=F32) + b1_ref[...]
    h = jnp.maximum(h, 0.0)
    y = jnp.dot(h.astype(BF16), w2_ref[...],
                preferred_element_type=F32) + b2_ref[...]
    o_ref[...] = _layernorm(x + y, g_ref[...], b_ref[...])


def _linear_kernel(x_ref, w_ref, b_ref, o_ref):
    o_ref[...] = (jnp.dot(x_ref[...].astype(BF16), w_ref[...],
                          preferred_element_type=F32) + b_ref[...])


# --------------------------------- wrappers ----------------------------------

def _parallel(n):
    return pltpu.CompilerParams(dimension_semantics=("parallel",) * n)


def _row_tile(m):
    for t in (512, 256, 128, 64, 32, 16, 8):
        if m % t == 0:
            return t
    return m   # tiny / odd M: single full block


def self_attn_block(x, madd, p, n_heads):
    """x: [B, Lq, Hd] f32, madd: [B, Lq, Lq] additive mask."""
    B, Lq, Hd = x.shape
    head_dim = Hd // n_heads
    kern = functools.partial(_self_attn_block_kernel,
                             n_heads=n_heads, head_dim=head_dim)
    return pl.pallas_call(
        kern,
        out_shape=jax.ShapeDtypeStruct((B, Lq, Hd), F32),
        grid=(B,),
        in_specs=[
            pl.BlockSpec((None, Lq, Hd), lambda b: (b, 0, 0)),
            pl.BlockSpec((None, Lq, Lq), lambda b: (b, 0, 0)),
            pl.BlockSpec((Hd, 3 * Hd), lambda b: (0, 0)),
            pl.BlockSpec((1, 3 * Hd), lambda b: (0, 0)),
            pl.BlockSpec((Hd, Hd), lambda b: (0, 0)),
            pl.BlockSpec((1, Hd), lambda b: (0, 0)),
            pl.BlockSpec((1, Hd), lambda b: (0, 0)),
            pl.BlockSpec((1, Hd), lambda b: (0, 0)),
        ],
        out_specs=pl.BlockSpec((None, Lq, Hd), lambda b: (b, 0, 0)),
        compiler_params=_parallel(1),
    )(x, madd, p["w_qkv"], p["b_qkv"], p["wo"], p["bo"], p["ln_g"], p["ln_b"])


def cross_attn_block(x, enc, madd, p, n_heads, return_attn):
    """x: [B, Lq, Hd], enc: [B, Lk, Hd], madd: [B, Mq, Lk] (Mq in {1, Lq})."""
    B, Lq, Hd = x.shape
    Lk = enc.shape[1]
    Mq = madd.shape[1]
    head_dim = Hd // n_heads
    kern = functools.partial(_cross_attn_block_kernel, n_heads=n_heads,
                             head_dim=head_dim, return_attn=return_attn)
    if return_attn:
        out_shape = (jax.ShapeDtypeStruct((B, Lq, Hd), F32),
                     jax.ShapeDtypeStruct((B, n_heads, Lq, Lk), F32))
        out_specs = (pl.BlockSpec((None, Lq, Hd), lambda b: (b, 0, 0)),
                     pl.BlockSpec((None, n_heads, Lq, Lk),
                                  lambda b: (b, 0, 0, 0)))
    else:
        out_shape = jax.ShapeDtypeStruct((B, Lq, Hd), F32)
        out_specs = pl.BlockSpec((None, Lq, Hd), lambda b: (b, 0, 0))
    outs = pl.pallas_call(
        kern,
        out_shape=out_shape,
        grid=(B,),
        in_specs=[
            pl.BlockSpec((None, Lq, Hd), lambda b: (b, 0, 0)),
            pl.BlockSpec((None, Lk, Hd), lambda b: (b, 0, 0)),
            pl.BlockSpec((None, Mq, Lk), lambda b: (b, 0, 0)),
            pl.BlockSpec((Hd, Hd), lambda b: (0, 0)),
            pl.BlockSpec((1, Hd), lambda b: (0, 0)),
            pl.BlockSpec((Hd, 2 * Hd), lambda b: (0, 0)),
            pl.BlockSpec((1, 2 * Hd), lambda b: (0, 0)),
            pl.BlockSpec((Hd, Hd), lambda b: (0, 0)),
            pl.BlockSpec((1, Hd), lambda b: (0, 0)),
            pl.BlockSpec((1, Hd), lambda b: (0, 0)),
            pl.BlockSpec((1, Hd), lambda b: (0, 0)),
        ],
        out_specs=out_specs,
        compiler_params=_parallel(1),
    )(x, enc, madd, p["wq"], p["bq"], p["w_kv"], p["b_kv"], p["wo"], p["bo"],
      p["ln_g"], p["ln_b"])
    if return_attn:
        return outs[0], outs[1]
    return outs, None


def ffn_ln_block(x2d, p):
    """x2d: [M, Hd] -> LayerNorm(x + FFN(x)), single fused kernel."""
    M, Hd = x2d.shape
    PF = p["w1"].shape[1]
    tm = _row_tile(M)
    return pl.pallas_call(
        _ffn_ln_kernel,
        out_shape=jax.ShapeDtypeStruct((M, Hd), F32),
        grid=(M // tm,),
        in_specs=[
            pl.BlockSpec((tm, Hd), lambda i: (i, 0)),
            pl.BlockSpec((Hd, PF), lambda i: (0, 0)),
            pl.BlockSpec((1, PF), lambda i: (0, 0)),
            pl.BlockSpec((PF, Hd), lambda i: (0, 0)),
            pl.BlockSpec((1, Hd), lambda i: (0, 0)),
            pl.BlockSpec((1, Hd), lambda i: (0, 0)),
            pl.BlockSpec((1, Hd), lambda i: (0, 0)),
        ],
        out_specs=pl.BlockSpec((tm, Hd), lambda i: (i, 0)),
        compiler_params=_parallel(1),
    )(x2d, p["w1"], p["b1"], p["w2"], p["b2"], p["ln_g"], p["ln_b"])


def linear(x2d, w, b):
    """x2d: [M, K] f32, w: [K, N] bf16, b: [1, N] f32 -> [M, N] f32."""
    M, K = x2d.shape
    N = w.shape[1]
    tm = _row_tile(M)
    return pl.pallas_call(
        _linear_kernel,
        out_shape=jax.ShapeDtypeStruct((M, N), F32),
        grid=(M // tm,),
        in_specs=[
            pl.BlockSpec((tm, K), lambda i: (i, 0)),
            pl.BlockSpec((K, N), lambda i: (0, 0)),
            pl.BlockSpec((1, N), lambda i: (0, 0)),
        ],
        out_specs=pl.BlockSpec((tm, N), lambda i: (i, 0)),
        compiler_params=_parallel(1),
    )(x2d, w, b)


# ------------------------------ model (glue) ---------------------------------

def decoder_layer(p, trg, enc_src, trg_madd, src_madd, n_heads, return_attn):
    B, Lt, Hd = trg.shape
    trg = self_attn_block(trg, trg_madd, p["self_attn"], n_heads)
    trg, attention = cross_attn_block(trg, enc_src, src_madd, p["enc_attn"],
                                      n_heads, return_attn)
    trg = ffn_ln_block(trg.reshape(B * Lt, Hd), p["ffn"]).reshape(B, Lt, Hd)
    return trg, attention


def decoder_forward(params, trg_tokens, enc_src, trg_mask, src_mask,
                    n_heads, hid_dim):
    B, Lt = trg_tokens.shape
    Ls = enc_src.shape[1]

    # Embedding lookup + scale + positional embedding (dropout = identity).
    # TODO(synk): embedding gather stays in XLA (no clean Pallas gather here).
    pos = jnp.arange(Lt, dtype=jnp.int32)[None, :]
    emb_scale = jnp.sqrt(jnp.float32(hid_dim))
    tok_e = jnp.take(params["tok_emb"], trg_tokens, axis=0)      # [B, Lt, Hd]
    pos_e = jnp.take(params["pos_emb"], pos, axis=0)             # [1, Lt, Hd]
    trg = (tok_e * emb_scale + pos_e).astype(F32)

    # Additive masks (head broadcast happens inside the kernels).
    trg_madd = jnp.where(trg_mask == 0, NEG, 0.0).astype(F32).reshape(B, Lt, Lt)
    src_madd = jnp.where(src_mask == 0, NEG, 0.0).astype(F32)
    src_madd = src_madd.reshape(B, src_madd.shape[2], Ls)        # [B, 1 or Lt, Ls]

    n_layers = len(params["layers"])
    attention = None
    for li, lp in enumerate(params["layers"]):
        trg, attn = decoder_layer(lp, trg, enc_src, trg_madd, src_madd,
                                  n_heads, return_attn=(li == n_layers - 1))
        if attn is not None:
            attention = attn

    out_dim = params["w_out"].shape[1]
    output = linear(trg.reshape(B * Lt, hid_dim),
                    params["w_out"], params["b_out"]).reshape(B, Lt, out_dim)
    return output, attention


# ------------------------------ param init -----------------------------------

def init_params(key, out_dim, hid_dim, n_heads, n_layers, pf_dim, max_length):
    head_dim = hid_dim // n_heads
    scale = 1.0 / float(head_dim) ** 0.5   # folded into wq / bq

    def dense(k, fin, fout):
        kw, kb = jax.random.split(k)
        w = jax.random.normal(kw, (fin, fout), F32) * 0.05
        b = jax.random.normal(kb, (fout,), F32) * 0.05
        return w, b

    keys = jax.random.split(key, 3 + n_layers)
    params = {
        "tok_emb": jax.random.normal(keys[0], (out_dim, hid_dim), F32) * 0.05,
        "pos_emb": jax.random.normal(keys[1], (max_length, hid_dim), F32) * 0.05,
    }
    w_out, b_out = dense(keys[2], hid_dim, out_dim)
    params["w_out"] = w_out.astype(BF16)
    params["b_out"] = b_out.reshape(1, out_dim)

    layers = []
    for li in range(n_layers):
        lk = jax.random.split(keys[3 + li], 10)
        # self attention: fused QKV, scale folded into q
        wq, bq = dense(lk[0], hid_dim, hid_dim)
        wk, bk = dense(lk[1], hid_dim, hid_dim)
        wv, bv = dense(lk[2], hid_dim, hid_dim)
        wo, bo = dense(lk[3], hid_dim, hid_dim)
        self_attn = dict(
            w_qkv=jnp.concatenate([wq * scale, wk, wv], axis=1).astype(BF16),
            b_qkv=jnp.concatenate([bq * scale, bk, bv]).reshape(1, 3 * hid_dim),
            wo=wo.astype(BF16), bo=bo.reshape(1, hid_dim),
            ln_g=jnp.ones((1, hid_dim), F32), ln_b=jnp.zeros((1, hid_dim), F32),
        )
        # encoder (cross) attention: separate q, fused KV
        wq, bq = dense(lk[4], hid_dim, hid_dim)
        wk, bk = dense(lk[5], hid_dim, hid_dim)
        wv, bv = dense(lk[6], hid_dim, hid_dim)
        wo, bo = dense(lk[7], hid_dim, hid_dim)
        enc_attn = dict(
            wq=(wq * scale).astype(BF16),
            bq=(bq * scale).reshape(1, hid_dim),
            w_kv=jnp.concatenate([wk, wv], axis=1).astype(BF16),
            b_kv=jnp.concatenate([bk, bv]).reshape(1, 2 * hid_dim),
            wo=wo.astype(BF16), bo=bo.reshape(1, hid_dim),
            ln_g=jnp.ones((1, hid_dim), F32), ln_b=jnp.zeros((1, hid_dim), F32),
        )
        w1, b1 = dense(lk[8], hid_dim, pf_dim)
        w2, b2 = dense(lk[9], pf_dim, hid_dim)
        ffn = dict(
            w1=w1.astype(BF16), b1=b1.reshape(1, pf_dim),
            w2=w2.astype(BF16), b2=b2.reshape(1, hid_dim),
            ln_g=jnp.ones((1, hid_dim), F32), ln_b=jnp.zeros((1, hid_dim), F32),
        )
        layers.append(dict(self_attn=self_attn, enc_attn=enc_attn, ffn=ffn))
    params["layers"] = layers
    return params


# ---------------------------------- main --------------------------------------

if __name__ == "__main__":
    # small config consistent with the PyTorch Decoder
    out_dim = 16      # vocab size
    hid_dim = 32
    n_layers = 2
    n_heads = 4
    pf_dim = 64
    max_length = 16
    B, Lt, Ls = 2, 8, 8

    key = jax.random.PRNGKey(0)
    kp, kt, ke = jax.random.split(key, 3)

    params = init_params(kp, out_dim, hid_dim, n_heads, n_layers, pf_dim,
                         max_length)

    trg_tokens = jax.random.randint(kt, (B, Lt), 0, out_dim, dtype=jnp.int32)
    enc_src = jax.random.normal(ke, (B, Ls, hid_dim), F32)

    # trg_mask: causal [B, 1, Lt, Lt];  src_mask: all-visible [B, 1, 1, Ls]
    trg_mask = jnp.broadcast_to(
        jnp.tril(jnp.ones((Lt, Lt), F32))[None, None, :, :], (B, 1, Lt, Lt))
    src_mask = jnp.ones((B, 1, 1, Ls), F32)

    fwd = jax.jit(functools.partial(decoder_forward, n_heads=n_heads,
                                    hid_dim=hid_dim))
    output, attention = fwd(params, trg_tokens, enc_src, trg_mask, src_mask)
    jax.block_until_ready((output, attention))

    assert output.shape == (B, Lt, out_dim)
    assert attention.shape == (B, n_heads, Lt, Ls)
    assert bool(jnp.all(jnp.isfinite(output)))
    # attention rows sum to ~1 (approx reciprocal in the softmax epilogue)
    assert bool(jnp.allclose(jnp.sum(attention, axis=-1), 1.0, atol=1e-2))

    print("KERNEL_OK")
</pallas_src>

<mosaic_0001>
module attributes {stable_mosaic.version = 11 : i64} {
  func.func @_self_attn_block_kernel(%arg0: i32, %arg1: memref<1x8x32xf32, #tpu.memory_space<vmem>>, %arg2: memref<1x8x8xf32, #tpu.memory_space<vmem>>, %arg3: memref<32x96xbf16, #tpu.memory_space<vmem>>, %arg4: memref<1x96xf32, #tpu.memory_space<vmem>>, %arg5: memref<32x32xbf16, #tpu.memory_space<vmem>>, %arg6: memref<1x32xf32, #tpu.memory_space<vmem>>, %arg7: memref<1x32xf32, #tpu.memory_space<vmem>>, %arg8: memref<1x32xf32, #tpu.memory_space<vmem>>, %arg9: memref<1x8x32xf32, #tpu.memory_space<vmem>>) attributes {dimension_semantics = [#tpu.dimension_semantics<parallel>], iteration_bounds = array<i64: 2>, scalar_prefetch = 0 : i64, scratch_operands = 0 : i64, tpu.core_type = #tpu.core_type<tc>, window_params = [{transform_indices = @transform_0, window_bounds = array<i64: 1, 8, 32>}, {transform_indices = @transform_1, window_bounds = array<i64: 1, 8, 8>}, {pipeline_mode = #tpu.pipeline_mode<synchronous>, transform_indices = @transform_2, window_bounds = array<i64: 32, 96>}, {pipeline_mode = #tpu.pipeline_mode<synchronous>, transform_indices = @transform_3, window_bounds = array<i64: 1, 96>}, {pipeline_mode = #tpu.pipeline_mode<synchronous>, transform_indices = @transform_4, window_bounds = array<i64: 32, 32>}, {pipeline_mode = #tpu.pipeline_mode<synchronous>, transform_indices = @transform_5, window_bounds = array<i64: 1, 32>}, {pipeline_mode = #tpu.pipeline_mode<synchronous>, transform_indices = @transform_6, window_bounds = array<i64: 1, 32>}, {pipeline_mode = #tpu.pipeline_mode<synchronous>, transform_indices = @transform_7, window_bounds = array<i64: 1, 32>}, {transform_indices = @transform_8, window_bounds = array<i64: 1, 8, 32>}]} {
    %c0 = arith.constant 0 : index
    %c0_0 = arith.constant 0 : index
    %c0_1 = arith.constant 0 : index
    %0 = vector.load %arg1[%c0, %c0_0, %c0_1] : memref<1x8x32xf32, #tpu.memory_space<vmem>>, vector<1x8x32xf32>
    %1 = vector.shape_cast %0 : vector<1x8x32xf32> to vector<8x32xf32>
    %2 = arith.truncf %1 : vector<8x32xf32> to vector<8x32xbf16>
    %c0_2 = arith.constant 0 : index
    %c0_3 = arith.constant 0 : index
    %3 = vector.load %arg3[%c0_2, %c0_3] : memref<32x96xbf16, #tpu.memory_space<vmem>>, vector<32x96xbf16>
    %cst = arith.constant dense<0.000000e+00> : vector<8x96xf32>
    %4 = tpu.matmul %2, %3, %cst {dimension_numbers = #tpu.dot_dimension_numbers<[1], [0], [0], [1], [0, 0, 1, 1], [], []>} : vector<8x32xbf16>, vector<32x96xbf16>, vector<8x96xf32> -> vector<8x96xf32>
    %c0_4 = arith.constant 0 : index
    %c0_5 = arith.constant 0 : index
    %5 = vector.load %arg4[%c0_4, %c0_5] : memref<1x96xf32, #tpu.memory_space<vmem>>, vector<1x96xf32>
    %6 = vector.broadcast %5 : vector<1x96xf32> to vector<8x96xf32>
    %7 = arith.addf %4, %6 : vector<8x96xf32>
    %c0_6 = arith.constant 0 : index
    %c0_7 = arith.constant 0 : index
    %c0_8 = arith.constant 0 : index
    %8 = vector.load %arg2[%c0_6, %c0_7, %c0_8] : memref<1x8x8xf32, #tpu.memory_space<vmem>>, vector<1x8x8xf32>
    %9 = vector.shape_cast %8 : vector<1x8x8xf32> to vector<8x8xf32>
    %cst_9 = arith.constant 0.000000e+00 : f32
    %10 = vector.broadcast %cst_9 : f32 to vector<8x32xf32>
    %11 = vector.extract_strided_slice %7 {offsets = [0, 0], sizes = [8, 8], strides = [1, 1]} : vector<8x96xf32> to vector<8x8xf32>
    %12 = vector.extract_strided_slice %7 {offsets = [0, 32], sizes = [8, 8], strides = [1, 1]} : vector<8x96xf32> to vector<8x8xf32>
    %13 = vector.extract_strided_slice %7 {offsets = [0, 64], sizes = [8, 8], strides = [1, 1]} : vector<8x96xf32> to vector<8x8xf32>
    %cst_10 = arith.constant dense<0.000000e+00> : vector<8x8xf32>
    %14 = tpu.matmul %11, %12, %cst_10 {dimension_numbers = #tpu.dot_dimension_numbers<[1], [1], [0], [0], [0, 0, 1, 0], [], []>} : vector<8x8xf32>, vector<8x8xf32>, vector<8x8xf32> -> vector<8x8xf32>
    %15 = arith.addf %14, %9 : vector<8x8xf32>
    %cst_11 = arith.constant dense<0xFF800000> : vector<8xf32>
    %16 = vector.multi_reduction <maximumf>, %15, %cst_11 [1] : vector<8x8xf32> to vector<8xf32>
    %17 = vector.shape_cast %16 : vector<8xf32> to vector<8x1xf32>
    %18 = vector.broadcast %17 : vector<8x1xf32> to vector<8x8xf32>
    %19 = arith.subf %15, %18 : vector<8x8xf32>
    %20 = math.exp %19 : vector<8x8xf32>
    %cst_12 = arith.constant dense<0.000000e+00> : vector<8xf32>
    %21 = vector.multi_reduction <add>, %20, %cst_12 [1] : vector<8x8xf32> to vector<8xf32>
    %22 = vector.shape_cast %21 : vector<8xf32> to vector<8x1xf32>
    %23 = tpu.reciprocal %22 {approx = true} : vector<8x1xf32> -> vector<8x1xf32>
    %cst_13 = arith.constant dense<0.000000e+00> : vector<8x8xf32>
    %24 = tpu.matmul %20, %13, %cst_13 {dimension_numbers = #tpu.dot_dimension_numbers<[1], [0], [0], [1], [0, 0, 1, 1], [], []>} : vector<8x8xf32>, vector<8x8xf32>, vector<8x8xf32> -> vector<8x8xf32>
    %25 = vector.broadcast %23 : vector<8x1xf32> to vector<8x8xf32>
    %26 = arith.mulf %24, %25 : vector<8x8xf32>
    %27 = arith.truncf %26 : vector<8x8xf32> to vector<8x8xbf16>
    %c0_14 = arith.constant 0 : index
    %c0_15 = arith.constant 0 : index
    %28 = vector.load %arg5[%c0_14, %c0_15] : memref<32x32xbf16, #tpu.memory_space<vmem>>, vector<8x32xbf16>
    %cst_16 = arith.constant dense<0.000000e+00> : vector<8x32xf32>
    %29 = tpu.matmul %27, %28, %cst_16 {dimension_numbers = #tpu.dot_dimension_numbers<[1], [0], [0], [1], [0, 0, 1, 1], [], []>} : vector<8x8xbf16>, vector<8x32xbf16>, vector<8x32xf32> -> vector<8x32xf32>
    %30 = arith.addf %10, %29 : vector<8x32xf32>
    %31 = vector.extract_strided_slice %7 {offsets = [0, 8], sizes = [8, 8], strides = [1, 1]} : vector<8x96xf32> to vector<8x8xf32>
    %32 = vector.extract_strided_slice %7 {offsets = [0, 40], sizes = [8, 8], strides = [1, 1]} : vector<8x96xf32> to vector<8x8xf32>
    %33 = vector.extract_strided_slice %7 {offsets = [0, 72], sizes = [8, 8], strides = [1, 1]} : vector<8x96xf32> to vector<8x8xf32>
    %cst_17 = arith.constant dense<0.000000e+00> : vector<8x8xf32>
    %34 = tpu.matmul %31, %32, %cst_17 {dimension_numbers = #tpu.dot_dimension_numbers<[1], [1], [0], [0], [0, 0, 1, 0], [], []>} : vector<8x8xf32>, vector<8x8xf32>, vector<8x8xf32> -> vector<8x8xf32>
    %35 = arith.addf %34, %9 : vector<8x8xf32>
    %cst_18 = arith.constant dense<0xFF800000> : vector<8xf32>
    %36 = vector.multi_reduction <maximumf>, %35, %cst_18 [1] : vector<8x8xf32> to vector<8xf32>
    %37 = vector.shape_cast %36 : vector<8xf32> to vector<8x1xf32>
    %38 = vector.broadcast %37 : vector<8x1xf32> to vector<8x8xf32>
    %39 = arith.subf %35, %38 : vector<8x8xf32>
    %40 = math.exp %39 : vector<8x8xf32>
    %cst_19 = arith.constant dense<0.000000e+00> : vector<8xf32>
    %41 = vector.multi_reduction <add>, %40, %cst_19 [1] : vector<8x8xf32> to vector<8xf32>
    %42 = vector.shape_cast %41 : vector<8xf32> to vector<8x1xf32>
    %43 = tpu.reciprocal %42 {approx = true} : vector<8x1xf32> -> vector<8x1xf32>
    %cst_20 = arith.constant dense<0.000000e+00> : vector<8x8xf32>
    %44 = tpu.matmul %40, %33, %cst_20 {dimension_numbers = #tpu.dot_dimension_numbers<[1], [0], [0], [1], [0, 0, 1, 1], [], []>} : vector<8x8xf32>, vector<8x8xf32>, vector<8x8xf32> -> vector<8x8xf32>
    %45 = vector.broadcast %43 : vector<8x1xf32> to vector<8x8xf32>
    %46 = arith.mulf %44, %45 : vector<8x8xf32>
    %47 = arith.truncf %46 : vector<8x8xf32> to vector<8x8xbf16>
    %c8 = arith.constant 8 : index
    %c0_21 = arith.constant 0 : index
    %48 = vector.load %arg5[%c8, %c0_21] : memref<32x32xbf16, #tpu.memory_space<vmem>>, vector<8x32xbf16>
    %cst_22 = arith.constant dense<0.000000e+00> : vector<8x32xf32>
    %49 = tpu.matmul %47, %48, %cst_22 {dimension_numbers = #tpu.dot_dimension_numbers<[1], [0], [0], [1], [0, 0, 1, 1], [], []>} : vector<8x8xbf16>, vector<8x32xbf16>, vector<8x32xf32> -> vector<8x32xf32>
    %50 = arith.addf %30, %49 : vector<8x32xf32>
    %51 = vector.extract_strided_slice %7 {offsets = [0, 16], sizes = [8, 8], strides = [1, 1]} : vector<8x96xf32> to vector<8x8xf32>
    %52 = vector.extract_strided_slice %7 {offsets = [0, 48], sizes = [8, 8], strides = [1, 1]} : vector<8x96xf32> to vector<8x8xf32>
    %53 = vector.extract_strided_slice %7 {offsets = [0, 80], sizes = [8, 8], strides = [1, 1]} : vector<8x96xf32> to vector<8x8xf32>
    %cst_23 = arith.constant dense<0.000000e+00> : vector<8x8xf32>
    %54 = tpu.matmul %51, %52, %cst_23 {dimension_numbers = #tpu.dot_dimension_numbers<[1], [1], [0], [0], [0, 0, 1, 0], [], []>} : vector<8x8xf32>, vector<8x8xf32>, vector<8x8xf32> -> vector<8x8xf32>
    %55 = arith.addf %54, %9 : vector<8x8xf32>
    %cst_24 = arith.constant dense<0xFF800000> : vector<8xf32>
    %56 = vector.multi_reduction <maximumf>, %55, %cst_24 [1] : vector<8x8xf32> to vector<8xf32>
    %57 = vector.shape_cast %56 : vector<8xf32> to vector<8x1xf32>
    %58 = vector.broadcast %57 : vector<8x1xf32> to vector<8x8xf32>
    %59 = arith.subf %55, %58 : vector<8x8xf32>
    %60 = math.exp %59 : vector<8x8xf32>
    %cst_25 = arith.constant dense<0.000000e+00> : vector<8xf32>
    %61 = vector.multi_reduction <add>, %60, %cst_25 [1] : vector<8x8xf32> to vector<8xf32>
    %62 = vector.shape_cast %61 : vector<8xf32> to vector<8x1xf32>
    %63 = tpu.reciprocal %62 {approx = true} : vector<8x1xf32> -> vector<8x1xf32>
    %cst_26 = arith.constant dense<0.000000e+00> : vector<8x8xf32>
    %64 = tpu.matmul %60, %53, %cst_26 {dimension_numbers = #tpu.dot_dimension_numbers<[1], [0], [0], [1], [0, 0, 1, 1], [], []>} : vector<8x8xf32>, vector<8x8xf32>, vector<8x8xf32> -> vector<8x8xf32>
    %65 = vector.broadcast %63 : vector<8x1xf32> to vector<8x8xf32>
    %66 = arith.mulf %64, %65 : vector<8x8xf32>
    %67 = arith.truncf %66 : vector<8x8xf32> to vector<8x8xbf16>
    %c16 = arith.constant 16 : index
    %c0_27 = arith.constant 0 : index
    %68 = vector.load %arg5[%c16, %c0_27] : memref<32x32xbf16, #tpu.memory_space<vmem>>, vector<8x32xbf16>
    %cst_28 = arith.constant dense<0.000000e+00> : vector<8x32xf32>
    %69 = tpu.matmul %67, %68, %cst_28 {dimension_numbers = #tpu.dot_dimension_numbers<[1], [0], [0], [1], [0, 0, 1, 1], [], []>} : vector<8x8xbf16>, vector<8x32xbf16>, vector<8x32xf32> -> vector<8x32xf32>
    %70 = arith.addf %50, %69 : vector<8x32xf32>
    %71 = vector.extract_strided_slice %7 {offsets = [0, 24], sizes = [8, 8], strides = [1, 1]} : vector<8x96xf32> to vector<8x8xf32>
    %72 = vector.extract_strided_slice %7 {offsets = [0, 56], sizes = [8, 8], strides = [1, 1]} : vector<8x96xf32> to vector<8x8xf32>
    %73 = vector.extract_strided_slice %7 {offsets = [0, 88], sizes = [8, 8], strides = [1, 1]} : vector<8x96xf32> to vector<8x8xf32>
    %cst_29 = arith.constant dense<0.000000e+00> : vector<8x8xf32>
    %74 = tpu.matmul %71, %72, %cst_29 {dimension_numbers = #tpu.dot_dimension_numbers<[1], [1], [0], [0], [0, 0, 1, 0], [], []>} : vector<8x8xf32>, vector<8x8xf32>, vector<8x8xf32> -> vector<8x8xf32>
    %75 = arith.addf %74, %9 : vector<8x8xf32>
    %cst_30 = arith.constant dense<0xFF800000> : vector<8xf32>
    %76 = vector.multi_reduction <maximumf>, %75, %cst_30 [1] : vector<8x8xf32> to vector<8xf32>
    %77 = vector.shape_cast %76 : vector<8xf32> to vector<8x1xf32>
    %78 = vector.broadcast %77 : vector<8x1xf32> to vector<8x8xf32>
    %79 = arith.subf %75, %78 : vector<8x8xf32>
    %80 = math.exp %79 : vector<8x8xf32>
    %cst_31 = arith.constant dense<0.000000e+00> : vector<8xf32>
    %81 = vector.multi_reduction <add>, %80, %cst_31 [1] : vector<8x8xf32> to vector<8xf32>
    %82 = vector.shape_cast %81 : vector<8xf32> to vector<8x1xf32>
    %83 = tpu.reciprocal %82 {approx = true} : vector<8x1xf32> -> vector<8x1xf32>
    %cst_32 = arith.constant dense<0.000000e+00> : vector<8x8xf32>
    %84 = tpu.matmul %80, %73, %cst_32 {dimension_numbers = #tpu.dot_dimension_numbers<[1], [0], [0], [1], [0, 0, 1, 1], [], []>} : vector<8x8xf32>, vector<8x8xf32>, vector<8x8xf32> -> vector<8x8xf32>
    %85 = vector.broadcast %83 : vector<8x1xf32> to vector<8x8xf32>
    %86 = arith.mulf %84, %85 : vector<8x8xf32>
    %87 = arith.truncf %86 : vector<8x8xf32> to vector<8x8xbf16>
    %c24 = arith.constant 24 : index
    %c0_33 = arith.constant 0 : index
    %88 = vector.load %arg5[%c24, %c0_33] : memref<32x32xbf16, #tpu.memory_space<vmem>>, vector<8x32xbf16>
    %cst_34 = arith.constant dense<0.000000e+00> : vector<8x32xf32>
    %89 = tpu.matmul %87, %88, %cst_34 {dimension_numbers = #tpu.dot_dimension_numbers<[1], [0], [0], [1], [0, 0, 1, 1], [], []>} : vector<8x8xbf16>, vector<8x32xbf16>, vector<8x32xf32> -> vector<8x32xf32>
    %90 = arith.addf %70, %89 : vector<8x32xf32>
    %c0_35 = arith.constant 0 : index
    %c0_36 = arith.constant 0 : index
    %91 = vector.load %arg6[%c0_35, %c0_36] : memref<1x32xf32, #tpu.memory_space<vmem>>, vector<1x32xf32>
    %92 = vector.broadcast %91 : vector<1x32xf32> to vector<8x32xf32>
    %93 = arith.addf %90, %92 : vector<8x32xf32>
    %94 = arith.addf %1, %93 : vector<8x32xf32>
    %c0_37 = arith.constant 0 : index
    %c0_38 = arith.constant 0 : index
    %95 = vector.load %arg7[%c0_37, %c0_38] : memref<1x32xf32, #tpu.memory_space<vmem>>, vector<1x32xf32>
    %c0_39 = arith.constant 0 : index
    %c0_40 = arith.constant 0 : index
    %96 = vector.load %arg8[%c0_39, %c0_40] : memref<1x32xf32, #tpu.memory_space<vmem>>, vector<1x32xf32>
    %cst_41 = arith.constant dense<0.000000e+00> : vector<8xf32>
    %97 = vector.multi_reduction <add>, %94, %cst_41 [1] : vector<8x32xf32> to vector<8xf32>
    %98 = vector.shape_cast %97 : vector<8xf32> to vector<8x1xf32>
    %cst_42 = arith.constant 3.200000e+01 : f32
    %99 = vector.broadcast %cst_42 : f32 to vector<8x1xf32>
    %100 = arith.divf %98, %99 : vector<8x1xf32>
    %101 = vector.broadcast %100 : vector<8x1xf32> to vector<8x32xf32>
    %102 = arith.subf %94, %101 : vector<8x32xf32>
    %103 = vector.broadcast %100 : vector<8x1xf32> to vector<8x32xf32>
    %104 = arith.subf %94, %103 : vector<8x32xf32>
    %105 = arith.mulf %102, %104 : vector<8x32xf32>
    %cst_43 = arith.constant dense<0.000000e+00> : vector<8xf32>
    %106 = vector.multi_reduction <add>, %105, %cst_43 [1] : vector<8x32xf32> to vector<8xf32>
    %107 = vector.shape_cast %106 : vector<8xf32> to vector<8x1xf32>
    %cst_44 = arith.constant 3.200000e+01 : f32
    %108 = vector.broadcast %cst_44 : f32 to vector<8x1xf32>
    %109 = arith.divf %107, %108 : vector<8x1xf32>
    %110 = vector.broadcast %100 : vector<8x1xf32> to vector<8x32xf32>
    %111 = arith.subf %94, %110 : vector<8x32xf32>
    %cst_45 = arith.constant 9.99999974E-6 : f32
    %112 = vector.broadcast %cst_45 : f32 to vector<8x1xf32>
    %113 = arith.addf %109, %112 : vector<8x1xf32>
    %114 = math.rsqrt %113 : vector<8x1xf32>
    %115 = vector.broadcast %114 : vector<8x1xf32> to vector<8x32xf32>
    %116 = arith.mulf %111, %115 : vector<8x32xf32>
    %117 = vector.broadcast %95 : vector<1x32xf32> to vector<8x32xf32>
    %118 = arith.mulf %116, %117 : vector<8x32xf32>
    %119 = vector.broadcast %96 : vector<1x32xf32> to vector<8x32xf32>
    %120 = arith.addf %118, %119 : vector<8x32xf32>
    %c0_46 = arith.constant 0 : index
    %c0_47 = arith.constant 0 : index
    %c0_48 = arith.constant 0 : index
    %121 = vector.load %arg9[%c0_46, %c0_47, %c0_48] : memref<1x8x32xf32, #tpu.memory_space<vmem>>, vector<1x8x32xf32>
    %122 = vector.shape_cast %121 : vector<1x8x32xf32> to vector<8x32xf32>
    %123 = vector.shape_cast %120 : vector<8x32xf32> to vector<1x8x32xf32>
    tpu.vector_store %arg9[%c0_46, %c0_47, %c0_48], %123 {strides = array<i32>} : memref<1x8x32xf32, #tpu.memory_space<vmem>>, vector<1x8x32xf32>,
    return
  }
  func.func @transform_0(%arg0: i32) -> (i32, i32, i32) {
    %c0_i32 = arith.constant 0 : i32
    %c0_i32_0 = arith.constant 0 : i32
    %c0_i32_1 = arith.constant 0 : i32
    return %arg0, %c0_i32, %c0_i32_0 : i32, i32, i32
  }
  func.func @transform_1(%arg0: i32) -> (i32, i32, i32) {
    %c0_i32 = arith.constant 0 : i32
    %c0_i32_0 = arith.constant 0 : i32
    %c0_i32_1 = arith.constant 0 : i32
    return %arg0, %c0_i32, %c0_i32_0 : i32, i32, i32
  }
  func.func @transform_2(%arg0: i32) -> (i32, i32) {
    %c0_i32 = arith.constant 0 : i32
    %c0_i32_0 = arith.constant 0 : i32
    %c0_i32_1 = arith.constant 0 : i32
    return %c0_i32, %c0_i32_0 : i32, i32
  }
  func.func @transform_3(%arg0: i32) -> (i32, i32) {
    %c0_i32 = arith.constant 0 : i32
    %c0_i32_0 = arith.constant 0 : i32
    %c0_i32_1 = arith.constant 0 : i32
    return %c0_i32, %c0_i32_0 : i32, i32
  }
  func.func @transform_4(%arg0: i32) -> (i32, i32) {
    %c0_i32 = arith.constant 0 : i32
    %c0_i32_0 = arith.constant 0 : i32
    %c0_i32_1 = arith.constant 0 : i32
    return %c0_i32, %c0_i32_0 : i32, i32
  }
  func.func @transform_5(%arg0: i32) -> (i32, i32) {
    %c0_i32 = arith.constant 0 : i32
    %c0_i32_0 = arith.constant 0 : i32
    %c0_i32_1 = arith.constant 0 : i32
    return %c0_i32, %c0_i32_0 : i32, i32
  }
  func.func @transform_6(%arg0: i32) -> (i32, i32) {
    %c0_i32 = arith.constant 0 : i32
    %c0_i32_0 = arith.constant 0 : i32
    %c0_i32_1 = arith.constant 0 : i32
    return %c0_i32, %c0_i32_0 : i32, i32
  }
  func.func @transform_7(%arg0: i32) -> (i32, i32) {
    %c0_i32 = arith.constant 0 : i32
    %c0_i32_0 = arith.constant 0 : i32
    %c0_i32_1 = arith.constant 0 : i32
    return %c0_i32, %c0_i32_0 : i32, i32
  }
  func.func @transform_8(%arg0: i32) -> (i32, i32, i32) {
    %c0_i32 = arith.constant 0 : i32
    %c0_i32_0 = arith.constant 0 : i32
    %c0_i32_1 = arith.constant 0 : i32
    return %arg0, %c0_i32, %c0_i32_0 : i32, i32, i32
  }
}

module attributes {stable_mosaic.version = 11 : i64} {
  func.func @_cross_attn_block_kernel(%arg0: i32, %arg1: memref<1x8x32xf32, #tpu.memory_space<vmem>>, %arg2: memref<1x8x32xf32, #tpu.memory_space<vmem>>, %arg3: memref<1x1x8xf32, #tpu.memory_space<vmem>>, %arg4: memref<32x32xbf16, #tpu.memory_space<vmem>>, %arg5: memref<1x32xf32, #tpu.memory_space<vmem>>, %arg6: memref<32x64xbf16, #tpu.memory_space<vmem>>, %arg7: memref<1x64xf32, #tpu.memory_space<vmem>>, %arg8: memref<32x32xbf16, #tpu.memory_space<vmem>>, %arg9: memref<1x32xf32, #tpu.memory_space<vmem>>, %arg10: memref<1x32xf32, #tpu.memory_space<vmem>>, %arg11: memref<1x32xf32, #tpu.memory_space<vmem>>, %arg12: memref<1x8x32xf32, #tpu.memory_space<vmem>>) attributes {dimension_semantics = [#tpu.dimension_semantics<parallel>], iteration_bounds = array<i64: 2>, scalar_prefetch = 0 : i64, scratch_operands = 0 : i64, tpu.core_type = #tpu.core_type<tc>, window_params = [{transform_indices = @transform_0, window_bounds = array<i64: 1, 8, 32>}, {transform_indices = @transform_1, window_bounds = array<i64: 1, 8, 32>}, {transform_indices = @transform_2, window_bounds = array<i64: 1, 1, 8>}, {pipeline_mode = #tpu.pipeline_mode<synchronous>, transform_indices = @transform_3, window_bounds = array<i64: 32, 32>}, {pipeline_mode = #tpu.pipeline_mode<synchronous>, transform_indices = @transform_4, window_bounds = array<i64: 1, 32>}, {pipeline_mode = #tpu.pipeline_mode<synchronous>, transform_indices = @transform_5, window_bounds = array<i64: 32, 64>}, {pipeline_mode = #tpu.pipeline_mode<synchronous>, transform_indices = @transform_6, window_bounds = array<i64: 1, 64>}, {pipeline_mode = #tpu.pipeline_mode<synchronous>, transform_indices = @transform_7, window_bounds = array<i64: 32, 32>}, {pipeline_mode = #tpu.pipeline_mode<synchronous>, transform_indices = @transform_8, window_bounds = array<i64: 1, 32>}, {pipeline_mode = #tpu.pipeline_mode<synchronous>, transform_indices = @transform_9, window_bounds = array<i64: 1, 32>}, {pipeline_mode = #tpu.pipeline_mode<synchronous>, transform_indices = @transform_10, window_bounds = array<i64: 1, 32>}, {transform_indices = @transform_11, window_bounds = array<i64: 1, 8, 32>}]} {
    %c0 = arith.constant 0 : index
    %c0_0 = arith.constant 0 : index
    %c0_1 = arith.constant 0 : index
    %0 = vector.load %arg1[%c0, %c0_0, %c0_1] : memref<1x8x32xf32, #tpu.memory_space<vmem>>, vector<1x8x32xf32>
    %1 = vector.shape_cast %0 : vector<1x8x32xf32> to vector<8x32xf32>
    %c0_2 = arith.constant 0 : index
    %c0_3 = arith.constant 0 : index
    %c0_4 = arith.constant 0 : index
    %2 = vector.load %arg2[%c0_2, %c0_3, %c0_4] : memref<1x8x32xf32, #tpu.memory_space<vmem>>, vector<1x8x32xf32>
    %3 = vector.shape_cast %2 : vector<1x8x32xf32> to vector<8x32xf32>
    %4 = arith.truncf %1 : vector<8x32xf32> to vector<8x32xbf16>
    %c0_5 = arith.constant 0 : index
    %c0_6 = arith.constant 0 : index
    %5 = vector.load %arg4[%c0_5, %c0_6] : memref<32x32xbf16, #tpu.memory_space<vmem>>, vector<32x32xbf16>
    %cst = arith.constant dense<0.000000e+00> : vector<8x32xf32>
    %6 = tpu.matmul %4, %5, %cst {dimension_numbers = #tpu.dot_dimension_numbers<[1], [0], [0], [1], [0, 0, 1, 1], [], []>} : vector<8x32xbf16>, vector<32x32xbf16>, vector<8x32xf32> -> vector<8x32xf32>
    %c0_7 = arith.constant 0 : index
    %c0_8 = arith.constant 0 : index
    %7 = vector.load %arg5[%c0_7, %c0_8] : memref<1x32xf32, #tpu.memory_space<vmem>>, vector<1x32xf32>
    %8 = vector.broadcast %7 : vector<1x32xf32> to vector<8x32xf32>
    %9 = arith.addf %6, %8 : vector<8x32xf32>
    %10 = arith.truncf %3 : vector<8x32xf32> to vector<8x32xbf16>
    %c0_9 = arith.constant 0 : index
    %c0_10 = arith.constant 0 : index
    %11 = vector.load %arg6[%c0_9, %c0_10] : memref<32x64xbf16, #tpu.memory_space<vmem>>, vector<32x64xbf16>
    %cst_11 = arith.constant dense<0.000000e+00> : vector<8x64xf32>
    %12 = tpu.matmul %10, %11, %cst_11 {dimension_numbers = #tpu.dot_dimension_numbers<[1], [0], [0], [1], [0, 0, 1, 1], [], []>} : vector<8x32xbf16>, vector<32x64xbf16>, vector<8x64xf32> -> vector<8x64xf32>
    %c0_12 = arith.constant 0 : index
    %c0_13 = arith.constant 0 : index
    %13 = vector.load %arg7[%c0_12, %c0_13] : memref<1x64xf32, #tpu.memory_space<vmem>>, vector<1x64xf32>
    %14 = vector.broadcast %13 : vector<1x64xf32> to vector<8x64xf32>
    %15 = arith.addf %12, %14 : vector<8x64xf32>
    %c0_14 = arith.constant 0 : index
    %c0_15 = arith.constant 0 : index
    %c0_16 = arith.constant 0 : index
    %16 = vector.load %arg3[%c0_14, %c0_15, %c0_16] : memref<1x1x8xf32, #tpu.memory_space<vmem>>, vector<1x1x8xf32>
    %17 = vector.shape_cast %16 : vector<1x1x8xf32> to vector<1x8xf32>
    %cst_17 = arith.constant 0.000000e+00 : f32
    %18 = vector.broadcast %cst_17 : f32 to vector<8x32xf32>
    %19 = vector.extract_strided_slice %9 {offsets = [0, 0], sizes = [8, 8], strides = [1, 1]} : vector<8x32xf32> to vector<8x8xf32>
    %20 = vector.extract_strided_slice %15 {offsets = [0, 0], sizes = [8, 8], strides = [1, 1]} : vector<8x64xf32> to vector<8x8xf32>
    %21 = vector.extract_strided_slice %15 {offsets = [0, 32], sizes = [8, 8], strides = [1, 1]} : vector<8x64xf32> to vector<8x8xf32>
    %cst_18 = arith.constant dense<0.000000e+00> : vector<8x8xf32>
    %22 = tpu.matmul %19, %20, %cst_18 {dimension_numbers = #tpu.dot_dimension_numbers<[1], [1], [0], [0], [0, 0, 1, 0], [], []>} : vector<8x8xf32>, vector<8x8xf32>, vector<8x8xf32> -> vector<8x8xf32>
    %23 = vector.broadcast %17 : vector<1x8xf32> to vector<8x8xf32>
    %24 = arith.addf %22, %23 : vector<8x8xf32>
    %cst_19 = arith.constant dense<0xFF800000> : vector<8xf32>
    %25 = vector.multi_reduction <maximumf>, %24, %cst_19 [1] : vector<8x8xf32> to vector<8xf32>
    %26 = vector.shape_cast %25 : vector<8xf32> to vector<8x1xf32>
    %27 = vector.broadcast %26 : vector<8x1xf32> to vector<8x8xf32>
    %28 = arith.subf %24, %27 : vector<8x8xf32>
    %29 = math.exp %28 : vector<8x8xf32>
    %cst_20 = arith.constant dense<0.000000e+00> : vector<8xf32>
    %30 = vector.multi_reduction <add>, %29, %cst_20 [1] : vector<8x8xf32> to vector<8xf32>
    %31 = vector.shape_cast %30 : vector<8xf32> to vector<8x1xf32>
    %32 = tpu.reciprocal %31 {approx = true} : vector<8x1xf32> -> vector<8x1xf32>
    %cst_21 = arith.constant dense<0.000000e+00> : vector<8x8xf32>
    %33 = tpu.matmul %29, %21, %cst_21 {dimension_numbers = #tpu.dot_dimension_numbers<[1], [0], [0], [1], [0, 0, 1, 1], [], []>} : vector<8x8xf32>, vector<8x8xf32>, vector<8x8xf32> -> vector<8x8xf32>
    %34 = vector.broadcast %32 : vector<8x1xf32> to vector<8x8xf32>
    %35 = arith.mulf %33, %34 : vector<8x8xf32>
    %36 = arith.truncf %35 : vector<8x8xf32> to vector<8x8xbf16>
    %c0_22 = arith.constant 0 : index
    %c0_23 = arith.constant 0 : index
    %37 = vector.load %arg8[%c0_22, %c0_23] : memref<32x32xbf16, #tpu.memory_space<vmem>>, vector<8x32xbf16>
    %cst_24 = arith.constant dense<0.000000e+00> : vector<8x32xf32>
    %38 = tpu.matmul %36, %37, %cst_24 {dimension_numbers = #tpu.dot_dimension_numbers<[1], [0], [0], [1], [0, 0, 1, 1], [], []>} : vector<8x8xbf16>, vector<8x32xbf16>, vector<8x32xf32> -> vector<8x32xf32>
    %39 = arith.addf %18, %38 : vector<8x32xf32>
    %40 = vector.extract_strided_slice %9 {offsets = [0, 8], sizes = [8, 8], strides = [1, 1]} : vector<8x32xf32> to vector<8x8xf32>
    %41 = vector.extract_strided_slice %15 {offsets = [0, 8], sizes = [8, 8], strides = [1, 1]} : vector<8x64xf32> to vector<8x8xf32>
    %42 = vector.extract_strided_slice %15 {offsets = [0, 40], sizes = [8, 8], strides = [1, 1]} : vector<8x64xf32> to vector<8x8xf32>
    %cst_25 = arith.constant dense<0.000000e+00> : vector<8x8xf32>
    %43 = tpu.matmul %40, %41, %cst_25 {dimension_numbers = #tpu.dot_dimension_numbers<[1], [1], [0], [0], [0, 0, 1, 0], [], []>} : vector<8x8xf32>, vector<8x8xf32>, vector<8x8xf32> -> vector<8x8xf32>
    %44 = vector.broadcast %17 : vector<1x8xf32> to vector<8x8xf32>
    %45 = arith.addf %43, %44 : vector<8x8xf32>
    %cst_26 = arith.constant dense<0xFF800000> : vector<8xf32>
    %46 = vector.multi_reduction <maximumf>, %45, %cst_26 [1] : vector<8x8xf32> to vector<8xf32>
    %47 = vector.shape_cast %46 : vector<8xf32> to vector<8x1xf32>
    %48 = vector.broadcast %47 : vector<8x1xf32> to vector<8x8xf32>
    %49 = arith.subf %45, %48 : vector<8x8xf32>
    %50 = math.exp %49 : vector<8x8xf32>
    %cst_27 = arith.constant dense<0.000000e+00> : vector<8xf32>
    %51 = vector.multi_reduction <add>, %50, %cst_27 [1] : vector<8x8xf32> to vector<8xf32>
    %52 = vector.shape_cast %51 : vector<8xf32> to vector<8x1xf32>
    %53 = tpu.reciprocal %52 {approx = true} : vector<8x1xf32> -> vector<8x1xf32>
    %cst_28 = arith.constant dense<0.000000e+00> : vector<8x8xf32>
    %54 = tpu.matmul %50, %42, %cst_28 {dimension_numbers = #tpu.dot_dimension_numbers<[1], [0], [0], [1], [0, 0, 1, 1], [], []>} : vector<8x8xf32>, vector<8x8xf32>, vector<8x8xf32> -> vector<8x8xf32>
    %55 = vector.broadcast %53 : vector<8x1xf32> to vector<8x8xf32>
    %56 = arith.mulf %54, %55 : vector<8x8xf32>
    %57 = arith.truncf %56 : vector<8x8xf32> to vector<8x8xbf16>
    %c8 = arith.constant 8 : index
    %c0_29 = arith.constant 0 : index
    %58 = vector.load %arg8[%c8, %c0_29] : memref<32x32xbf16, #tpu.memory_space<vmem>>, vector<8x32xbf16>
    %cst_30 = arith.constant dense<0.000000e+00> : vector<8x32xf32>
    %59 = tpu.matmul %57, %58, %cst_30 {dimension_numbers = #tpu.dot_dimension_numbers<[1], [0], [0], [1], [0, 0, 1, 1], [], []>} : vector<8x8xbf16>, vector<8x32xbf16>, vector<8x32xf32> -> vector<8x32xf32>
    %60 = arith.addf %39, %59 : vector<8x32xf32>
    %61 = vector.extract_strided_slice %9 {offsets = [0, 16], sizes = [8, 8], strides = [1, 1]} : vector<8x32xf32> to vector<8x8xf32>
    %62 = vector.extract_strided_slice %15 {offsets = [0, 16], sizes = [8, 8], strides = [1, 1]} : vector<8x64xf32> to vector<8x8xf32>
    %63 = vector.extract_strided_slice %15 {offsets = [0, 48], sizes = [8, 8], strides = [1, 1]} : vector<8x64xf32> to vector<8x8xf32>
    %cst_31 = arith.constant dense<0.000000e+00> : vector<8x8xf32>
    %64 = tpu.matmul %61, %62, %cst_31 {dimension_numbers = #tpu.dot_dimension_numbers<[1], [1], [0], [0], [0, 0, 1, 0], [], []>} : vector<8x8xf32>, vector<8x8xf32>, vector<8x8xf32> -> vector<8x8xf32>
    %65 = vector.broadcast %17 : vector<1x8xf32> to vector<8x8xf32>
    %66 = arith.addf %64, %65 : vector<8x8xf32>
    %cst_32 = arith.constant dense<0xFF800000> : vector<8xf32>
    %67 = vector.multi_reduction <maximumf>, %66, %cst_32 [1] : vector<8x8xf32> to vector<8xf32>
    %68 = vector.shape_cast %67 : vector<8xf32> to vector<8x1xf32>
    %69 = vector.broadcast %68 : vector<8x1xf32> to vector<8x8xf32>
    %70 = arith.subf %66, %69 : vector<8x8xf32>
    %71 = math.exp %70 : vector<8x8xf32>
    %cst_33 = arith.constant dense<0.000000e+00> : vector<8xf32>
    %72 = vector.multi_reduction <add>, %71, %cst_33 [1] : vector<8x8xf32> to vector<8xf32>
    %73 = vector.shape_cast %72 : vector<8xf32> to vector<8x1xf32>
    %74 = tpu.reciprocal %73 {approx = true} : vector<8x1xf32> -> vector<8x1xf32>
    %cst_34 = arith.constant dense<0.000000e+00> : vector<8x8xf32>
    %75 = tpu.matmul %71, %63, %cst_34 {dimension_numbers = #tpu.dot_dimension_numbers<[1], [0], [0], [1], [0, 0, 1, 1], [], []>} : vector<8x8xf32>, vector<8x8xf32>, vector<8x8xf32> -> vector<8x8xf32>
    %76 = vector.broadcast %74 : vector<8x1xf32> to vector<8x8xf32>
    %77 = arith.mulf %75, %76 : vector<8x8xf32>
    %78 = arith.truncf %77 : vector<8x8xf32> to vector<8x8xbf16>
    %c16 = arith.constant 16 : index
    %c0_35 = arith.constant 0 : index
    %79 = vector.load %arg8[%c16, %c0_35] : memref<32x32xbf16, #tpu.memory_space<vmem>>, vector<8x32xbf16>
    %cst_36 = arith.constant dense<0.000000e+00> : vector<8x32xf32>
    %80 = tpu.matmul %78, %79, %cst_36 {dimension_numbers = #tpu.dot_dimension_numbers<[1], [0], [0], [1], [0, 0, 1, 1], [], []>} : vector<8x8xbf16>, vector<8x32xbf16>, vector<8x32xf32> -> vector<8x32xf32>
    %81 = arith.addf %60, %80 : vector<8x32xf32>
    %82 = vector.extract_strided_slice %9 {offsets = [0, 24], sizes = [8, 8], strides = [1, 1]} : vector<8x32xf32> to vector<8x8xf32>
    %83 = vector.extract_strided_slice %15 {offsets = [0, 24], sizes = [8, 8], strides = [1, 1]} : vector<8x64xf32> to vector<8x8xf32>
    %84 = vector.extract_strided_slice %15 {offsets = [0, 56], sizes = [8, 8], strides = [1, 1]} : vector<8x64xf32> to vector<8x8xf32>
    %cst_37 = arith.constant dense<0.000000e+00> : vector<8x8xf32>
    %85 = tpu.matmul %82, %83, %cst_37 {dimension_numbers = #tpu.dot_dimension_numbers<[1], [1], [0], [0], [0, 0, 1, 0], [], []>} : vector<8x8xf32>, vector<8x8xf32>, vector<8x8xf32> -> vector<8x8xf32>
    %86 = vector.broadcast %17 : vector<1x8xf32> to vector<8x8xf32>
    %87 = arith.addf %85, %86 : vector<8x8xf32>
    %cst_38 = arith.constant dense<0xFF800000> : vector<8xf32>
    %88 = vector.multi_reduction <maximumf>, %87, %cst_38 [1] : vector<8x8xf32> to vector<8xf32>
    %89 = vector.shape_cast %88 : vector<8xf32> to vector<8x1xf32>
    %90 = vector.broadcast %89 : vector<8x1xf32> to vector<8x8xf32>
    %91 = arith.subf %87, %90 : vector<8x8xf32>
    %92 = math.exp %91 : vector<8x8xf32>
    %cst_39 = arith.constant dense<0.000000e+00> : vector<8xf32>
    %93 = vector.multi_reduction <add>, %92, %cst_39 [1] : vector<8x8xf32> to vector<8xf32>
    %94 = vector.shape_cast %93 : vector<8xf32> to vector<8x1xf32>
    %95 = tpu.reciprocal %94 {approx = true} : vector<8x1xf32> -> vector<8x1xf32>
    %cst_40 = arith.constant dense<0.000000e+00> : vector<8x8xf32>
    %96 = tpu.matmul %92, %84, %cst_40 {dimension_numbers = #tpu.dot_dimension_numbers<[1], [0], [0], [1], [0, 0, 1, 1], [], []>} : vector<8x8xf32>, vector<8x8xf32>, vector<8x8xf32> -> vector<8x8xf32>
    %97 = vector.broadcast %95 : vector<8x1xf32> to vector<8x8xf32>
    %98 = arith.mulf %96, %97 : vector<8x8xf32>
    %99 = arith.truncf %98 : vector<8x8xf32> to vector<8x8xbf16>
    %c24 = arith.constant 24 : index
    %c0_41 = arith.constant 0 : index
    %100 = vector.load %arg8[%c24, %c0_41] : memref<32x32xbf16, #tpu.memory_space<vmem>>, vector<8x32xbf16>
    %cst_42 = arith.constant dense<0.000000e+00> : vector<8x32xf32>
    %101 = tpu.matmul %99, %100, %cst_42 {dimension_numbers = #tpu.dot_dimension_numbers<[1], [0], [0], [1], [0, 0, 1, 1], [], []>} : vector<8x8xbf16>, vector<8x32xbf16>, vector<8x32xf32> -> vector<8x32xf32>
    %102 = arith.addf %81, %101 : vector<8x32xf32>
    %c0_43 = arith.constant 0 : index
    %c0_44 = arith.constant 0 : index
    %103 = vector.load %arg9[%c0_43, %c0_44] : memref<1x32xf32, #tpu.memory_space<vmem>>, vector<1x32xf32>
    %104 = vector.broadcast %103 : vector<1x32xf32> to vector<8x32xf32>
    %105 = arith.addf %102, %104 : vector<8x32xf32>
    %106 = arith.addf %1, %105 : vector<8x32xf32>
    %c0_45 = arith.constant 0 : index
    %c0_46 = arith.constant 0 : index
    %107 = vector.load %arg10[%c0_45, %c0_46] : memref<1x32xf32, #tpu.memory_space<vmem>>, vector<1x32xf32>
    %c0_47 = arith.constant 0 : index
    %c0_48 = arith.constant 0 : index
    %108 = vector.load %arg11[%c0_47, %c0_48] : memref<1x32xf32, #tpu.memory_space<vmem>>, vector<1x32xf32>
    %cst_49 = arith.constant dense<0.000000e+00> : vector<8xf32>
    %109 = vector.multi_reduction <add>, %106, %cst_49 [1] : vector<8x32xf32> to vector<8xf32>
    %110 = vector.shape_cast %109 : vector<8xf32> to vector<8x1xf32>
    %cst_50 = arith.constant 3.200000e+01 : f32
    %111 = vector.broadcast %cst_50 : f32 to vector<8x1xf32>
    %112 = arith.divf %110, %111 : vector<8x1xf32>
    %113 = vector.broadcast %112 : vector<8x1xf32> to vector<8x32xf32>
    %114 = arith.subf %106, %113 : vector<8x32xf32>
    %115 = vector.broadcast %112 : vector<8x1xf32> to vector<8x32xf32>
    %116 = arith.subf %106, %115 : vector<8x32xf32>
    %117 = arith.mulf %114, %116 : vector<8x32xf32>
    %cst_51 = arith.constant dense<0.000000e+00> : vector<8xf32>
    %118 = vector.multi_reduction <add>, %117, %cst_51 [1] : vector<8x32xf32> to vector<8xf32>
    %119 = vector.shape_cast %118 : vector<8xf32> to vector<8x1xf32>
    %cst_52 = arith.constant 3.200000e+01 : f32
    %120 = vector.broadcast %cst_52 : f32 to vector<8x1xf32>
    %121 = arith.divf %119, %120 : vector<8x1xf32>
    %122 = vector.broadcast %112 : vector<8x1xf32> to vector<8x32xf32>
    %123 = arith.subf %106, %122 : vector<8x32xf32>
    %cst_53 = arith.constant 9.99999974E-6 : f32
    %124 = vector.broadcast %cst_53 : f32 to vector<8x1xf32>
    %125 = arith.addf %121, %124 : vector<8x1xf32>
    %126 = math.rsqrt %125 : vector<8x1xf32>
    %127 = vector.broadcast %126 : vector<8x1xf32> to vector<8x32xf32>
    %128 = arith.mulf %123, %127 : vector<8x32xf32>
    %129 = vector.broadcast %107 : vector<1x32xf32> to vector<8x32xf32>
    %130 = arith.mulf %128, %129 : vector<8x32xf32>
    %131 = vector.broadcast %108 : vector<1x32xf32> to vector<8x32xf32>
    %132 = arith.addf %130, %131 : vector<8x32xf32>
    %c0_54 = arith.constant 0 : index
    %c0_55 = arith.constant 0 : index
    %c0_56 = arith.constant 0 : index
    %133 = vector.load %arg12[%c0_54, %c0_55, %c0_56] : memref<1x8x32xf32, #tpu.memory_space<vmem>>, vector<1x8x32xf32>
    %134 = vector.shape_cast %133 : vector<1x8x32xf32> to vector<8x32xf32>
    %135 = vector.shape_cast %132 : vector<8x32xf32> to vector<1x8x32xf32>
    tpu.vector_store %arg12[%c0_54, %c0_55, %c0_56], %135 {strides = array<i32>} : memref<1x8x32xf32, #tpu.memory_space<vmem>>, vector<1x8x32xf32>,
    return
  }
  func.func @transform_0(%arg0: i32) -> (i32, i32, i32) {
    %c0_i32 = arith.constant 0 : i32
    %c0_i32_0 = arith.constant 0 : i32
    %c0_i32_1 = arith.constant 0 : i32
    return %arg0, %c0_i32, %c0_i32_0 : i32, i32, i32
  }
  func.func @transform_1(%arg0: i32) -> (i32, i32, i32) {
    %c0_i32 = arith.constant 0 : i32
    %c0_i32_0 = arith.constant 0 : i32
    %c0_i32_1 = arith.constant 0 : i32
    return %arg0, %c0_i32, %c0_i32_0 : i32, i32, i32
  }
  func.func @transform_2(%arg0: i32) -> (i32, i32, i32) {
    %c0_i32 = arith.constant 0 : i32
    %c0_i32_0 = arith.constant 0 : i32
    %c0_i32_1 = arith.constant 0 : i32
    return %arg0, %c0_i32, %c0_i32_0 : i32, i32, i32
  }
  func.func @transform_3(%arg0: i32) -> (i32, i32) {
    %c0_i32 = arith.constant 0 : i32
    %c0_i32_0 = arith.constant 0 : i32
    %c0_i32_1 = arith.constant 0 : i32
    return %c0_i32, %c0_i32_0 : i32, i32
  }
  func.func @transform_4(%arg0: i32) -> (i32, i32) {
    %c0_i32 = arith.constant 0 : i32
    %c0_i32_0 = arith.constant 0 : i32
    %c0_i32_1 = arith.constant 0 : i32
    return %c0_i32, %c0_i32_0 : i32, i32
  }
  func.func @transform_5(%arg0: i32) -> (i32, i32) {
    %c0_i32 = arith.constant 0 : i32
    %c0_i32_0 = arith.constant 0 : i32
    %c0_i32_1 = arith.constant 0 : i32
    return %c0_i32, %c0_i32_0 : i32, i32
  }
  func.func @transform_6(%arg0: i32) -> (i32, i32) {
    %c0_i32 = arith.constant 0 : i32
    %c0_i32_0 = arith.constant 0 : i32
    %c0_i32_1 = arith.constant 0 : i32
    return %c0_i32, %c0_i32_0 : i32, i32
  }
  func.func @transform_7(%arg0: i32) -> (i32, i32) {
    %c0_i32 = arith.constant 0 : i32
    %c0_i32_0 = arith.constant 0 : i32
    %c0_i32_1 = arith.constant 0 : i32
    return %c0_i32, %c0_i32_0 : i32, i32
  }
  func.func @transform_8(%arg0: i32) -> (i32, i32) {
    %c0_i32 = arith.constant 0 : i32
    %c0_i32_0 = arith.constant 0 : i32
    %c0_i32_1 = arith.constant 0 : i32
    return %c0_i32, %c0_i32_0 : i32, i32
  }
  func.func @transform_9(%arg0: i32) -> (i32, i32) {
    %c0_i32 = arith.constant 0 : i32
    %c0_i32_0 = arith.constant 0 : i32
    %c0_i32_1 = arith.constant 0 : i32
    return %c0_i32, %c0_i32_0 : i32, i32
  }
  func.func @transform_10(%arg0: i32) -> (i32, i32) {
    %c0_i32 = arith.constant 0 : i32
    %c0_i32_0 = arith.constant 0 : i32
    %c0_i32_1 = arith.constant 0 : i32
    return %c0_i32, %c0_i32_0 : i32, i32
  }
  func.func @transform_11(%arg0: i32) -> (i32, i32, i32) {
    %c0_i32 = arith.constant 0 : i32
    %c0_i32_0 = arith.constant 0 : i32
    %c0_i32_1 = arith.constant 0 : i32
    return %arg0, %c0_i32, %c0_i32_0 : i32, i32, i32
  }
}

module attributes {stable_mosaic.version = 11 : i64} {
  func.func @_cross_attn_block_kernel(%arg0: i32, %arg1: memref<1x8x32xf32, #tpu.memory_space<vmem>>, %arg2: memref<1x8x32xf32, #tpu.memory_space<vmem>>, %arg3: memref<1x1x8xf32, #tpu.memory_space<vmem>>, %arg4: memref<32x32xbf16, #tpu.memory_space<vmem>>, %arg5: memref<1x32xf32, #tpu.memory_space<vmem>>, %arg6: memref<32x64xbf16, #tpu.memory_space<vmem>>, %arg7: memref<1x64xf32, #tpu.memory_space<vmem>>, %arg8: memref<32x32xbf16, #tpu.memory_space<vmem>>, %arg9: memref<1x32xf32, #tpu.memory_space<vmem>>, %arg10: memref<1x32xf32, #tpu.memory_space<vmem>>, %arg11: memref<1x32xf32, #tpu.memory_space<vmem>>, %arg12: memref<1x8x32xf32, #tpu.memory_space<vmem>>, %arg13: memref<1x4x8x8xf32, #tpu.memory_space<vmem>>) attributes {dimension_semantics = [#tpu.dimension_semantics<parallel>], iteration_bounds = array<i64: 2>, scalar_prefetch = 0 : i64, scratch_operands = 0 : i64, tpu.core_type = #tpu.core_type<tc>, window_params = [{transform_indices = @transform_0, window_bounds = array<i64: 1, 8, 32>}, {transform_indices = @transform_1, window_bounds = array<i64: 1, 8, 32>}, {transform_indices = @transform_2, window_bounds = array<i64: 1, 1, 8>}, {pipeline_mode = #tpu.pipeline_mode<synchronous>, transform_indices = @transform_3, window_bounds = array<i64: 32, 32>}, {pipeline_mode = #tpu.pipeline_mode<synchronous>, transform_indices = @transform_4, window_bounds = array<i64: 1, 32>}, {pipeline_mode = #tpu.pipeline_mode<synchronous>, transform_indices = @transform_5, window_bounds = array<i64: 32, 64>}, {pipeline_mode = #tpu.pipeline_mode<synchronous>, transform_indices = @transform_6, window_bounds = array<i64: 1, 64>}, {pipeline_mode = #tpu.pipeline_mode<synchronous>, transform_indices = @transform_7, window_bounds = array<i64: 32, 32>}, {pipeline_mode = #tpu.pipeline_mode<synchronous>, transform_indices = @transform_8, window_bounds = array<i64: 1, 32>}, {pipeline_mode = #tpu.pipeline_mode<synchronous>, transform_indices = @transform_9, window_bounds = array<i64: 1, 32>}, {pipeline_mode = #tpu.pipeline_mode<synchronous>, transform_indices = @transform_10, window_bounds = array<i64: 1, 32>}, {transform_indices = @transform_11, window_bounds = array<i64: 1, 8, 32>}, {transform_indices = @transform_12, window_bounds = array<i64: 1, 4, 8, 8>}]} {
    %c0 = arith.constant 0 : index
    %c0_0 = arith.constant 0 : index
    %c0_1 = arith.constant 0 : index
    %0 = vector.load %arg1[%c0, %c0_0, %c0_1] : memref<1x8x32xf32, #tpu.memory_space<vmem>>, vector<1x8x32xf32>
    %1 = vector.shape_cast %0 : vector<1x8x32xf32> to vector<8x32xf32>
    %c0_2 = arith.constant 0 : index
    %c0_3 = arith.constant 0 : index
    %c0_4 = arith.constant 0 : index
    %2 = vector.load %arg2[%c0_2, %c0_3, %c0_4] : memref<1x8x32xf32, #tpu.memory_space<vmem>>, vector<1x8x32xf32>
    %3 = vector.shape_cast %2 : vector<1x8x32xf32> to vector<8x32xf32>
    %4 = arith.truncf %1 : vector<8x32xf32> to vector<8x32xbf16>
    %c0_5 = arith.constant 0 : index
    %c0_6 = arith.constant 0 : index
    %5 = vector.load %arg4[%c0_5, %c0_6] : memref<32x32xbf16, #tpu.memory_space<vmem>>, vector<32x32xbf16>
    %cst = arith.constant dense<0.000000e+00> : vector<8x32xf32>
    %6 = tpu.matmul %4, %5, %cst {dimension_numbers = #tpu.dot_dimension_numbers<[1], [0], [0], [1], [0, 0, 1, 1], [], []>} : vector<8x32xbf16>, vector<32x32xbf16>, vector<8x32xf32> -> vector<8x32xf32>
    %c0_7 = arith.constant 0 : index
    %c0_8 = arith.constant 0 : index
    %7 = vector.load %arg5[%c0_7, %c0_8] : memref<1x32xf32, #tpu.memory_space<vmem>>, vector<1x32xf32>
    %8 = vector.broadcast %7 : vector<1x32xf32> to vector<8x32xf32>
    %9 = arith.addf %6, %8 : vector<8x32xf32>
    %10 = arith.truncf %3 : vector<8x32xf32> to vector<8x32xbf16>
    %c0_9 = arith.constant 0 : index
    %c0_10 = arith.constant 0 : index
    %11 = vector.load %arg6[%c0_9, %c0_10] : memref<32x64xbf16, #tpu.memory_space<vmem>>, vector<32x64xbf16>
    %cst_11 = arith.constant dense<0.000000e+00> : vector<8x64xf32>
    %12 = tpu.matmul %10, %11, %cst_11 {dimension_numbers = #tpu.dot_dimension_numbers<[1], [0], [0], [1], [0, 0, 1, 1], [], []>} : vector<8x32xbf16>, vector<32x64xbf16>, vector<8x64xf32> -> vector<8x64xf32>
    %c0_12 = arith.constant 0 : index
    %c0_13 = arith.constant 0 : index
    %13 = vector.load %arg7[%c0_12, %c0_13] : memref<1x64xf32, #tpu.memory_space<vmem>>, vector<1x64xf32>
    %14 = vector.broadcast %13 : vector<1x64xf32> to vector<8x64xf32>
    %15 = arith.addf %12, %14 : vector<8x64xf32>
    %c0_14 = arith.constant 0 : index
    %c0_15 = arith.constant 0 : index
    %c0_16 = arith.constant 0 : index
    %16 = vector.load %arg3[%c0_14, %c0_15, %c0_16] : memref<1x1x8xf32, #tpu.memory_space<vmem>>, vector<1x1x8xf32>
    %17 = vector.shape_cast %16 : vector<1x1x8xf32> to vector<1x8xf32>
    %cst_17 = arith.constant 0.000000e+00 : f32
    %18 = vector.broadcast %cst_17 : f32 to vector<8x32xf32>
    %19 = vector.extract_strided_slice %9 {offsets = [0, 0], sizes = [8, 8], strides = [1, 1]} : vector<8x32xf32> to vector<8x8xf32>
    %20 = vector.extract_strided_slice %15 {offsets = [0, 0], sizes = [8, 8], strides = [1, 1]} : vector<8x64xf32> to vector<8x8xf32>
    %21 = vector.extract_strided_slice %15 {offsets = [0, 32], sizes = [8, 8], strides = [1, 1]} : vector<8x64xf32> to vector<8x8xf32>
    %cst_18 = arith.constant dense<0.000000e+00> : vector<8x8xf32>
    %22 = tpu.matmul %19, %20, %cst_18 {dimension_numbers = #tpu.dot_dimension_numbers<[1], [1], [0], [0], [0, 0, 1, 0], [], []>} : vector<8x8xf32>, vector<8x8xf32>, vector<8x8xf32> -> vector<8x8xf32>
    %23 = vector.broadcast %17 : vector<1x8xf32> to vector<8x8xf32>
    %24 = arith.addf %22, %23 : vector<8x8xf32>
    %cst_19 = arith.constant dense<0xFF800000> : vector<8xf32>
    %25 = vector.multi_reduction <maximumf>, %24, %cst_19 [1] : vector<8x8xf32> to vector<8xf32>
    %26 = vector.shape_cast %25 : vector<8xf32> to vector<8x1xf32>
    %27 = vector.broadcast %26 : vector<8x1xf32> to vector<8x8xf32>
    %28 = arith.subf %24, %27 : vector<8x8xf32>
    %29 = math.exp %28 : vector<8x8xf32>
    %cst_20 = arith.constant dense<0.000000e+00> : vector<8xf32>
    %30 = vector.multi_reduction <add>, %29, %cst_20 [1] : vector<8x8xf32> to vector<8xf32>
    %31 = vector.shape_cast %30 : vector<8xf32> to vector<8x1xf32>
    %32 = tpu.reciprocal %31 {approx = true} : vector<8x1xf32> -> vector<8x1xf32>
    %cst_21 = arith.constant dense<0.000000e+00> : vector<8x8xf32>
    %33 = tpu.matmul %29, %21, %cst_21 {dimension_numbers = #tpu.dot_dimension_numbers<[1], [0], [0], [1], [0, 0, 1, 1], [], []>} : vector<8x8xf32>, vector<8x8xf32>, vector<8x8xf32> -> vector<8x8xf32>
    %34 = vector.broadcast %32 : vector<8x1xf32> to vector<8x8xf32>
    %35 = arith.mulf %33, %34 : vector<8x8xf32>
    %36 = vector.broadcast %32 : vector<8x1xf32> to vector<8x8xf32>
    %37 = arith.mulf %29, %36 : vector<8x8xf32>
    %c0_22 = arith.constant 0 : index
    %c0_23 = arith.constant 0 : index
    %c0_24 = arith.constant 0 : index
    %c0_25 = arith.constant 0 : index
    %38 = vector.load %arg13[%c0_22, %c0_23, %c0_24, %c0_25] : memref<1x4x8x8xf32, #tpu.memory_space<vmem>>, vector<1x1x8x8xf32>
    %39 = vector.shape_cast %38 : vector<1x1x8x8xf32> to vector<8x8xf32>
    %40 = vector.shape_cast %37 : vector<8x8xf32> to vector<1x1x8x8xf32>
    tpu.vector_store %arg13[%c0_22, %c0_23, %c0_24, %c0_25], %40 {strides = array<i32>} : memref<1x4x8x8xf32, #tpu.memory_space<vmem>>, vector<1x1x8x8xf32>,
    %41 = arith.truncf %35 : vector<8x8xf32> to vector<8x8xbf16>
    %c0_26 = arith.constant 0 : index
    %c0_27 = arith.constant 0 : index
    %42 = vector.load %arg8[%c0_26, %c0_27] : memref<32x32xbf16, #tpu.memory_space<vmem>>, vector<8x32xbf16>
    %cst_28 = arith.constant dense<0.000000e+00> : vector<8x32xf32>
    %43 = tpu.matmul %41, %42, %cst_28 {dimension_numbers = #tpu.dot_dimension_numbers<[1], [0], [0], [1], [0, 0, 1, 1], [], []>} : vector<8x8xbf16>, vector<8x32xbf16>, vector<8x32xf32> -> vector<8x32xf32>
    %44 = arith.addf %18, %43 : vector<8x32xf32>
    %45 = vector.extract_strided_slice %9 {offsets = [0, 8], sizes = [8, 8], strides = [1, 1]} : vector<8x32xf32> to vector<8x8xf32>
    %46 = vector.extract_strided_slice %15 {offsets = [0, 8], sizes = [8, 8], strides = [1, 1]} : vector<8x64xf32> to vector<8x8xf32>
    %47 = vector.extract_strided_slice %15 {offsets = [0, 40], sizes = [8, 8], strides = [1, 1]} : vector<8x64xf32> to vector<8x8xf32>
    %cst_29 = arith.constant dense<0.000000e+00> : vector<8x8xf32>
    %48 = tpu.matmul %45, %46, %cst_29 {dimension_numbers = #tpu.dot_dimension_numbers<[1], [1], [0], [0], [0, 0, 1, 0], [], []>} : vector<8x8xf32>, vector<8x8xf32>, vector<8x8xf32> -> vector<8x8xf32>
    %49 = vector.broadcast %17 : vector<1x8xf32> to vector<8x8xf32>
    %50 = arith.addf %48, %49 : vector<8x8xf32>
    %cst_30 = arith.constant dense<0xFF800000> : vector<8xf32>
    %51 = vector.multi_reduction <maximumf>, %50, %cst_30 [1] : vector<8x8xf32> to vector<8xf32>
    %52 = vector.shape_cast %51 : vector<8xf32> to vector<8x1xf32>
    %53 = vector.broadcast %52 : vector<8x1xf32> to vector<8x8xf32>
    %54 = arith.subf %50, %53 : vector<8x8xf32>
    %55 = math.exp %54 : vector<8x8xf32>
    %cst_31 = arith.constant dense<0.000000e+00> : vector<8xf32>
    %56 = vector.multi_reduction <add>, %55, %cst_31 [1] : vector<8x8xf32> to vector<8xf32>
    %57 = vector.shape_cast %56 : vector<8xf32> to vector<8x1xf32>
    %58 = tpu.reciprocal %57 {approx = true} : vector<8x1xf32> -> vector<8x1xf32>
    %cst_32 = arith.constant dense<0.000000e+00> : vector<8x8xf32>
    %59 = tpu.matmul %55, %47, %cst_32 {dimension_numbers = #tpu.dot_dimension_numbers<[1], [0], [0], [1], [0, 0, 1, 1], [], []>} : vector<8x8xf32>, vector<8x8xf32>, vector<8x8xf32> -> vector<8x8xf32>
    %60 = vector.broadcast %58 : vector<8x1xf32> to vector<8x8xf32>
    %61 = arith.mulf %59, %60 : vector<8x8xf32>
    %62 = vector.broadcast %58 : vector<8x1xf32> to vector<8x8xf32>
    %63 = arith.mulf %55, %62 : vector<8x8xf32>
    %c0_33 = arith.constant 0 : index
    %c1 = arith.constant 1 : index
    %c0_34 = arith.constant 0 : index
    %c0_35 = arith.constant 0 : index
    %64 = vector.load %arg13[%c0_33, %c1, %c0_34, %c0_35] : memref<1x4x8x8xf32, #tpu.memory_space<vmem>>, vector<1x1x8x8xf32>
    %65 = vector.shape_cast %64 : vector<1x1x8x8xf32> to vector<8x8xf32>
    %66 = vector.shape_cast %63 : vector<8x8xf32> to vector<1x1x8x8xf32>
    tpu.vector_store %arg13[%c0_33, %c1, %c0_34, %c0_35], %66 {strides = array<i32>} : memref<1x4x8x8xf32, #tpu.memory_space<vmem>>, vector<1x1x8x8xf32>,
    %67 = arith.truncf %61 : vector<8x8xf32> to vector<8x8xbf16>
    %c8 = arith.constant 8 : index
    %c0_36 = arith.constant 0 : index
    %68 = vector.load %arg8[%c8, %c0_36] : memref<32x32xbf16, #tpu.memory_space<vmem>>, vector<8x32xbf16>
    %cst_37 = arith.constant dense<0.000000e+00> : vector<8x32xf32>
    %69 = tpu.matmul %67, %68, %cst_37 {dimension_numbers = #tpu.dot_dimension_numbers<[1], [0], [0], [1], [0, 0, 1, 1], [], []>} : vector<8x8xbf16>, vector<8x32xbf16>, vector<8x32xf32> -> vector<8x32xf32>
    %70 = arith.addf %44, %69 : vector<8x32xf32>
    %71 = vector.extract_strided_slice %9 {offsets = [0, 16], sizes = [8, 8], strides = [1, 1]} : vector<8x32xf32> to vector<8x8xf32>
    %72 = vector.extract_strided_slice %15 {offsets = [0, 16], sizes = [8, 8], strides = [1, 1]} : vector<8x64xf32> to vector<8x8xf32>
    %73 = vector.extract_strided_slice %15 {offsets = [0, 48], sizes = [8, 8], strides = [1, 1]} : vector<8x64xf32> to vector<8x8xf32>
    %cst_38 = arith.constant dense<0.000000e+00> : vector<8x8xf32>
    %74 = tpu.matmul %71, %72, %cst_38 {dimension_numbers = #tpu.dot_dimension_numbers<[1], [1], [0], [0], [0, 0, 1, 0], [], []>} : vector<8x8xf32>, vector<8x8xf32>, vector<8x8xf32> -> vector<8x8xf32>
    %75 = vector.broadcast %17 : vector<1x8xf32> to vector<8x8xf32>
    %76 = arith.addf %74, %75 : vector<8x8xf32>
    %cst_39 = arith.constant dense<0xFF800000> : vector<8xf32>
    %77 = vector.multi_reduction <maximumf>, %76, %cst_39 [1] : vector<8x8xf32> to vector<8xf32>
    %78 = vector.shape_cast %77 : vector<8xf32> to vector<8x1xf32>
    %79 = vector.broadcast %78 : vector<8x1xf32> to vector<8x8xf32>
    %80 = arith.subf %76, %79 : vector<8x8xf32>
    %81 = math.exp %80 : vector<8x8xf32>
    %cst_40 = arith.constant dense<0.000000e+00> : vector<8xf32>
    %82 = vector.multi_reduction <add>, %81, %cst_40 [1] : vector<8x8xf32> to vector<8xf32>
    %83 = vector.shape_cast %82 : vector<8xf32> to vector<8x1xf32>
    %84 = tpu.reciprocal %83 {approx = true} : vector<8x1xf32> -> vector<8x1xf32>
    %cst_41 = arith.constant dense<0.000000e+00> : vector<8x8xf32>
    %85 = tpu.matmul %81, %73, %cst_41 {dimension_numbers = #tpu.dot_dimension_numbers<[1], [0], [0], [1], [0, 0, 1, 1], [], []>} : vector<8x8xf32>, vector<8x8xf32>, vector<8x8xf32> -> vector<8x8xf32>
    %86 = vector.broadcast %84 : vector<8x1xf32> to vector<8x8xf32>
    %87 = arith.mulf %85, %86 : vector<8x8xf32>
    %88 = vector.broadcast %84 : vector<8x1xf32> to vector<8x8xf32>
    %89 = arith.mulf %81, %88 : vector<8x8xf32>
    %c0_42 = arith.constant 0 : index
    %c2 = arith.constant 2 : index
    %c0_43 = arith.constant 0 : index
    %c0_44 = arith.constant 0 : index
    %90 = vector.load %arg13[%c0_42, %c2, %c0_43, %c0_44] : memref<1x4x8x8xf32, #tpu.memory_space<vmem>>, vector<1x1x8x8xf32>
    %91 = vector.shape_cast %90 : vector<1x1x8x8xf32> to vector<8x8xf32>
    %92 = vector.shape_cast %89 : vector<8x8xf32> to vector<1x1x8x8xf32>
    tpu.vector_store %arg13[%c0_42, %c2, %c0_43, %c0_44], %92 {strides = array<i32>} : memref<1x4x8x8xf32, #tpu.memory_space<vmem>>, vector<1x1x8x8xf32>,
    %93 = arith.truncf %87 : vector<8x8xf32> to vector<8x8xbf16>
    %c16 = arith.constant 16 : index
    %c0_45 = arith.constant 0 : index
    %94 = vector.load %arg8[%c16, %c0_45] : memref<32x32xbf16, #tpu.memory_space<vmem>>, vector<8x32xbf16>
    %cst_46 = arith.constant dense<0.000000e+00> : vector<8x32xf32>
    %95 = tpu.matmul %93, %94, %cst_46 {dimension_numbers = #tpu.dot_dimension_numbers<[1], [0], [0], [1], [0, 0, 1, 1], [], []>} : vector<8x8xbf16>, vector<8x32xbf16>, vector<8x32xf32> -> vector<8x32xf32>
    %96 = arith.addf %70, %95 : vector<8x32xf32>
    %97 = vector.extract_strided_slice %9 {offsets = [0, 24], sizes = [8, 8], strides = [1, 1]} : vector<8x32xf32> to vector<8x8xf32>
    %98 = vector.extract_strided_slice %15 {offsets = [0, 24], sizes = [8, 8], strides = [1, 1]} : vector<8x64xf32> to vector<8x8xf32>
    %99 = vector.extract_strided_slice %15 {offsets = [0, 56], sizes = [8, 8], strides = [1, 1]} : vector<8x64xf32> to vector<8x8xf32>
    %cst_47 = arith.constant dense<0.000000e+00> : vector<8x8xf32>
    %100 = tpu.matmul %97, %98, %cst_47 {dimension_numbers = #tpu.dot_dimension_numbers<[1], [1], [0], [0], [0, 0, 1, 0], [], []>} : vector<8x8xf32>, vector<8x8xf32>, vector<8x8xf32> -> vector<8x8xf32>
    %101 = vector.broadcast %17 : vector<1x8xf32> to vector<8x8xf32>
    %102 = arith.addf %100, %101 : vector<8x8xf32>
    %cst_48 = arith.constant dense<0xFF800000> : vector<8xf32>
    %103 = vector.multi_reduction <maximumf>, %102, %cst_48 [1] : vector<8x8xf32> to vector<8xf32>
    %104 = vector.shape_cast %103 : vector<8xf32> to vector<8x1xf32>
    %105 = vector.broadcast %104 : vector<8x1xf32> to vector<8x8xf32>
    %106 = arith.subf %102, %105 : vector<8x8xf32>
    %107 = math.exp %106 : vector<8x8xf32>
    %cst_49 = arith.constant dense<0.000000e+00> : vector<8xf32>
    %108 = vector.multi_reduction <add>, %107, %cst_49 [1] : vector<8x8xf32> to vector<8xf32>
    %109 = vector.shape_cast %108 : vector<8xf32> to vector<8x1xf32>
    %110 = tpu.reciprocal %109 {approx = true} : vector<8x1xf32> -> vector<8x1xf32>
    %cst_50 = arith.constant dense<0.000000e+00> : vector<8x8xf32>
    %111 = tpu.matmul %107, %99, %cst_50 {dimension_numbers = #tpu.dot_dimension_numbers<[1], [0], [0], [1], [0, 0, 1, 1], [], []>} : vector<8x8xf32>, vector<8x8xf32>, vector<8x8xf32> -> vector<8x8xf32>
    %112 = vector.broadcast %110 : vector<8x1xf32> to vector<8x8xf32>
    %113 = arith.mulf %111, %112 : vector<8x8xf32>
    %114 = vector.broadcast %110 : vector<8x1xf32> to vector<8x8xf32>
    %115 = arith.mulf %107, %114 : vector<8x8xf32>
    %c0_51 = arith.constant 0 : index
    %c3 = arith.constant 3 : index
    %c0_52 = arith.constant 0 : index
    %c0_53 = arith.constant 0 : index
    %116 = vector.load %arg13[%c0_51, %c3, %c0_52, %c0_53] : memref<1x4x8x8xf32, #tpu.memory_space<vmem>>, vector<1x1x8x8xf32>
    %117 = vector.shape_cast %116 : vector<1x1x8x8xf32> to vector<8x8xf32>
    %118 = vector.shape_cast %115 : vector<8x8xf32> to vector<1x1x8x8xf32>
    tpu.vector_store %arg13[%c0_51, %c3, %c0_52, %c0_53], %118 {strides = array<i32>} : memref<1x4x8x8xf32, #tpu.memory_space<vmem>>, vector<1x1x8x8xf32>,
    %119 = arith.truncf %113 : vector<8x8xf32> to vector<8x8xbf16>
    %c24 = arith.constant 24 : index
    %c0_54 = arith.constant 0 : index
    %120 = vector.load %arg8[%c24, %c0_54] : memref<32x32xbf16, #tpu.memory_space<vmem>>, vector<8x32xbf16>
    %cst_55 = arith.constant dense<0.000000e+00> : vector<8x32xf32>
    %121 = tpu.matmul %119, %120, %cst_55 {dimension_numbers = #tpu.dot_dimension_numbers<[1], [0], [0], [1], [0, 0, 1, 1], [], []>} : vector<8x8xbf16>, vector<8x32xbf16>, vector<8x32xf32> -> vector<8x32xf32>
    %122 = arith.addf %96, %121 : vector<8x32xf32>
    %c0_56 = arith.constant 0 : index
    %c0_57 = arith.constant 0 : index
    %123 = vector.load %arg9[%c0_56, %c0_57] : memref<1x32xf32, #tpu.memory_space<vmem>>, vector<1x32xf32>
    %124 = vector.broadcast %123 : vector<1x32xf32> to vector<8x32xf32>
    %125 = arith.addf %122, %124 : vector<8x32xf32>
    %126 = arith.addf %1, %125 : vector<8x32xf32>
    %c0_58 = arith.constant 0 : index
    %c0_59 = arith.constant 0 : index
    %127 = vector.load %arg10[%c0_58, %c0_59] : memref<1x32xf32, #tpu.memory_space<vmem>>, vector<1x32xf32>
    %c0_60 = arith.constant 0 : index
    %c0_61 = arith.constant 0 : index
    %128 = vector.load %arg11[%c0_60, %c0_61] : memref<1x32xf32, #tpu.memory_space<vmem>>, vector<1x32xf32>
    %cst_62 = arith.constant dense<0.000000e+00> : vector<8xf32>
    %129 = vector.multi_reduction <add>, %126, %cst_62 [1] : vector<8x32xf32> to vector<8xf32>
    %130 = vector.shape_cast %129 : vector<8xf32> to vector<8x1xf32>
    %cst_63 = arith.constant 3.200000e+01 : f32
    %131 = vector.broadcast %cst_63 : f32 to vector<8x1xf32>
    %132 = arith.divf %130, %131 : vector<8x1xf32>
    %133 = vector.broadcast %132 : vector<8x1xf32> to vector<8x32xf32>
    %134 = arith.subf %126, %133 : vector<8x32xf32>
    %135 = vector.broadcast %132 : vector<8x1xf32> to vector<8x32xf32>
    %136 = arith.subf %126, %135 : vector<8x32xf32>
    %137 = arith.mulf %134, %136 : vector<8x32xf32>
    %cst_64 = arith.constant dense<0.000000e+00> : vector<8xf32>
    %138 = vector.multi_reduction <add>, %137, %cst_64 [1] : vector<8x32xf32> to vector<8xf32>
    %139 = vector.shape_cast %138 : vector<8xf32> to vector<8x1xf32>
    %cst_65 = arith.constant 3.200000e+01 : f32
    %140 = vector.broadcast %cst_65 : f32 to vector<8x1xf32>
    %141 = arith.divf %139, %140 : vector<8x1xf32>
    %142 = vector.broadcast %132 : vector<8x1xf32> to vector<8x32xf32>
    %143 = arith.subf %126, %142 : vector<8x32xf32>
    %cst_66 = arith.constant 9.99999974E-6 : f32
    %144 = vector.broadcast %cst_66 : f32 to vector<8x1xf32>
    %145 = arith.addf %141, %144 : vector<8x1xf32>
    %146 = math.rsqrt %145 : vector<8x1xf32>
    %147 = vector.broadcast %146 : vector<8x1xf32> to vector<8x32xf32>
    %148 = arith.mulf %143, %147 : vector<8x32xf32>
    %149 = vector.broadcast %127 : vector<1x32xf32> to vector<8x32xf32>
    %150 = arith.mulf %148, %149 : vector<8x32xf32>
    %151 = vector.broadcast %128 : vector<1x32xf32> to vector<8x32xf32>
    %152 = arith.addf %150, %151 : vector<8x32xf32>
    %c0_67 = arith.constant 0 : index
    %c0_68 = arith.constant 0 : index
    %c0_69 = arith.constant 0 : index
    %153 = vector.load %arg12[%c0_67, %c0_68, %c0_69] : memref<1x8x32xf32, #tpu.memory_space<vmem>>, vector<1x8x32xf32>
    %154 = vector.shape_cast %153 : vector<1x8x32xf32> to vector<8x32xf32>
    %155 = vector.shape_cast %152 : vector<8x32xf32> to vector<1x8x32xf32>
    tpu.vector_store %arg12[%c0_67, %c0_68, %c0_69], %155 {strides = array<i32>} : memref<1x8x32xf32, #tpu.memory_space<vmem>>, vector<1x8x32xf32>,
    return
  }
  func.func @transform_0(%arg0: i32) -> (i32, i32, i32) {
    %c0_i32 = arith.constant 0 : i32
    %c0_i32_0 = arith.constant 0 : i32
    %c0_i32_1 = arith.constant 0 : i32
    return %arg0, %c0_i32, %c0_i32_0 : i32, i32, i32
  }
  func.func @transform_1(%arg0: i32) -> (i32, i32, i32) {
    %c0_i32 = arith.constant 0 : i32
    %c0_i32_0 = arith.constant 0 : i32
    %c0_i32_1 = arith.constant 0 : i32
    return %arg0, %c0_i32, %c0_i32_0 : i32, i32, i32
  }
  func.func @transform_2(%arg0: i32) -> (i32, i32, i32) {
    %c0_i32 = arith.constant 0 : i32
    %c0_i32_0 = arith.constant 0 : i32
    %c0_i32_1 = arith.constant 0 : i32
    return %arg0, %c0_i32, %c0_i32_0 : i32, i32, i32
  }
  func.func @transform_3(%arg0: i32) -> (i32, i32) {
    %c0_i32 = arith.constant 0 : i32
    %c0_i32_0 = arith.constant 0 : i32
    %c0_i32_1 = arith.constant 0 : i32
    return %c0_i32, %c0_i32_0 : i32, i32
  }
  func.func @transform_4(%arg0: i32) -> (i32, i32) {
    %c0_i32 = arith.constant 0 : i32
    %c0_i32_0 = arith.constant 0 : i32
    %c0_i32_1 = arith.constant 0 : i32
    return %c0_i32, %c0_i32_0 : i32, i32
  }
  func.func @transform_5(%arg0: i32) -> (i32, i32) {
    %c0_i32 = arith.constant 0 : i32
    %c0_i32_0 = arith.constant 0 : i32
    %c0_i32_1 = arith.constant 0 : i32
    return %c0_i32, %c0_i32_0 : i32, i32
  }
  func.func @transform_6(%arg0: i32) -> (i32, i32) {
    %c0_i32 = arith.constant 0 : i32
    %c0_i32_0 = arith.constant 0 : i32
    %c0_i32_1 = arith.constant 0 : i32
    return %c0_i32, %c0_i32_0 : i32, i32
  }
  func.func @transform_7(%arg0: i32) -> (i32, i32) {
    %c0_i32 = arith.constant 0 : i32
    %c0_i32_0 = arith.constant 0 : i32
    %c0_i32_1 = arith.constant 0 : i32
    return %c0_i32, %c0_i32_0 : i32, i32
  }
  func.func @transform_8(%arg0: i32) -> (i32, i32) {
    %c0_i32 = arith.constant 0 : i32
    %c0_i32_0 = arith.constant 0 : i32
    %c0_i32_1 = arith.constant 0 : i32
    return %c0_i32, %c0_i32_0 : i32, i32
  }
  func.func @transform_9(%arg0: i32) -> (i32, i32) {
    %c0_i32 = arith.constant 0 : i32
    %c0_i32_0 = arith.constant 0 : i32
    %c0_i32_1 = arith.constant 0 : i32
    return %c0_i32, %c0_i32_0 : i32, i32
  }
  func.func @transform_10(%arg0: i32) -> (i32, i32) {
    %c0_i32 = arith.constant 0 : i32
    %c0_i32_0 = arith.constant 0 : i32
    %c0_i32_1 = arith.constant 0 : i32
    return %c0_i32, %c0_i32_0 : i32, i32
  }
  func.func @transform_11(%arg0: i32) -> (i32, i32, i32) {
    %c0_i32 = arith.constant 0 : i32
    %c0_i32_0 = arith.constant 0 : i32
    %c0_i32_1 = arith.constant 0 : i32
    return %arg0, %c0_i32, %c0_i32_0 : i32, i32, i32
  }
  func.func @transform_12(%arg0: i32) -> (i32, i32, i32, i32) {
    %c0_i32 = arith.constant 0 : i32
    %c0_i32_0 = arith.constant 0 : i32
    %c0_i32_1 = arith.constant 0 : i32
    %c0_i32_2 = arith.constant 0 : i32
    return %arg0, %c0_i32, %c0_i32_0, %c0_i32_1 : i32, i32, i32, i32
  }
}

module attributes {stable_mosaic.version = 11 : i64} {
  func.func @_ffn_ln_kernel(%arg0: i32, %arg1: memref<16x32xf32, #tpu.memory_space<vmem>>, %arg2: memref<32x64xbf16, #tpu.memory_space<vmem>>, %arg3: memref<1x64xf32, #tpu.memory_space<vmem>>, %arg4: memref<64x32xbf16, #tpu.memory_space<vmem>>, %arg5: memref<1x32xf32, #tpu.memory_space<vmem>>, %arg6: memref<1x32xf32, #tpu.memory_space<vmem>>, %arg7: memref<1x32xf32, #tpu.memory_space<vmem>>, %arg8: memref<16x32xf32, #tpu.memory_space<vmem>>) attributes {dimension_semantics = [#tpu.dimension_semantics<parallel>], iteration_bounds = array<i64: 1>, scalar_prefetch = 0 : i64, scratch_operands = 0 : i64, tpu.core_type = #tpu.core_type<tc>, window_params = [{transform_indices = @transform_0, window_bounds = array<i64: 16, 32>}, {pipeline_mode = #tpu.pipeline_mode<synchronous>, transform_indices = @transform_1, window_bounds = array<i64: 32, 64>}, {pipeline_mode = #tpu.pipeline_mode<synchronous>, transform_indices = @transform_2, window_bounds = array<i64: 1, 64>}, {pipeline_mode = #tpu.pipeline_mode<synchronous>, transform_indices = @transform_3, window_bounds = array<i64: 64, 32>}, {pipeline_mode = #tpu.pipeline_mode<synchronous>, transform_indices = @transform_4, window_bounds = array<i64: 1, 32>}, {pipeline_mode = #tpu.pipeline_mode<synchronous>, transform_indices = @transform_5, window_bounds = array<i64: 1, 32>}, {pipeline_mode = #tpu.pipeline_mode<synchronous>, transform_indices = @transform_6, window_bounds = array<i64: 1, 32>}, {transform_indices = @transform_7, window_bounds = array<i64: 16, 32>}]} {
    %c0 = arith.constant 0 : index
    %c0_0 = arith.constant 0 : index
    %0 = vector.load %arg1[%c0, %c0_0] : memref<16x32xf32, #tpu.memory_space<vmem>>, vector<16x32xf32>
    %1 = arith.truncf %0 : vector<16x32xf32> to vector<16x32xbf16>
    %c0_1 = arith.constant 0 : index
    %c0_2 = arith.constant 0 : index
    %2 = vector.load %arg2[%c0_1, %c0_2] : memref<32x64xbf16, #tpu.memory_space<vmem>>, vector<32x64xbf16>
    %cst = arith.constant dense<0.000000e+00> : vector<16x64xf32>
    %3 = tpu.matmul %1, %2, %cst {dimension_numbers = #tpu.dot_dimension_numbers<[1], [0], [0], [1], [0, 0, 1, 1], [], []>} : vector<16x32xbf16>, vector<32x64xbf16>, vector<16x64xf32> -> vector<16x64xf32>
    %c0_3 = arith.constant 0 : index
    %c0_4 = arith.constant 0 : index
    %4 = vector.load %arg3[%c0_3, %c0_4] : memref<1x64xf32, #tpu.memory_space<vmem>>, vector<1x64xf32>
    %5 = vector.broadcast %4 : vector<1x64xf32> to vector<16x64xf32>
    %6 = arith.addf %3, %5 : vector<16x64xf32>
    %cst_5 = arith.constant 0.000000e+00 : f32
    %7 = vector.broadcast %cst_5 : f32 to vector<16x64xf32>
    %8 = arith.maximumf %6, %7 : vector<16x64xf32>
    %9 = arith.truncf %8 : vector<16x64xf32> to vector<16x64xbf16>
    %c0_6 = arith.constant 0 : index
    %c0_7 = arith.constant 0 : index
    %10 = vector.load %arg4[%c0_6, %c0_7] : memref<64x32xbf16, #tpu.memory_space<vmem>>, vector<64x32xbf16>
    %cst_8 = arith.constant dense<0.000000e+00> : vector<16x32xf32>
    %11 = tpu.matmul %9, %10, %cst_8 {dimension_numbers = #tpu.dot_dimension_numbers<[1], [0], [0], [1], [0, 0, 1, 1], [], []>} : vector<16x64xbf16>, vector<64x32xbf16>, vector<16x32xf32> -> vector<16x32xf32>
    %c0_9 = arith.constant 0 : index
    %c0_10 = arith.constant 0 : index
    %12 = vector.load %arg5[%c0_9, %c0_10] : memref<1x32xf32, #tpu.memory_space<vmem>>, vector<1x32xf32>
    %13 = vector.broadcast %12 : vector<1x32xf32> to vector<16x32xf32>
    %14 = arith.addf %11, %13 : vector<16x32xf32>
    %15 = arith.addf %0, %14 : vector<16x32xf32>
    %c0_11 = arith.constant 0 : index
    %c0_12 = arith.constant 0 : index
    %16 = vector.load %arg6[%c0_11, %c0_12] : memref<1x32xf32, #tpu.memory_space<vmem>>, vector<1x32xf32>
    %c0_13 = arith.constant 0 : index
    %c0_14 = arith.constant 0 : index
    %17 = vector.load %arg7[%c0_13, %c0_14] : memref<1x32xf32, #tpu.memory_space<vmem>>, vector<1x32xf32>
    %cst_15 = arith.constant dense<0.000000e+00> : vector<16xf32>
    %18 = vector.multi_reduction <add>, %15, %cst_15 [1] : vector<16x32xf32> to vector<16xf32>
    %19 = vector.shape_cast %18 : vector<16xf32> to vector<16x1xf32>
    %cst_16 = arith.constant 3.200000e+01 : f32
    %20 = vector.broadcast %cst_16 : f32 to vector<16x1xf32>
    %21 = arith.divf %19, %20 : vector<16x1xf32>
    %22 = vector.broadcast %21 : vector<16x1xf32> to vector<16x32xf32>
    %23 = arith.subf %15, %22 : vector<16x32xf32>
    %24 = vector.broadcast %21 : vector<16x1xf32> to vector<16x32xf32>
    %25 = arith.subf %15, %24 : vector<16x32xf32>
    %26 = arith.mulf %23, %25 : vector<16x32xf32>
    %cst_17 = arith.constant dense<0.000000e+00> : vector<16xf32>
    %27 = vector.multi_reduction <add>, %26, %cst_17 [1] : vector<16x32xf32> to vector<16xf32>
    %28 = vector.shape_cast %27 : vector<16xf32> to vector<16x1xf32>
    %cst_18 = arith.constant 3.200000e+01 : f32
    %29 = vector.broadcast %cst_18 : f32 to vector<16x1xf32>
    %30 = arith.divf %28, %29 : vector<16x1xf32>
    %31 = vector.broadcast %21 : vector<16x1xf32> to vector<16x32xf32>
    %32 = arith.subf %15, %31 : vector<16x32xf32>
    %cst_19 = arith.constant 9.99999974E-6 : f32
    %33 = vector.broadcast %cst_19 : f32 to vector<16x1xf32>
    %34 = arith.addf %30, %33 : vector<16x1xf32>
    %35 = math.rsqrt %34 : vector<16x1xf32>
    %36 = vector.broadcast %35 : vector<16x1xf32> to vector<16x32xf32>
    %37 = arith.mulf %32, %36 : vector<16x32xf32>
    %38 = vector.broadcast %16 : vector<1x32xf32> to vector<16x32xf32>
    %39 = arith.mulf %37, %38 : vector<16x32xf32>
    %40 = vector.broadcast %17 : vector<1x32xf32> to vector<16x32xf32>
    %41 = arith.addf %39, %40 : vector<16x32xf32>
    %c0_20 = arith.constant 0 : index
    %c0_21 = arith.constant 0 : index
    %42 = vector.load %arg8[%c0_20, %c0_21] : memref<16x32xf32, #tpu.memory_space<vmem>>, vector<16x32xf32>
    tpu.vector_store %arg8[%c0_20, %c0_21], %41 {strides = array<i32>} : memref<16x32xf32, #tpu.memory_space<vmem>>, vector<16x32xf32>,
    return
  }
  func.func @transform_0(%arg0: i32) -> (i32, i32) {
    %c0_i32 = arith.constant 0 : i32
    %c0_i32_0 = arith.constant 0 : i32
    return %arg0, %c0_i32 : i32, i32
  }
  func.func @transform_1(%arg0: i32) -> (i32, i32) {
    %c0_i32 = arith.constant 0 : i32
    %c0_i32_0 = arith.constant 0 : i32
    %c0_i32_1 = arith.constant 0 : i32
    return %c0_i32, %c0_i32_0 : i32, i32
  }
  func.func @transform_2(%arg0: i32) -> (i32, i32) {
    %c0_i32 = arith.constant 0 : i32
    %c0_i32_0 = arith.constant 0 : i32
    %c0_i32_1 = arith.constant 0 : i32
    return %c0_i32, %c0_i32_0 : i32, i32
  }
  func.func @transform_3(%arg0: i32) -> (i32, i32) {
    %c0_i32 = arith.constant 0 : i32
    %c0_i32_0 = arith.constant 0 : i32
    %c0_i32_1 = arith.constant 0 : i32
    return %c0_i32, %c0_i32_0 : i32, i32
  }
  func.func @transform_4(%arg0: i32) -> (i32, i32) {
    %c0_i32 = arith.constant 0 : i32
    %c0_i32_0 = arith.constant 0 : i32
    %c0_i32_1 = arith.constant 0 : i32
    return %c0_i32, %c0_i32_0 : i32, i32
  }
  func.func @transform_5(%arg0: i32) -> (i32, i32) {
    %c0_i32 = arith.constant 0 : i32
    %c0_i32_0 = arith.constant 0 : i32
    %c0_i32_1 = arith.constant 0 : i32
    return %c0_i32, %c0_i32_0 : i32, i32
  }
  func.func @transform_6(%arg0: i32) -> (i32, i32) {
    %c0_i32 = arith.constant 0 : i32
    %c0_i32_0 = arith.constant 0 : i32
    %c0_i32_1 = arith.constant 0 : i32
    return %c0_i32, %c0_i32_0 : i32, i32
  }
  func.func @transform_7(%arg0: i32) -> (i32, i32) {
    %c0_i32 = arith.constant 0 : i32
    %c0_i32_0 = arith.constant 0 : i32
    return %arg0, %c0_i32 : i32, i32
  }
}

module attributes {stable_mosaic.version = 11 : i64} {
  func.func @_linear_kernel(%arg0: i32, %arg1: memref<16x32xf32, #tpu.memory_space<vmem>>, %arg2: memref<32x16xbf16, #tpu.memory_space<vmem>>, %arg3: memref<1x16xf32, #tpu.memory_space<vmem>>, %arg4: memref<16x16xf32, #tpu.memory_space<vmem>>) attributes {dimension_semantics = [#tpu.dimension_semantics<parallel>], iteration_bounds = array<i64: 1>, scalar_prefetch = 0 : i64, scratch_operands = 0 : i64, tpu.core_type = #tpu.core_type<tc>, window_params = [{transform_indices = @transform_0, window_bounds = array<i64: 16, 32>}, {pipeline_mode = #tpu.pipeline_mode<synchronous>, transform_indices = @transform_1, window_bounds = array<i64: 32, 16>}, {pipeline_mode = #tpu.pipeline_mode<synchronous>, transform_indices = @transform_2, window_bounds = array<i64: 1, 16>}, {transform_indices = @transform_3, window_bounds = array<i64: 16, 16>}]} {
    %c0 = arith.constant 0 : index
    %c0_0 = arith.constant 0 : index
    %0 = vector.load %arg1[%c0, %c0_0] : memref<16x32xf32, #tpu.memory_space<vmem>>, vector<16x32xf32>
    %1 = arith.truncf %0 : vector<16x32xf32> to vector<16x32xbf16>
    %c0_1 = arith.constant 0 : index
    %c0_2 = arith.constant 0 : index
    %2 = vector.load %arg2[%c0_1, %c0_2] : memref<32x16xbf16, #tpu.memory_space<vmem>>, vector<32x16xbf16>
    %cst = arith.constant dense<0.000000e+00> : vector<16x16xf32>
    %3 = tpu.matmul %1, %2, %cst {dimension_numbers = #tpu.dot_dimension_numbers<[1], [0], [0], [1], [0, 0, 1, 1], [], []>} : vector<16x32xbf16>, vector<32x16xbf16>, vector<16x16xf32> -> vector<16x16xf32>
    %c0_3 = arith.constant 0 : index
    %c0_4 = arith.constant 0 : index
    %4 = vector.load %arg3[%c0_3, %c0_4] : memref<1x16xf32, #tpu.memory_space<vmem>>, vector<1x16xf32>
    %5 = vector.broadcast %4 : vector<1x16xf32> to vector<16x16xf32>
    %6 = arith.addf %3, %5 : vector<16x16xf32>
    %c0_5 = arith.constant 0 : index
    %c0_6 = arith.constant 0 : index
    %7 = vector.load %arg4[%c0_5, %c0_6] : memref<16x16xf32, #tpu.memory_space<vmem>>, vector<16x16xf32>
    tpu.vector_store %arg4[%c0_5, %c0_6], %6 {strides = array<i32>} : memref<16x16xf32, #tpu.memory_space<vmem>>, vector<16x16xf32>,
    return
  }
  func.func @transform_0(%arg0: i32) -> (i32, i32) {
    %c0_i32 = arith.constant 0 : i32
    %c0_i32_0 = arith.constant 0 : i32
    return %arg0, %c0_i32 : i32, i32
  }
  func.func @transform_1(%arg0: i32) -> (i32, i32) {
    %c0_i32 = arith.constant 0 : i32
    %c0_i32_0 = arith.constant 0 : i32
    %c0_i32_1 = arith.constant 0 : i32
    return %c0_i32, %c0_i32_0 : i32, i32
  }
  func.func @transform_2(%arg0: i32) -> (i32, i32) {
    %c0_i32 = arith.constant 0 : i32
    %c0_i32_0 = arith.constant 0 : i32
    %c0_i32_1 = arith.constant 0 : i32
    return %c0_i32, %c0_i32_0 : i32, i32
  }
  func.func @transform_3(%arg0: i32) -> (i32, i32) {
    %c0_i32 = arith.constant 0 : i32
    %c0_i32_0 = arith.constant 0 : i32
    return %arg0, %c0_i32 : i32, i32
  }
}

</mosaic_0001>

<bundles_post_ra>
// kernel: decoder_forward.9
= control target key start
LH: loop header
LB: loop body
LE: loop exit
PB: predicated region body
PF: predicated region fallthrough
CT: control target
= control target key end

     0   :  { %v290_v0 = vmov 0.0   ;;  %vm291_vm0 = vmmov 0   ;;  %vm53_vm1 = vcmask 261120   ;;  %vm140_vm2 = vcmask 523264   ;;  %s381_s1 = inlined_call_operand.vmem [shape: bf16[32,64], index: 1, kind: input, shape index: {}]   ;;  %s382_s0 = inlined_call_operand.vmem [shape: f32[16,32], index: 0, kind: input, shape index: {}]   ;;  %s383_s3 = inlined_call_operand.vmem [shape: bf16[64,32], index: 3, kind: input, shape index: {}]   ;;  %s384_s2 = inlined_call_operand.vmem [shape: f32[1,64], index: 2, kind: input, shape index: {}]   ;;  %s385_s4 = inlined_call_operand.vmem [shape: f32[1,32], index: 4, kind: input, shape index: {}]   ;;  %s386_s5 = inlined_call_operand.vmem [shape: f32[1,32], index: 5, kind: input, shape index: {}]   ;;  %s387_s6 = inlined_call_operand.vmem [shape: f32[1,32], index: 6, kind: input, shape index: {}]   ;;  %s388_s7 = inlined_call_operand.vmem [shape: f32[16,32], index: 7, kind: output, shape index: {}]  }
   0x1   :  { %258 = vmatprep.subr.bf16.mxu0 %v290_v0  ;;  %v280_v1 = vld [vmem:[%s381_s1] sm:$0xff]   ;;  %262 = vmatprep.mubr.msk.bf16.mxu0 %vm291_vm0, %v290_v0  ;;  %v281_v2 = vld [vmem:[%s381_s1 + $0x8] sm:$0xff]   ;;  %v284_v8 = vld [vmem:[%s383_s3 + $0x10] sm:$0xff]  }
   0x2   :  { %266 = vmatprep.subr.bf16.mxu1 %v290_v0  ;;  %274 = vmatprep.mubr.msk.bf16.mxu1 %vm291_vm0, %v290_v0  ;;  %v27_v3 = vld [vmem:[%s382_s0] sm:$0xff]  ;;  %v28_v4 = vld [vmem:[%s382_s0 + $0x8] sm:$0xff]  ;;  %v285_v9 = vld [vmem:[%s383_s3 + $0x18] sm:$0xff]  }
   0x3   :  { %259 = vmatpush3.bf16.msra.mxu0 %v280_v1  ;;  %v282_v5 = vld [vmem:[%s383_s3] sm:$0xff]   ;;  %v283_v6 = vld [vmem:[%s383_s3 + $0x8] sm:$0xff]   ;;  %v29_v7 = vpack.c.bf16 %v28_v4, %v27_v3 }
   0x4   :  { %260 = vmatprep.subr.bf16.mxu0 %v290_v0  ;;  %267 = vmatpush3.bf16.msra.mxu1 %v282_v5  ;;  %v238_v10 = vld [vmem:[%s384_s2] ss:$0 sm:$0xff] }
   0x5   :  { %268 = vmatprep.subr.bf16.mxu1 %v290_v0  ;;  %v242_v20 = vld [vmem:[%s385_s4] ss:$0 sm:$0xff] }
   0x6   :  { %v248_v48 = vld [vmem:[%s386_s5] ss:$0 sm:$0xff] }
   0x7   :  { %261 = vmatpush3.bf16.msra.mxu0 %v281_v2  ;;  %v249_v50 = vld [vmem:[%s387_s6] ss:$0 sm:$0xff] }
   0x8   :  { %269 = vmatpush3.bf16.msra.mxu1 %v283_v6 }
   0x9   :  { %270 = vmatprep.subr.bf16.mxu1 %v290_v0 }
   0xa   :  { %263 = vmatmul.mubr.msk.bf16.vlgmr.msra.gmra.mrb[0].mxu0 %vm53_vm1, %v29_v7 }
   0xc   :  { %271 = vmatpush3.bf16.msra.mxu1 %v284_v8 }
   0xd   :  { %272 = vmatprep.subr.bf16.mxu1 %v290_v0 }
  0x10   :  { %273 = vmatpush3.bf16.msra.mxu1 %v285_v9 }
  0xdd   :  { %v91_v11 = vpop.f32.mrb[0].mxu0 }
  0xde   :  { %v92_v12 = vadd.f32 %v238_v10, %v91_v11  ;;  %v264_v13 = vpop.f32.mrb[1].mxu0 }
  0xdf   :  { %v94_v14 = vpop.f32.mrb[2].mxu0 }
  0xe0   :  { %v95_v15 = vadd.f32 %v238_v10, %v94_v14  ;;  %v265_v16 = vpop.f32.mrb[3].mxu0  ;;  %v98_v17 = vmax.f32 %v92_v12, 0.0 }
  0xe2   :  { %v99_v18 = vmax.f32 %v95_v15, 0.0 }
  0xe4   :  { %v100_v19 = vpack.c.bf16 %v99_v18, %v98_v17 }
  0xe6   :  { %275 = vmatmul.mubr.msk.bf16.vlgmr.msra.gmra.mrb[0].mxu1 %vm140_vm2, %v100_v19 }
 0x1b9   :  { %v178_v21 = vpop.f32.mrb[0].mxu1 }
 0x1ba   :  { %v179_v22 = vadd.f32 %v242_v20, %v178_v21  ;;  %v276_v23 = vpop.f32.mrb[1].mxu1 }
 0x1bb   :  { %v181_v24 = vpop.f32.mrb[2].mxu1 }
 0x1bc   :  { %v182_v25 = vadd.f32 %v242_v20, %v181_v24  ;;  %v277_v26 = vpop.f32.mrb[3].mxu1  ;;  %v185_v27 = vadd.f32 %v179_v22, %v27_v3 }
 0x1be   :  { %v189_v28 = vsel %vm53_vm1, %v185_v27, 0.0  ;;  %v186_v29 = vadd.f32 %v182_v25, %v28_v4 }
 0x1bf   :  { %190 = vadd.xlane.f32.xlu0 %v189_v28 }
 0x1c0   :  { %v192_v30 = vsel %vm53_vm1, %v186_v29, 0.0 }
 0x1c3   :  { %193 = vadd.xlane.f32.xlu0 %v192_v30 }
 0x24c   :  { %v191_v31 = vpop.xlane.xlu0 %190 }
 0x24d   :  { %v196_v32 = vmul.f32 0.03125, %v191_v31 }
 0x24f   :  { %v198_v33 = vsub.f32 %v185_v27, %v196_v32 }
 0x250   :  { %v194_v34 = vpop.xlane.xlu0 %193 }
 0x251   :  { %v197_v35 = vmul.f32 0.03125, %v194_v34  ;;  %v200_v36 = vmul.f32 %v198_v33, %v198_v33 }
 0x253   :  { %v199_v37 = vsub.f32 %v186_v29, %v197_v35  ;;  %v202_v38 = vsel %vm53_vm1, %v200_v36, 0.0 }
 0x254   :  { %203 = vadd.xlane.f32.xlu1 %v202_v38 }
 0x255   :  { %v201_v39 = vmul.f32 %v199_v37, %v199_v37 }
 0x257   :  { %v205_v40 = vsel %vm53_vm1, %v201_v39, 0.0 }
 0x258   :  { %206 = vadd.xlane.f32.xlu1 %v205_v40 }
 0x2e1   :  { %v204_v41 = vpop.xlane.xlu1 %203 }
 0x2e2   :  { %v208_v42 = vmul.f32 0.03125, %v204_v41 }
 0x2e4   :  { %v210_v43 = vadd.f32 1e-05, %v208_v42 }
 0x2e5   :  { %v207_v44 = vpop.xlane.xlu1 %206 }
 0x2e6   :  { %286 = vrsqrt.f32 %v210_v43  ;;  %v209_v45 = vmul.f32 0.03125, %v207_v44 }
 0x2e8   :  { %v211_v46 = vadd.f32 1e-05, %v209_v45 }
 0x2ea   :  { %288 = vrsqrt.f32 %v211_v46 }
 0x2f0   :  { %v287_v47 = vpop.eup %286 }
 0x2f1   :  { %v214_v49 = vmul.f32 %v287_v47, %v198_v33 }
 0x2f3   :  { %v222_v51 = vmul.f32 %v248_v48, %v214_v49 }
 0x2f4   :  { %v289_v52 = vpop.eup %288 }
 0x2f5   :  { %v230_v53 = vadd.f32 %v249_v50, %v222_v51  ;;  %v215_v54 = vmul.f32 %v289_v52, %v199_v37 }
 0x2f7   :  { %232 = vst.msk [vmem:[%s388_s7] sm:$0xff] %vm53_vm1, %v230_v53  ;;  %v223_v55 = vmul.f32 %v248_v48, %v215_v54 }
 0x2f9   :  { %v231_v56 = vadd.f32 %v249_v50, %v223_v55 }
 0x2fb   :  { %233 = vst.msk [vmem:[%s388_s7 + $0x8] sm:$0xff] %vm53_vm1, %v231_v56 }

// kernel: decoder_forward.7
= control target key start
LH: loop header
LB: loop body
LE: loop exit
PB: predicated region body
PF: predicated region fallthrough
CT: control target
= control target key end

     0   :  { %s1588_s27 = smov 0   ;;  %s1740_s0 = inlined_call_operand.vmem [shape: f32[2,8,32], index: 0, kind: input, shape index: {}]   ;;  %s1741_s1 = inlined_call_operand.vmem [shape: f32[2,8,8], index: 1, kind: input, shape index: {}]   ;;  %s1742_s2 = inlined_call_operand.vmem [shape: bf16[32,96], index: 2, kind: input, shape index: {}]   ;;  %s1743_s3 = inlined_call_operand.vmem [shape: f32[1,96], index: 3, kind: input, shape index: {}]   ;;  %s1744_s4 = inlined_call_operand.vmem [shape: bf16[32,32], index: 4, kind: input, shape index: {}]   ;;  %s1745_s5 = inlined_call_operand.vmem [shape: f32[1,32], index: 5, kind: input, shape index: {}]   ;;  %s1746_s6 = inlined_call_operand.vmem [shape: f32[1,32], index: 6, kind: input, shape index: {}]   ;;  %s1747_s7 = inlined_call_operand.vmem [shape: f32[1,32], index: 7, kind: input, shape index: {}]   ;;  %s1748_s8 = inlined_call_operand.vmem [shape: f32[2,8,32], index: 8, kind: output, shape index: {}]  }
   0x1 LB: > { %s1349_s28 = sadd.s32 4294967295, %s1528_s27   ;;  %p1353_p0 = scmp.ge.s32.totalorder %s1528_s27, 1  ;;  %s1528_s27 = sphi %s1588_s27, %s18_s27  }
   0x2   : > { %p270_p1 = scmp.lt.s32.totalorder %s1528_s27, 3 }
   0x4   : > { %p271_p2 = pnand %p1353_p0, %p270_p1 }
   0x5   : > { %v1502_v0 = vld [vmem:[%s1742_s2] sm:$0xff] (!%p271_p2)   ;;  %v1530_v1 = vmov (!%p271_p2), 0.0   ;;  %v1503_v2 = vld [vmem:[%s1742_s2 + $0x8] sm:$0xff] (!%p271_p2)   ;;  %vm1531_vm0 = vmmov (!%p271_p2), 0   ;;  %p306_p3 = scmp.lt.s32.totalorder (!%p271_p2), %s1349_s28, 1  ;;  %vm344_vm1 = vcmask (!%p271_p2), 261120  }
   0x6   : > { %274 = sbr.rel (%p271_p2) target bundleno = 2819 (0xb03), region = 52  ;;  %1409 = vmatprep.subr.bf16.mxu0 (!%p271_p2), %v1530_v1  ;;  %1417 = vmatprep.subr.mxu1 (!%p271_p2), %v1530_v1  ;;  %v1357_v5 = vld [vmem:[%s1743_s3] ss:$0 sm:$0xff] (!%p271_p2)  ;;  %s1532_s17 = smov (!%p271_p2), 64   ;;  %vm392_vm2 = vcmask (!%p271_p2), 64512   ;;  %vm726_vm3 = vcmask (!%p271_p2), 1043456  }
   0x7   : > { %1410 = vmatpush3.bf16.msra.mxu0 (!%p271_p2), %v1502_v0  ;;  %1413 = vmatprep.mubr.msk.bf16.mxu0 (!%p271_p2), %vm1531_vm0, %v1530_v1  ;;  %s1533_s18 = smov (!%p271_p2), 96   ;;  %s1534_s19 = smov (!%p271_p2), 88   ;;  %v555_v37 = vld [vmem:[%s1744_s4] sm:$0xf] (!%p271_p2)  ;;  %v722_v45 = vld [vmem:[%s1744_s4 + $0x4] sm:$0xf] (!%p271_p2) }
   0x8   : > { %1411 = vmatprep.subr.bf16.mxu0 (!%p271_p2), %v1530_v1  ;;  %1419 = vmatprep.mubr.msk.f32.mxu1 (!%p271_p2), %vm1531_vm0, %v1530_v1  ;;  %s1535_s20 = smov (!%p271_p2), 120   ;;  %s1536_s24 = smov (!%p271_p2), 56   ;;  %v774_v40 = vsel (!%p271_p2), %vm726_vm3, %v555_v37, 0  ;;  %v728_v46 = vsel (!%p271_p2), %vm726_vm3, %v722_v45, 0 }
   0x9   : > { %s1537_s25 = smov (!%p271_p2), 112   ;;  %s1538_s26 = smov (!%p271_p2), 48  }
   0xa   : > { %s1540_s9 = smov (!%p271_p2), 80   ;;  %s1541_s13 = smov (!%p271_p2), 72  }
   0xb   : > { %1412 = vmatpush3.bf16.msra.mxu0 (!%p271_p2), %v1503_v2 }
   0xc   : > { %1432 = vmatprep.subr.mxu0 (!%p271_p2), %v1530_v1 }
   0xd   : > { %s1750_s28 = smov (!%p306_p3, %s1349_s28), 1 }
   0xe   : > { %s1609_s11 = sshll.u32 %s1750_s28, 3  ;;  %s1539_s28 = smov 104  }
   0xf   : > { %s309_s14 = scalar_lea.vmem %s1740_s0, %s1609_s11  ;;  %s313_s23 = scalar_lea.vmem %s1741_s1, %s1609_s11 }
  0x10   : > { %v1616_v3 = vld [vmem:[%s309_s14] sm:$0xff]  ;;  %s1542_s14 = smov 40  }
  0x11   : > { %v320_v4 = vpack.c.bf16 %v1616_v3, %v1616_v3  ;;  %v1643_v13 = vld [vmem:[%s313_s23] sm:$0xff] }
  0x13   : > { %1414 = vmatmul.mubr.msk.bf16.vlgmr.msra.gmra.mrb[0].mxu0 %vm344_vm1, %v320_v4 }
  0x14   : > { %1434 = vmatprep.mubr.msk.f32.mxu0 %vm1531_vm0, %v1530_v1 }
  0xe6   : > { %v382_v6 = vpop.f32.mrb[0].mxu0 }
  0xe7   : > { %v1626_v7 = vadd.f32 %v1357_v5, %v382_v6  ;;  %v1415_v8 = vpop.f32.mrb[1].mxu0 }
  0xe8   : > { %v385_v9 = vpop.f32.mrb[2].mxu0 }
  0xe9   : > { %477 = vrot.lane.b32.xlu1 %v1626_v7, %s1532_s17  ;;  %390 = vrot.lane.b32.xlu0 %v1626_v7, %s1533_s18  ;;  %v1416_v10 = vpop.f32.mrb[3].mxu0 }
  0xed   : > { %558 = vrot.lane.b32.xlu1 %v1626_v7, %s1534_s19 }
  0xf1   : > { %556 = vrot.lane.b32.xlu1 %v1626_v7, %s1535_s20 }
 0x15b   : > { %v391_v11 = vpop.permute.xlu0 %390  ;;  %v478_v12 = vpop.permute.xlu1 %477 }
 0x15c   : > { %1418 = vmatpush3.xpose.msk.msra.mxu1 %vm392_vm2, %v391_v11 }
 0x15d   : > { %1422 = vmatprep.subr.mxu1 %v1530_v1 }
 0x15f   : > { %1420 = vmatmul.mubr.msk.f32.vlgmr.msra.gmra.mrb[0].mxu1 %vm392_vm2, %v1626_v7  ;;  %v559_v22 = vpop.permute.xlu1 %558 }
 0x160   : > { %1423 = vmatpush3.msra.mxu1 %v478_v12  ;;  %1424 = vmatprep.mubr.msk.f32.mxu1 %vm1531_vm0, %v1530_v1 }
 0x161   : > { %1427 = vmatprep.subr.mxu1 %v1530_v1 }
 0x163   : > { %v557_v25 = vpop.permute.xlu1 %556 }
 0x232   : > { %v463_v14 = vpop.f32.mrb[0].mxu1 }
 0x233   : > { %v464_v15 = vadd.f32 %v463_v14, %v1643_v13  ;;  %v1421_v16 = vpop.f32.mrb[1].mxu1  ;;  %v982_v14 = vld [vmem:[%s1744_s4 + $0x8] sm:$0xf] }
 0x235   : > { %v467_v17 = vsel %vm392_vm2, %v464_v15, -inf }
 0x236   : > { %468 = vmax.xlane.f32.xlu0 %v467_v17 }
 0x24c   : > { %644 = vrot.lane.b32.xlu0 %v1626_v7, %s1536_s24 }
 0x250   : > { %816 = vrot.lane.b32.xlu0 %v1626_v7, %s1537_s25 }
 0x2c3   : > { %v469_v18 = vpop.xlane.xlu0 %468 }
 0x2c4   : > { %v470_v19 = vsub.f32 %v464_v15, %v469_v18  ;;  %v987_v15 = vsel %vm726_vm3, %v982_v14, 0 }
 0x2c6   : > { %v471_v20 = vmul.f32 1.442695, %v470_v19 }
 0x2c7   : > { %v645_v21 = vpop.permute.xlu0 %644 }
 0x2c8   : > { %1504 = vpow2.f32 %v471_v20  ;;  %1433 = vmatpush3.msra.mxu0 %v645_v21 }
 0x2c9   : > { %1443 = vmatprep.subr.bf16.mxu0 %v1530_v1 }
 0x2cb   : > { %v817_v32 = vpop.permute.xlu0 %816 }
 0x2d2   : > { %v1505_v23 = vpop.eup %1504 }
 0x2d3   : > { %1425 = vmatmul.mubr.msk.f32.vlgmr.msra.gmra.mrb[2].mxu1 %vm392_vm2, %v1505_v23  ;;  %v473_v24 = vsel %vm392_vm2, %v1505_v23, 0.0 }
 0x2d4   : > { %1428 = vmatpush3.xpose.msk.msra.mxu1 %vm392_vm2, %v559_v22  ;;  %474 = vadd.xlane.f32.xlu0 %v473_v24 }
 0x2d5   : > { %1429 = vmatprep.mubr.msk.f32.mxu1 %vm1531_vm0, %v1530_v1  ;;  %1437 = vmatprep.subr.bf16.mxu1 %v1530_v1 }
 0x2d7   : > { %1430 = vmatmul.mubr.msk.f32.vlgmr.msra.gmra.mrb[4].mxu1 %vm392_vm2, %v557_v25 }
 0x2d8   : > { %1439 = vmatprep.mubr.msk.bf16.mxu1 %vm1531_vm0, %v1530_v1  ;;  %1438 = vmatpush3.bf16.msra.mxu1 %v728_v46 }
 0x2d9   : > { %1449 = vmatprep.subr.mxu1 %v1530_v1 }
 0x2ea   : > { %904 = vrot.lane.b32.xlu0 %v1626_v7, %s1538_s26 }
 0x2ee   : > { %1030 = vrot.lane.b32.xlu0 %v1626_v7, %s1539_s28  ;;  %s317_s28 = scalar_lea.vmem %s1748_s8, %s1609_s11 }
 0x361   : > { %v475_v33 = vpop.xlane.xlu0 %474 }
 0x362   : > { %1506 = vrcp.f32 %v475_v33 }
 0x365   : > { %v905_v44 = vpop.permute.xlu0 %904 }
 0x369   : > { %v1031_v12 = vpop.permute.xlu0 %1030 }
 0x36c   : > { %v1507_v38 = vpop.eup %1506 }
 0x3a6   : > { %v549_v26 = vpop.f32.mrb[2].mxu1 }
 0x3a7   : > { %v1426_v27 = vpop.f32.mrb[3].mxu1  ;;  %v553_v39 = vmul.f32 %v1507_v38, %v549_v26 }
 0x3a9   : > { %v554_v43 = vpack.c.bf16 %v553_v39, %v553_v39 }
 0x3aa   : > { %v630_v28 = vpop.f32.mrb[4].mxu1 }
 0x3ab   : > { %v631_v29 = vadd.f32 %v630_v28, %v1643_v13  ;;  %v1431_v30 = vpop.f32.mrb[5].mxu1 }
 0x3ad   : > { %v634_v31 = vsel %vm392_vm2, %v631_v29, -inf }
 0x3ae   : > { %635 = vmax.xlane.f32.xlu1 %v634_v31 }
 0x43b   : > { %v636_v34 = vpop.xlane.xlu1 %635 }
 0x43c   : > { %v637_v35 = vsub.f32 %v631_v29, %v636_v34 }
 0x43e   : > { %v638_v36 = vmul.f32 1.442695, %v637_v35 }
 0x440   : > { %1508 = vpow2.f32 %v638_v36 }
 0x44a   : > { %v1509_v41 = vpop.eup %1508 }
 0x44b   : > { %1435 = vmatmul.mubr.msk.f32.vlgmr.msra.gmra.mrb[4].mxu0 %vm392_vm2, %v1509_v41  ;;  %v640_v42 = vsel %vm392_vm2, %v1509_v41, 0.0 }
 0x44c   : > { %1444 = vmatpush3.bf16.msra.mxu0 %v774_v40  ;;  %641 = vadd.xlane.f32.xlu1 %v640_v42 }
 0x44d   : > { %1445 = vmatprep.mubr.msk.bf16.mxu0 %vm1531_vm0, %v1530_v1  ;;  %1454 = vmatprep.subr.mxu0 %v1530_v1 }
 0x44f   : > { %1446 = vmatmul.mubr.msk.bf16.vlgmr.msra.gmra.mrb[8].mxu0 %vm392_vm2, %v554_v43  ;;  %v1377_v43 = vld [vmem:[%s1745_s5] ss:$0 sm:$0xff] }
 0x450   : > { %1455 = vmatpush3.msra.mxu0 %v905_v44  ;;  %1456 = vmatprep.mubr.msk.f32.mxu0 %vm1531_vm0, %v1530_v1 }
 0x451   : > { %1465 = vmatprep.subr.mxu0 %v1530_v1 }
 0x45d   : > { %818 = vrot.lane.b32.xlu1 %v1626_v7, %s1540_s9 }
 0x4d9   : > { %v642_v47 = vpop.xlane.xlu1 %641 }
 0x4da   : > { %1510 = vrcp.f32 %v642_v47 }
 0x4dd   : > { %v819_v54 = vpop.permute.xlu1 %818 }
 0x4e4   : > { %v1511_v48 = vpop.eup %1510 }
 0x51e   : > { %v716_v49 = vpop.f32.mrb[4].mxu0 }
 0x51f   : > { %v720_v50 = vmul.f32 %v1511_v48, %v716_v49  ;;  %v1436_v51 = vpop.f32.mrb[5].mxu0 }
 0x521   : > { %v721_v52 = vpack.c.bf16 %v720_v50, %v720_v50 }
 0x522   : > { %v810_v53 = vpop.f32.mrb[8].mxu0 }
 0x523   : > { %1440 = vmatmul.mubr.msk.bf16.vlgmr.msra.gmra.mrb[8].mxu1 %vm392_vm2, %v721_v52  ;;  %v1447_v55 = vpop.f32.mrb[9].mxu0 }
 0x524   : > { %1450 = vmatpush3.xpose.msk.msra.mxu1 %vm392_vm2, %v819_v54  ;;  %v813_v56 = vpop.f32.mrb[10].mxu0  ;;  %1451 = vmatprep.mubr.msk.f32.mxu1 %vm1531_vm0, %v1530_v1 }
 0x525   : > { %v1448_v57 = vpop.f32.mrb[11].mxu0  ;;  %1459 = vmatprep.subr.bf16.mxu1 %v1530_v1 }
 0x52b   : > { %1452 = vmatmul.mubr.msk.f32.vlgmr.msra.gmra.mrb[6].mxu1 %vm392_vm2, %v817_v32 }
 0x52c   : > { %1461 = vmatprep.mubr.msk.bf16.mxu1 %vm1531_vm0, %v1530_v1  ;;  %1460 = vmatpush3.bf16.msra.mxu1 %v987_v15 }
 0x52d   : > { %1475 = vmatprep.subr.bf16.mxu1 %v1530_v1 }
 0x5f6   : > { %v764_v58 = vpop.f32.mrb[8].mxu1 }
 0x5f7   : > { %v811_v59 = vadd.f32 %v810_v53, %v764_v58  ;;  %v1441_v60 = vpop.f32.mrb[9].mxu1 }
 0x5f8   : > { %v767_v61 = vpop.f32.mrb[10].mxu1 }
 0x5f9   : > { %v1442_v62 = vpop.f32.mrb[11].mxu1  ;;  %v1379_v61 = vld [vmem:[%s1747_s7] ss:$0 sm:$0xff] }
 0x5fe   : > { %v890_v63 = vpop.f32.mrb[6].mxu1 }
 0x5ff   : > { %v891_v0 = vadd.f32 %v890_v63, %v1643_v13  ;;  %v1453_v2 = vpop.f32.mrb[7].mxu1 }
 0x601   : > { %v894_v4 = vsel %vm392_vm2, %v891_v0, -inf }
 0x602   : > { %895 = vmax.xlane.f32.xlu1 %v894_v4 }
 0x613   : > { %1032 = vrot.lane.b32.xlu1 %v1626_v7, %s1541_s13 }
 0x617   : > { %1118 = vrot.lane.b32.xlu1 %v1626_v7, %s1542_s14 }
 0x68f   : > { %v896_v5 = vpop.xlane.xlu1 %895 }
 0x690   : > { %v897_v6 = vsub.f32 %v891_v0, %v896_v5 }
 0x692   : > { %v898_v8 = vmul.f32 1.442695, %v897_v6 }
 0x693   : > { %v1033_v9 = vpop.permute.xlu1 %1032 }
 0x694   : > { %1512 = vpow2.f32 %v898_v8 }
 0x697   : > { %v1119_v7 = vpop.permute.xlu1 %1118 }
 0x69e   : > { %v1513_v10 = vpop.eup %1512 }
 0x69f   : > { %1457 = vmatmul.mubr.msk.f32.vlgmr.msra.gmra.mrb[6].mxu0 %vm392_vm2, %v1513_v10  ;;  %v900_v11 = vsel %vm392_vm2, %v1513_v10, 0.0 }
 0x6a0   : > { %1466 = vmatpush3.xpose.msk.msra.mxu0 %vm392_vm2, %v1033_v9  ;;  %901 = vadd.xlane.f32.xlu1 %v900_v11 }
 0x6a1   : > { %1467 = vmatprep.mubr.msk.f32.mxu0 %vm1531_vm0, %v1530_v1  ;;  %1470 = vmatprep.subr.mxu0 %v1530_v1 }
 0x6a3   : > { %1468 = vmatmul.mubr.msk.f32.vlgmr.msra.gmra.mrb[12].mxu0 %vm392_vm2, %v1031_v12 }
 0x6a4   : > { %1471 = vmatpush3.msra.mxu0 %v1119_v7  ;;  %1472 = vmatprep.mubr.msk.f32.mxu0 %vm1531_vm0, %v1530_v1 }
 0x72d   : > { %v902_v16 = vpop.xlane.xlu1 %901 }
 0x72e   : > { %1514 = vrcp.f32 %v902_v16 }
 0x738   : > { %v1515_v17 = vpop.eup %1514 }
 0x772   : > { %v976_v18 = vpop.f32.mrb[6].mxu0 }
 0x773   : > { %v980_v19 = vmul.f32 %v1515_v17, %v976_v18  ;;  %v1458_v20 = vpop.f32.mrb[7].mxu0 }
 0x775   : > { %v981_v21 = vpack.c.bf16 %v980_v19, %v980_v19 }
 0x776   : > { %v1104_v22 = vpop.f32.mrb[12].mxu0 }
 0x777   : > { %v1105_v23 = vadd.f32 %v1104_v22, %v1643_v13  ;;  %1462 = vmatmul.mubr.msk.bf16.vlgmr.msra.gmra.mrb[12].mxu1 %vm392_vm2, %v981_v21  ;;  %v1469_v24 = vpop.f32.mrb[13].mxu0  ;;  %v1196_v13 = vld [vmem:[%s1744_s4 + $0xc] sm:$0xf] }
 0x778   : > { %1477 = vmatprep.mubr.msk.bf16.mxu1 %vm1531_vm0, %v1530_v1  ;;  %v1201_v31 = vsel %vm726_vm3, %v1196_v13, 0 }
 0x779   : > { %v1108_v25 = vsel %vm392_vm2, %v1105_v23, -inf  ;;  %1476 = vmatpush3.bf16.msra.mxu1 %v1201_v31 }
 0x77a   : > { %1109 = vmax.xlane.f32.xlu0 %v1108_v25 }
 0x807   : > { %v1110_v26 = vpop.xlane.xlu0 %1109 }
 0x808   : > { %v1111_v27 = vsub.f32 %v1105_v23, %v1110_v26 }
 0x80a   : > { %v1112_v28 = vmul.f32 1.442695, %v1111_v27 }
 0x80c   : > { %1516 = vpow2.f32 %v1112_v28 }
 0x816   : > { %v1517_v29 = vpop.eup %1516 }
 0x817   : > { %1473 = vmatmul.mubr.msk.f32.vlgmr.msra.gmra.mrb[14].mxu0 %vm392_vm2, %v1517_v29  ;;  %v1114_v30 = vsel %vm392_vm2, %v1517_v29, 0.0 }
 0x818   : > { %1115 = vadd.xlane.f32.xlu0 %v1114_v30 }
 0x84a   : > { %v1023_v1 = vpop.f32.mrb[12].mxu1 }
 0x84b   : > { %v1029_v32 = vadd.f32 %v1023_v1, %v811_v59  ;;  %v1463_v33 = vpop.f32.mrb[13].mxu1 }
 0x84c   : > { %v1026_v34 = vpop.f32.mrb[14].mxu1 }
 0x84d   : > { %v1464_v35 = vpop.f32.mrb[15].mxu1 }
 0x8a5   : > { %v1116_v36 = vpop.xlane.xlu0 %1115 }
 0x8a6   : > { %1518 = vrcp.f32 %v1116_v36 }
 0x8b0   : > { %v1519_v37 = vpop.eup %1518 }
 0x8ea   : > { %v1190_v38 = vpop.f32.mrb[14].mxu0 }
 0x8eb   : > { %v1194_v39 = vmul.f32 %v1519_v37, %v1190_v38  ;;  %v1474_v40 = vpop.f32.mrb[15].mxu0 }
 0x8ed   : > { %v1195_v41 = vpack.c.bf16 %v1194_v39, %v1194_v39 }
 0x8ef   : > { %1478 = vmatmul.mubr.msk.bf16.vlgmr.msra.gmra.mrb[16].mxu1 %vm392_vm2, %v1195_v41 }
 0x9c2   : > { %v1237_v42 = vpop.f32.mrb[16].mxu1 }
 0x9c3   : > { %v1243_v44 = vadd.f32 %v1237_v42, %v1029_v32  ;;  %v1479_v45 = vpop.f32.mrb[17].mxu1 }
 0x9c4   : > { %v1240_v46 = vpop.f32.mrb[18].mxu1 }
 0x9c5   : > { %v1251_v47 = vadd.f32 %v1377_v43, %v1243_v44  ;;  %v1480_v48 = vpop.f32.mrb[19].mxu1 }
 0x9c7   : > { %v1252_v49 = vadd.f32 %v1251_v47, %v1616_v3  ;;  %v1378_v3 = vld [vmem:[%s1746_s6] ss:$0 sm:$0xff] }
 0x9c9   : > { %v1255_v50 = vsel %vm344_vm1, %v1252_v49, 0.0 }
 0x9ca   : > { %1256 = vadd.xlane.f32.xlu0 %v1255_v50 }
 0xa57   : > { %v1257_v51 = vpop.xlane.xlu0 %1256 }
 0xa58   : > { %v1259_v52 = vmul.f32 0.03125, %v1257_v51 }
 0xa5a   : > { %v1260_v53 = vsub.f32 %v1252_v49, %v1259_v52 }
 0xa5c   : > { %v1261_v54 = vmul.f32 %v1260_v53, %v1260_v53 }
 0xa5e   : > { %v1262_v55 = vsel %vm344_vm1, %v1261_v54, 0.0 }
 0xa5f   : > { %1263 = vadd.xlane.f32.xlu0 %v1262_v55 }
 0xaec   : > { %v1264_v56 = vpop.xlane.xlu0 %1263 }
 0xaed   : > { %v1265_v57 = vmul.f32 0.03125, %v1264_v56 }
 0xaef   : > { %v1266_v58 = vadd.f32 1e-05, %v1265_v57 }
 0xaf1   : > { %1520 = vrsqrt.f32 %v1266_v58 }
 0xafb   : > { %v1521_v59 = vpop.eup %1520 }
 0xafc   : > { %v1268_v60 = vmul.f32 %v1521_v59, %v1260_v53 }
 0xafe   : > { %v1275_v62 = vmul.f32 %v1378_v3, %v1268_v60 }
 0xb00   : > { %v1282_v63 = vadd.f32 %v1379_v61, %v1275_v62 }
 0xb02   : > { %1283 = vst.msk [vmem:[%s317_s28] sm:$0xff] %vm344_vm1, %v1282_v63 }
 0xb03 PF: > { %s18_s27 = sadd.s32 1, %s1528_s27  }
 0xb04   : > { %p15_p4 = scmp.ge.s32.totalorder %s18_s27, 4  }
 0xb06   :  { %17 = sbr.rel (!%p15_p4) target bundleno = 1 (0x1), region = 85 }

// kernel: decoder_forward.8
= control target key start
LH: loop header
LB: loop body
LE: loop exit
PB: predicated region body
PF: predicated region fallthrough
CT: control target
= control target key end

     0   :  { %s1790_s17 = smov 0   ;;  %s1961_s0 = inlined_call_operand.vmem [shape: f32[2,8,32], index: 0, kind: input, shape index: {}]   ;;  %s1962_s1 = inlined_call_operand.vmem [shape: f32[2,8,32], index: 1, kind: input, shape index: {}]   ;;  %s1963_s2 = inlined_call_operand.vmem [shape: f32[2,1,8], index: 2, kind: input, shape index: {}]   ;;  %s1964_s3 = inlined_call_operand.vmem [shape: bf16[32,32], index: 3, kind: input, shape index: {}]   ;;  %s1965_s4 = inlined_call_operand.vmem [shape: f32[1,32], index: 4, kind: input, shape index: {}]   ;;  %s1966_s5 = inlined_call_operand.vmem [shape: bf16[32,64], index: 5, kind: input, shape index: {}]   ;;  %s1967_s6 = inlined_call_operand.vmem [shape: f32[1,64], index: 6, kind: input, shape index: {}]   ;;  %s1968_s7 = inlined_call_operand.vmem [shape: bf16[32,32], index: 7, kind: input, shape index: {}]   ;;  %s1969_s8 = inlined_call_operand.vmem [shape: f32[1,32], index: 8, kind: input, shape index: {}]   ;;  %s1970_s9 = inlined_call_operand.vmem [shape: f32[1,32], index: 9, kind: input, shape index: {}]   ;;  %s1971_s10 = inlined_call_operand.vmem [shape: f32[1,32], index: 10, kind: input, shape index: {}]   ;;  %s1972_s11 = inlined_call_operand.vmem [shape: f32[2,8,32], index: 11, kind: output, shape index: {}]  }
   0x1 LB: > { %s1526_s18 = sadd.s32 4294967295, %s1719_s17   ;;  %p1530_p0 = scmp.ge.s32.totalorder %s1719_s17, 1  ;;  %s1719_s17 = sphi %s1790_s17, %s21_s17  }
   0x2   : > { %p353_p1 = scmp.lt.s32.totalorder %s1719_s17, 3 }
   0x4   : > { %p354_p2 = pnand %p1530_p0, %p353_p1 }
   0x5   : > { %v1691_v0 = vld [vmem:[%s1966_s5] sm:$0xff] (!%p354_p2)   ;;  %v1721_v1 = vmov (!%p354_p2), 0.0   ;;  %v1693_v3 = vld [vmem:[%s1966_s5 + $0x8] sm:$0xff] (!%p354_p2)   ;;  %vm1722_vm0 = vmmov (!%p354_p2), 0   ;;  %p398_p3 = scmp.lt.s32.totalorder (!%p354_p2), %s1526_s18, 1  ;;  %vm440_vm1 = vcmask (!%p354_p2), 261120  }
   0x6   : > { %357 = sbr.rel (%p354_p2) target bundleno = 2444 (0x98c), region = 64  ;;  %1602 = vmatprep.subr.bf16.mxu1 (!%p354_p2), %v1721_v1  ;;  %1594 = vmatprep.subr.bf16.mxu0 (!%p354_p2), %v1721_v1  ;;  %v1692_v2 = vld [vmem:[%s1964_s3] sm:$0xff] (!%p354_p2)   ;;  %v1694_v4 = vld [vmem:[%s1964_s3 + $0x8] sm:$0xff] (!%p354_p2)   ;;  %vm558_vm2 = vcmask (!%p354_p2), 64512   ;;  %s1723_s21 = smov (!%p354_p2), 120   ;;  %vm894_vm3 = vcmask (!%p354_p2), 1043456  }
   0x7   : > { %1603 = vmatpush3.bf16.msra.mxu1 (!%p354_p2), %v1691_v0  ;;  %1606 = vmatprep.mubr.msk.bf16.mxu1 (!%p354_p2), %vm1722_vm0, %v1721_v1  ;;  %v1538_v9 = vld [vmem:[%s1967_s6] ss:$0 sm:$0xff] (!%p354_p2)  ;;  %s1724_s22 = smov (!%p354_p2), 96   ;;  %s1725_s26 = smov (!%p354_p2), 88   ;;  %v890_v46 = vld [vmem:[%s1968_s7 + $0x4] sm:$0xf] (!%p354_p2) }
   0x8   : > { %1595 = vmatpush3.bf16.msra.mxu0 (!%p354_p2), %v1692_v2  ;;  %1604 = vmatprep.subr.bf16.mxu1 (!%p354_p2), %v1721_v1  ;;  %v1534_v10 = vld [vmem:[%s1965_s4] ss:$0 sm:$0xff] (!%p354_p2)  ;;  %s1727_s28 = smov (!%p354_p2), 104   ;;  %s1728_s29 = smov (!%p354_p2), 72   ;;  %v896_v47 = vsel (!%p354_p2), %vm894_vm3, %v890_v46, 0 }
   0x9   : > { %1596 = vmatprep.subr.bf16.mxu0 (!%p354_p2), %v1721_v1  ;;  %1598 = vmatprep.mubr.msk.bf16.mxu0 (!%p354_p2), %vm1722_vm0, %v1721_v1  ;;  %v723_v42 = vld [vmem:[%s1968_s7] sm:$0xf] (!%p354_p2)  ;;  %s1729_s15 = smov (!%p354_p2), 80  }
   0xa   : > { %v942_v43 = vsel (!%p354_p2), %vm894_vm3, %v723_v42, 0 }
   0xb   : > { %1605 = vmatpush3.bf16.msra.mxu1 (!%p354_p2), %v1693_v3 }
   0xc   : > { %1597 = vmatpush3.bf16.msra.mxu0 (!%p354_p2), %v1694_v4  ;;  %1610 = vmatprep.subr.mxu1 (!%p354_p2), %v1721_v1 }
   0xd   : > { %s1974_s18 = smov (!%p398_p3, %s1526_s18), 1  ;;  %1620 = vmatprep.subr.mxu0 %v1721_v1 }
   0xe   : > { %s1821_s27 = sshll.u32 %s1974_s18, 3  ;;  %s408_s25 = scalar_lea.vmem %s1963_s2, %s1974_s18 }
   0xf   : > { %s405_s30 = scalar_lea.vmem %s1962_s1, %s1821_s27  ;;  %s401_s14 = scalar_lea.vmem %s1961_s0, %s1821_s27  ;;  %v1869_v24 = vld [vmem:[%s408_s25] ss:$0 sm:$0xff] }
  0x10   : > { %v415_v5 = vld [vmem:[%s405_s30] sm:$0xff]  ;;  %s1726_s18 = smov 112   ;;  %s412_s30 = scalar_lea.vmem %s1972_s11, %s1821_s27 }
  0x11   : > { %v484_v6 = vpack.c.bf16 %v415_v5, %v415_v5  ;;  %v1833_v7 = vld [vmem:[%s401_s14] sm:$0xff] }
  0x12   : > { %v416_v8 = vpack.c.bf16 %v1833_v7, %v1833_v7 }
  0x13   : > { %1607 = vmatmul.mubr.msk.bf16.vlgmr.msra.gmra.mrb[0].mxu1 %vm440_vm1, %v484_v6 }
  0x14   : > { %1599 = vmatmul.mubr.msk.bf16.vlgmr.msra.gmra.mrb[0].mxu0 %vm440_vm1, %v416_v8  ;;  %1612 = vmatprep.mubr.msk.f32.mxu1 %vm1722_vm0, %v1721_v1 }
  0x15   : > { %1622 = vmatprep.mubr.msk.f32.mxu0 %vm1722_vm0, %v1721_v1 }
  0xe6   : > { %v545_v11 = vpop.f32.mrb[0].mxu1 }
  0xe7   : > { %v1849_v12 = vadd.f32 %v1538_v9, %v545_v11  ;;  %v1608_v13 = vpop.f32.mrb[1].mxu1  ;;  %v478_v14 = vpop.f32.mrb[0].mxu0 }
  0xe8   : > { %v548_v15 = vpop.f32.mrb[2].mxu1  ;;  %v479_v16 = vadd.f32 %v1534_v10, %v478_v14  ;;  %v1600_v17 = vpop.f32.mrb[1].mxu0 }
  0xe9   : > { %726 = vrot.lane.b32.xlu0 %v1849_v12, %s1723_s21  ;;  %v1609_v18 = vpop.f32.mrb[3].mxu1  ;;  %1611 = vmatpush3.xpose.msk.msra.mxu1 %vm558_vm2, %v1849_v12  ;;  %v481_v19 = vpop.f32.mrb[2].mxu0 }
  0xea   : > { %v1601_v20 = vpop.f32.mrb[3].mxu0  ;;  %1615 = vmatprep.subr.mxu1 %v1721_v1 }
  0xec   : > { %1613 = vmatmul.mubr.msk.f32.vlgmr.msra.gmra.mrb[4].mxu1 %vm558_vm2, %v479_v16 }
  0xed   : > { %724 = vrot.lane.b32.xlu0 %v479_v16, %s1723_s21  ;;  %1617 = vmatprep.mubr.msk.f32.mxu1 %vm1722_vm0, %v1721_v1 }
  0xf1   : > { %645 = vrot.lane.b32.xlu0 %v1849_v12, %s1724_s22 }
 0x15b   : > { %v727_v21 = vpop.permute.xlu0 %726 }
 0x15c   : > { %1621 = vmatpush3.xpose.msk.msra.mxu0 %vm558_vm2, %v727_v21 }
 0x15d   : > { %1630 = vmatprep.subr.bf16.mxu0 %v1721_v1 }
 0x15f   : > { %v725_v22 = vpop.permute.xlu0 %724 }
 0x160   : > { %1623 = vmatmul.mubr.msk.f32.vlgmr.msra.gmra.mrb[4].mxu0 %vm558_vm2, %v725_v22  ;;  %v1150_v22 = vld [vmem:[%s1968_s7 + $0x8] sm:$0xf] }
 0x161   : > { %1632 = vmatprep.mubr.msk.bf16.mxu0 %vm1722_vm0, %v1721_v1  ;;  %1631 = vmatpush3.bf16.msra.mxu0 %v896_v47 }
 0x162   : > { %1642 = vmatprep.subr.mxu0 %v1721_v1 }
 0x163   : > { %v646_v23 = vpop.permute.xlu0 %645 }
 0x164   : > { %1616 = vmatpush3.msra.mxu1 %v646_v23  ;;  %v1155_v23 = vsel %vm894_vm3, %v1150_v22, 0 }
 0x165   : > { %1625 = vmatprep.subr.mxu1 %v1721_v1 }
 0x1bf   : > { %v631_v25 = vpop.f32.mrb[4].mxu1 }
 0x1c0   : > { %v632_v26 = vadd.f32 %v1869_v24, %v631_v25  ;;  %v1614_v27 = vpop.f32.mrb[5].mxu1 }
 0x1c2   : > { %v635_v28 = vsel %vm558_vm2, %v632_v26, -inf }
 0x1c3   : > { %636 = vmax.xlane.f32.xlu1 %v635_v28 }
 0x233   : > { %v798_v29 = vpop.f32.mrb[4].mxu0 }
 0x234   : > { %v799_v30 = vadd.f32 %v1869_v24, %v798_v29  ;;  %v1624_v31 = vpop.f32.mrb[5].mxu0 }
 0x236   : > { %v802_v32 = vsel %vm558_vm2, %v799_v30, -inf }
 0x237   : > { %803 = vmax.xlane.f32.xlu1 %v802_v32 }
 0x248   : > { %812 = vrot.lane.b32.xlu1 %v1849_v12, %s1725_s26 }
 0x24c   : > { %986 = vrot.lane.b32.xlu1 %v1849_v12, %s1726_s18 }
 0x250   : > { %v637_v33 = vpop.xlane.xlu1 %636  ;;  %984 = vrot.lane.b32.xlu1 %v479_v16, %s1726_s18 }
 0x251   : > { %v638_v34 = vsub.f32 %v632_v26, %v637_v33 }
 0x253   : > { %v639_v35 = vmul.f32 1.442695, %v638_v34 }
 0x255   : > { %1695 = vpow2.f32 %v639_v35 }
 0x25f   : > { %v1696_v36 = vpop.eup %1695 }
 0x260   : > { %1618 = vmatmul.mubr.msk.f32.vlgmr.msra.gmra.mrb[6].mxu1 %vm558_vm2, %v1696_v36  ;;  %v641_v37 = vsel %vm558_vm2, %v1696_v36, 0.0 }
 0x261   : > { %1627 = vmatprep.mubr.msk.f32.mxu1 %vm1722_vm0, %v1721_v1 }
 0x274   : > { %642 = vadd.xlane.f32.xlu1 %v641_v37 }
 0x285   : > { %1198 = vrot.lane.b32.xlu1 %v479_v16, %s1727_s28 }
 0x289   : > { %1286 = vrot.lane.b32.xlu1 %v1849_v12, %s1728_s29 }
 0x2c4   : > { %v804_v38 = vpop.xlane.xlu1 %803 }
 0x2c5   : > { %v805_v39 = vsub.f32 %v799_v30, %v804_v38 }
 0x2c7   : > { %v806_v40 = vmul.f32 1.442695, %v805_v39 }
 0x2c8   : > { %v813_v41 = vpop.permute.xlu1 %812 }
 0x2c9   : > { %1697 = vpow2.f32 %v806_v40  ;;  %1626 = vmatpush3.msra.mxu1 %v813_v41 }
 0x2ca   : > { %1636 = vmatprep.subr.bf16.mxu1 %v1721_v1 }
 0x2cc   : > { %v987_v48 = vpop.permute.xlu1 %986 }
 0x2d0   : > { %v985_v49 = vpop.permute.xlu1 %984 }
 0x2d3   : > { %v1698_v44 = vpop.eup %1697 }
 0x2d4   : > { %1628 = vmatmul.mubr.msk.f32.vlgmr.msra.gmra.mrb[8].mxu1 %vm558_vm2, %v1698_v44  ;;  %v808_v45 = vsel %vm558_vm2, %v1698_v44, 0.0 }
 0x2d5   : > { %809 = vadd.xlane.f32.xlu0 %v808_v45  ;;  %1637 = vmatpush3.bf16.msra.mxu1 %v942_v43 }
 0x2d6   : > { %1638 = vmatprep.mubr.msk.bf16.mxu1 %vm1722_vm0, %v1721_v1  ;;  %1647 = vmatprep.subr.mxu1 %v1721_v1 }
 0x2eb   : > { %1072 = vrot.lane.b32.xlu0 %v1849_v12, %s1729_s15 }
 0x301   : > { %v643_v50 = vpop.xlane.xlu1 %642 }
 0x302   : > { %1699 = vrcp.f32 %v643_v50 }
 0x305   : > { %v1199_v18 = vpop.permute.xlu1 %1198 }
 0x30c   : > { %v1700_v51 = vpop.eup %1699 }
 0x333   : > { %v717_v52 = vpop.f32.mrb[6].mxu1 }
 0x334   : > { %v721_v53 = vmul.f32 %v1700_v51, %v717_v52  ;;  %v1619_v54 = vpop.f32.mrb[7].mxu1  ;;  %v1559_v52 = vld [vmem:[%s1969_s8] ss:$0 sm:$0xff] }
 0x336   : > { %v722_v55 = vpack.c.bf16 %v721_v53, %v721_v53 }
 0x338   : > { %1639 = vmatmul.mubr.msk.bf16.vlgmr.msra.gmra.mrb[12].mxu1 %vm558_vm2, %v722_v55 }
 0x339   : > { %1649 = vmatprep.mubr.msk.f32.mxu1 %vm1722_vm0, %v1721_v1 }
 0x362   : > { %v810_v56 = vpop.xlane.xlu0 %809 }
 0x363   : > { %1701 = vrcp.f32 %v810_v56 }
 0x366   : > { %v1073_v57 = vpop.permute.xlu0 %1072 }
 0x367   : > { %1648 = vmatpush3.msra.mxu1 %v1073_v57 }
 0x368   : > { %1658 = vmatprep.subr.mxu1 %v1721_v1 }
 0x36d   : > { %v1702_v58 = vpop.eup %1701 }
 0x3a7   : > { %v884_v59 = vpop.f32.mrb[8].mxu1 }
 0x3a8   : > { %v888_v60 = vmul.f32 %v1702_v58, %v884_v59  ;;  %v1629_v61 = vpop.f32.mrb[9].mxu1 }
 0x3aa   : > { %v889_v62 = vpack.c.bf16 %v888_v60, %v888_v60 }
 0x3ac   : > { %1633 = vmatmul.mubr.msk.bf16.vlgmr.msra.gmra.mrb[8].mxu0 %vm558_vm2, %v889_v62 }
 0x3ad   : > { %1643 = vmatpush3.xpose.msk.msra.mxu0 %vm558_vm2, %v987_v48  ;;  %1644 = vmatprep.mubr.msk.f32.mxu0 %vm1722_vm0, %v1721_v1 }
 0x3ae   : > { %1652 = vmatprep.subr.bf16.mxu0 %v1721_v1 }
 0x3b4   : > { %1645 = vmatmul.mubr.msk.f32.vlgmr.msra.gmra.mrb[6].mxu0 %vm558_vm2, %v985_v49 }
 0x3b5   : > { %1654 = vmatprep.mubr.msk.bf16.mxu0 %vm1722_vm0, %v1721_v1  ;;  %1653 = vmatpush3.bf16.msra.mxu0 %v1155_v23 }
 0x3b6   : > { %1668 = vmatprep.subr.bf16.mxu0 %v1721_v1 }
 0x40b   : > { %v978_v63 = vpop.f32.mrb[12].mxu1 }
 0x40c   : > { %v1640_v0 = vpop.f32.mrb[13].mxu1 }
 0x40d   : > { %v981_v2 = vpop.f32.mrb[14].mxu1 }
 0x40e   : > { %v1641_v3 = vpop.f32.mrb[15].mxu1 }
 0x47f   : > { %v932_v4 = vpop.f32.mrb[8].mxu0 }
 0x480   : > { %v979_v5 = vadd.f32 %v978_v63, %v932_v4  ;;  %v1634_v6 = vpop.f32.mrb[9].mxu0 }
 0x481   : > { %v935_v8 = vpop.f32.mrb[10].mxu0 }
 0x482   : > { %v1635_v9 = vpop.f32.mrb[11].mxu0  ;;  %v1561_v8 = vld [vmem:[%s1971_s10] ss:$0 sm:$0xff] }
 0x487   : > { %v1058_v10 = vpop.f32.mrb[6].mxu0 }
 0x488   : > { %v1059_v11 = vadd.f32 %v1869_v24, %v1058_v10  ;;  %v1646_v13 = vpop.f32.mrb[7].mxu0 }
 0x48a   : > { %v1062_v14 = vsel %vm558_vm2, %v1059_v11, -inf }
 0x48b   : > { %1063 = vmax.xlane.f32.xlu0 %v1062_v14 }
 0x4a1   : > { %1200 = vrot.lane.b32.xlu0 %v1849_v12, %s1727_s28  ;;  %v1287_v12 = vpop.permute.xlu1 %1286 }
 0x518   : > { %v1064_v15 = vpop.xlane.xlu0 %1063 }
 0x519   : > { %v1065_v16 = vsub.f32 %v1059_v11, %v1064_v15 }
 0x51b   : > { %v1066_v17 = vmul.f32 1.442695, %v1065_v16 }
 0x51c   : > { %v1201_v20 = vpop.permute.xlu0 %1200 }
 0x51d   : > { %1703 = vpow2.f32 %v1066_v17 }
 0x527   : > { %v1704_v19 = vpop.eup %1703 }
 0x528   : > { %1650 = vmatmul.mubr.msk.f32.vlgmr.msra.gmra.mrb[10].mxu1 %vm558_vm2, %v1704_v19  ;;  %v1068_v21 = vsel %vm558_vm2, %v1704_v19, 0.0 }
 0x529   : > { %1659 = vmatpush3.xpose.msk.msra.mxu1 %vm558_vm2, %v1201_v20  ;;  %1069 = vadd.xlane.f32.xlu1 %v1068_v21 }
 0x52a   : > { %1660 = vmatprep.mubr.msk.f32.mxu1 %vm1722_vm0, %v1721_v1  ;;  %1663 = vmatprep.subr.mxu1 %v1721_v1 }
 0x52c   : > { %1661 = vmatmul.mubr.msk.f32.vlgmr.msra.gmra.mrb[16].mxu1 %vm558_vm2, %v1199_v18 }
 0x52d   : > { %1664 = vmatpush3.msra.mxu1 %v1287_v12  ;;  %1665 = vmatprep.mubr.msk.f32.mxu1 %vm1722_vm0, %v1721_v1 }
 0x5b6   : > { %v1070_v25 = vpop.xlane.xlu1 %1069 }
 0x5b7   : > { %1705 = vrcp.f32 %v1070_v25 }
 0x5c1   : > { %v1706_v26 = vpop.eup %1705 }
 0x5fb   : > { %v1144_v27 = vpop.f32.mrb[10].mxu1 }
 0x5fc   : > { %v1148_v28 = vmul.f32 %v1706_v26, %v1144_v27  ;;  %v1651_v29 = vpop.f32.mrb[11].mxu1 }
 0x5fe   : > { %v1149_v30 = vpack.c.bf16 %v1148_v28, %v1148_v28 }
 0x5ff   : > { %v1272_v31 = vpop.f32.mrb[16].mxu1 }
 0x600   : > { %v1273_v32 = vadd.f32 %v1869_v24, %v1272_v31  ;;  %1655 = vmatmul.mubr.msk.bf16.vlgmr.msra.gmra.mrb[12].mxu0 %vm558_vm2, %v1149_v30  ;;  %v1662_v33 = vpop.f32.mrb[17].mxu1 }
 0x601   : > { %1670 = vmatprep.mubr.msk.bf16.mxu0 %vm1722_vm0, %v1721_v1  ;;  %v1364_v1 = vld [vmem:[%s1968_s7 + $0xc] sm:$0xf] }
 0x602   : > { %v1276_v34 = vsel %vm558_vm2, %v1273_v32, -inf  ;;  %v1369_v44 = vsel %vm894_vm3, %v1364_v1, 0 }
 0x603   : > { %1277 = vmax.xlane.f32.xlu0 %v1276_v34  ;;  %1669 = vmatpush3.bf16.msra.mxu0 %v1369_v44 }
 0x690   : > { %v1278_v35 = vpop.xlane.xlu0 %1277 }
 0x691   : > { %v1279_v36 = vsub.f32 %v1273_v32, %v1278_v35 }
 0x693   : > { %v1280_v37 = vmul.f32 1.442695, %v1279_v36 }
 0x695   : > { %1707 = vpow2.f32 %v1280_v37 }
 0x69f   : > { %v1708_v38 = vpop.eup %1707 }
 0x6a0   : > { %1666 = vmatmul.mubr.msk.f32.vlgmr.msra.gmra.mrb[18].mxu1 %vm558_vm2, %v1708_v38  ;;  %v1282_v39 = vsel %vm558_vm2, %v1708_v38, 0.0 }
 0x6a1   : > { %1283 = vadd.xlane.f32.xlu0 %v1282_v39 }
 0x6d3   : > { %v1191_v24 = vpop.f32.mrb[12].mxu0 }
 0x6d4   : > { %v1197_v40 = vadd.f32 %v1191_v24, %v979_v5  ;;  %v1656_v41 = vpop.f32.mrb[13].mxu0 }
 0x6d5   : > { %v1194_v42 = vpop.f32.mrb[14].mxu0 }
 0x6d6   : > { %v1657_v43 = vpop.f32.mrb[15].mxu0 }
 0x72e   : > { %v1284_v45 = vpop.xlane.xlu0 %1283 }
 0x72f   : > { %1709 = vrcp.f32 %v1284_v45 }
 0x739   : > { %v1710_v46 = vpop.eup %1709 }
 0x773   : > { %v1358_v47 = vpop.f32.mrb[18].mxu1 }
 0x774   : > { %v1362_v48 = vmul.f32 %v1710_v46, %v1358_v47  ;;  %v1667_v49 = vpop.f32.mrb[19].mxu1 }
 0x776   : > { %v1363_v50 = vpack.c.bf16 %v1362_v48, %v1362_v48 }
 0x778   : > { %1671 = vmatmul.mubr.msk.bf16.vlgmr.msra.gmra.mrb[16].mxu0 %vm558_vm2, %v1363_v50 }
 0x84b   : > { %v1405_v51 = vpop.f32.mrb[16].mxu0 }
 0x84c   : > { %v1411_v53 = vadd.f32 %v1405_v51, %v1197_v40  ;;  %v1672_v54 = vpop.f32.mrb[17].mxu0 }
 0x84d   : > { %v1408_v55 = vpop.f32.mrb[18].mxu0 }
 0x84e   : > { %v1419_v56 = vadd.f32 %v1559_v52, %v1411_v53  ;;  %v1673_v57 = vpop.f32.mrb[19].mxu0 }
 0x850   : > { %v1420_v58 = vadd.f32 %v1419_v56, %v1833_v7  ;;  %v1560_v7 = vld [vmem:[%s1970_s9] ss:$0 sm:$0xff] }
 0x852   : > { %v1423_v59 = vsel %vm440_vm1, %v1420_v58, 0.0 }
 0x853   : > { %1424 = vadd.xlane.f32.xlu0 %v1423_v59 }
 0x8e0   : > { %v1425_v60 = vpop.xlane.xlu0 %1424 }
 0x8e1   : > { %v1427_v61 = vmul.f32 0.03125, %v1425_v60 }
 0x8e3   : > { %v1428_v62 = vsub.f32 %v1420_v58, %v1427_v61 }
 0x8e5   : > { %v1429_v63 = vmul.f32 %v1428_v62, %v1428_v62 }
 0x8e7   : > { %v1430_v0 = vsel %vm440_vm1, %v1429_v63, 0.0 }
 0x8e8   : > { %1431 = vadd.xlane.f32.xlu0 %v1430_v0 }
 0x975   : > { %v1432_v2 = vpop.xlane.xlu0 %1431 }
 0x976   : > { %v1433_v3 = vmul.f32 0.03125, %v1432_v2 }
 0x978   : > { %v1434_v4 = vadd.f32 1e-05, %v1433_v3 }
 0x97a   : > { %1711 = vrsqrt.f32 %v1434_v4 }
 0x984   : > { %v1712_v5 = vpop.eup %1711 }
 0x985   : > { %v1436_v6 = vmul.f32 %v1712_v5, %v1428_v62 }
 0x987   : > { %v1443_v9 = vmul.f32 %v1560_v7, %v1436_v6 }
 0x989   : > { %v1450_v10 = vadd.f32 %v1561_v8, %v1443_v9 }
 0x98b   : > { %1451 = vst.msk [vmem:[%s412_s30] sm:$0xff] %vm440_vm1, %v1450_v10 }
 0x98c PF: > { %s21_s17 = sadd.s32 1, %s1719_s17  }
 0x98d   : > { %p18_p4 = scmp.ge.s32.totalorder %s21_s17, 4  }
 0x98f   :  { %20 = sbr.rel (!%p18_p4) target bundleno = 1 (0x1), region = 100 }

// kernel: decoder_forward.11
= control target key start
LH: loop header
LB: loop body
LE: loop exit
PB: predicated region body
PF: predicated region fallthrough
CT: control target
= control target key end

     0   :  { %s2272_s0 = inlined_call_operand.vmem [shape: f32[2,8,32], index: 0, kind: input, shape index: {}]   ;;  %s2273_s1 = inlined_call_operand.vmem [shape: f32[2,8,32], index: 1, kind: input, shape index: {}]   ;;  %s2274_s2 = inlined_call_operand.vmem [shape: f32[2,1,8], index: 2, kind: input, shape index: {}]   ;;  %s2275_s3 = inlined_call_operand.vmem [shape: bf16[32,32], index: 3, kind: input, shape index: {}]   ;;  %s2276_s4 = inlined_call_operand.vmem [shape: f32[1,32], index: 4, kind: input, shape index: {}]   ;;  %s2277_s5 = inlined_call_operand.vmem [shape: bf16[32,64], index: 5, kind: input, shape index: {}]   ;;  %s2278_s6 = inlined_call_operand.vmem [shape: f32[1,64], index: 6, kind: input, shape index: {}]   ;;  %s2279_s7 = inlined_call_operand.vmem [shape: bf16[32,32], index: 7, kind: input, shape index: {}]   ;;  %s2280_s8 = inlined_call_operand.vmem [shape: f32[1,32], index: 8, kind: input, shape index: {}]   ;;  %s2281_s9 = inlined_call_operand.vmem [shape: f32[1,32], index: 9, kind: input, shape index: {}]   ;;  %s2282_s10 = inlined_call_operand.vmem [shape: f32[1,32], index: 10, kind: input, shape index: {}]   ;;  %s2283_s11 = inlined_call_operand.vmem [shape: f32[2,8,32], index: 11, kind: output, shape index: {0}]   ;;  %s2284_s12 = inlined_call_operand.hbm [shape: f32[2,4,8,8], index: 12, kind: output, shape index: {1}]  }
   0x1   :  { %2285 = sst [smem:[#allocation5_spill]] %s2272_s0 }
   0x2   :  { %2286 = sst [smem:[#allocation6_spill]] %s2273_s1 }
   0x3   :  { %18 = vsyncpa [#allocation3], 0 }
   0x4   :  { %20 = vsyncpa [#allocation3 + $0x1], 0  ;;  %s1997_s21 = smov 0   ;;  %s1999_s22 = smov 0  }
   0x5   :  { %s2001_s23 = smov 0   ;;  %s2003_s24 = smov 0  }
   0x6 LB: > { %s2018_s25 = sadd.s32 4294967295, %s1918_s24   ;;  %s1629_s26 = sadd.s32 4294967294, %s1918_s24   ;;  %s1918_s24 = sphi %s2003_s24, %s2294_s24   ;;  %s1914_s23 = sphi %s2001_s23, %s2293_s23   ;;  %s1910_s22 = sphi %s1999_s22, %s2292_s22   ;;  %s1906_s21 = sphi %s1997_s21, %s2291_s21  }
   0x7   : > { %s2022_s27 = sadd.s32 1, %s1918_s24   ;;  %s305_s28 = sadd.s32 1, %s1914_s23 }
   0x8   : > { %s302_s29 = ssub.s32 %s1918_s24, %s2022_s27  ;;  %p315_p0 = scmp.ne.s32.totalorder %s1914_s23, %s1910_s22 }
   0x9   : > { %p303_p1 = scmp.eq.s32.totalorder %s302_s29, 0  ;;  %p316_p2 = scmp.eq.s32.totalorder %s2018_s25, 1 }
   0xa   : > { %p321_p3 = scmp.ne.s32.totalorder %s1910_s22, %s1906_s21  ;;  %p322_p4 = scmp.eq.s32.totalorder %s1629_s26, 1 }
   0xb   : > { %s2033_s30 = scalar_select %p303_p1, %s1914_s23, %s305_s28  }
   0xc   : > { %p2035_p5 = por %p316_p2, %p315_p0  ;;  %p2039_p6 = por %p322_p4, %p321_p3 }
   0xd   : > { %p1632_p7 = scmp.ge.s32.totalorder %s1918_s24, 1  ;;  %p384_p8 = scmp.lt.s32.totalorder %s1918_s24, 3 }
   0xf   : > { %p385_p9 = pnand %p1632_p7, %p384_p8 }
  0x10   : > { %v1834_v0 = vld [vmem:[%s2277_s5] sm:$0xff] (!%p385_p9)   ;;  %v1920_v1 = vmov (!%p385_p9), 0.0   ;;  %v1836_v3 = vld [vmem:[%s2277_s5 + $0x8] sm:$0xff] (!%p385_p9)   ;;  %vm1921_vm0 = vmmov (!%p385_p9), 0   ;;  %p436_p10 = scmp.lt.s32.totalorder (!%p385_p9), %s2018_s25, 1  ;;  %s2289_s1 = sld [smem:[#allocation6_spill]] (!%p385_p9) }
  0x11   : > { %388 = sbr.rel (%p385_p9) target bundleno = 2456 (0x998), region = 64  ;;  %1712 = vmatprep.subr.bf16.mxu1 (!%p385_p9), %v1920_v1  ;;  %1704 = vmatprep.subr.bf16.mxu0 (!%p385_p9), %v1920_v1  ;;  %v1835_v2 = vld [vmem:[%s2275_s3] sm:$0xff] (!%p385_p9)   ;;  %v1837_v4 = vld [vmem:[%s2275_s3 + $0x8] sm:$0xff] (!%p385_p9)   ;;  %vm478_vm1 = vcmask (!%p385_p9), 261120   ;;  %s2290_s0 = sld [smem:[#allocation5_spill]] (!%p385_p9)  ;;  %vm596_vm2 = vcmask (!%p385_p9), 64512  }
  0x12   : > { %1713 = vmatpush3.bf16.msra.mxu1 (!%p385_p9), %v1834_v0  ;;  %1716 = vmatprep.mubr.msk.bf16.mxu1 (!%p385_p9), %vm1921_vm0, %v1920_v1  ;;  %v1641_v9 = vld [vmem:[%s2278_s6] ss:$0 sm:$0xff] (!%p385_p9)  ;;  %s1922_s19 = smov (!%p385_p9), 120   ;;  %s1923_s20 = smov (!%p385_p9), 96   ;;  %vm937_vm3 = vcmask (!%p385_p9), 1043456  }
  0x13   : > { %1705 = vmatpush3.bf16.msra.mxu0 (!%p385_p9), %v1835_v2  ;;  %1714 = vmatprep.subr.bf16.mxu1 (!%p385_p9), %v1920_v1  ;;  %v1637_v10 = vld [vmem:[%s2276_s4] ss:$0 sm:$0xff] (!%p385_p9)  ;;  %s1924_s17 = smov (!%p385_p9), 88   ;;  %s1928_s28 = smov (!%p385_p9), 80   ;;  %v933_v46 = vld [vmem:[%s2279_s7 + $0x4] sm:$0xf] (!%p385_p9) }
  0x14   : > { %1706 = vmatprep.subr.bf16.mxu0 (!%p385_p9), %v1920_v1  ;;  %1708 = vmatprep.mubr.msk.bf16.mxu0 (!%p385_p9), %vm1921_vm0, %v1920_v1  ;;  %v763_v42 = vld [vmem:[%s2279_s7] sm:$0xf] (!%p385_p9)  ;;  %v939_v47 = vsel (!%p385_p9), %vm937_vm3, %v933_v46, 0 }
  0x15   : > { %v985_v43 = vsel (!%p385_p9), %vm937_vm3, %v763_v42, 0 }
  0x16   : > { %1715 = vmatpush3.bf16.msra.mxu1 (!%p385_p9), %v1836_v3 }
  0x17   : > { %1707 = vmatpush3.bf16.msra.mxu0 (!%p385_p9), %v1837_v4  ;;  %1720 = vmatprep.subr.mxu1 (!%p385_p9), %v1920_v1 }
  0x18   : > { %s2065_s29 = scalar_select %p436_p10, %s2018_s25, 1  ;;  %1730 = vmatprep.subr.mxu0 %v1920_v1 }
  0x1a   : > { %s2070_s15 = sshll.u32 %s2065_s29, 3  ;;  %s446_s16 = scalar_lea.vmem %s2274_s2, %s2065_s29 }
  0x1b   : > { %s443_s18 = scalar_lea.vmem %s2289_s1, %s2070_s15  ;;  %s439_s26 = scalar_lea.vmem %s2290_s0, %s2070_s15  ;;  %v2118_v24 = vld [vmem:[%s446_s16] ss:$0 sm:$0xff] }
  0x1c   : > { %v453_v5 = vld [vmem:[%s443_s18] sm:$0xff]  ;;  %s1925_s29 = smov 112   ;;  %s1926_s18 = smov 104  }
  0x1d   : > { %v522_v6 = vpack.c.bf16 %v453_v5, %v453_v5  ;;  %v2082_v7 = vld [vmem:[%s439_s26] sm:$0xff] }
  0x1e   : > { %v454_v8 = vpack.c.bf16 %v2082_v7, %v2082_v7 }
  0x1f   : > { %1717 = vmatmul.mubr.msk.bf16.vlgmr.msra.gmra.mrb[0].mxu1 %vm478_vm1, %v522_v6 }
  0x20   : > { %1709 = vmatmul.mubr.msk.bf16.vlgmr.msra.gmra.mrb[0].mxu0 %vm478_vm1, %v454_v8  ;;  %1722 = vmatprep.mubr.msk.f32.mxu1 %vm1921_vm0, %v1920_v1 }
  0x21   : > { %1732 = vmatprep.mubr.msk.f32.mxu0 %vm1921_vm0, %v1920_v1 }
  0xf2   : > { %v583_v11 = vpop.f32.mrb[0].mxu1 }
  0xf3   : > { %v2098_v12 = vadd.f32 %v1641_v9, %v583_v11  ;;  %v1718_v13 = vpop.f32.mrb[1].mxu1  ;;  %v516_v14 = vpop.f32.mrb[0].mxu0 }
  0xf4   : > { %v586_v15 = vpop.f32.mrb[2].mxu1  ;;  %v517_v16 = vadd.f32 %v1637_v10, %v516_v14  ;;  %v1710_v17 = vpop.f32.mrb[1].mxu0 }
  0xf5   : > { %766 = vrot.lane.b32.xlu0 %v2098_v12, %s1922_s19  ;;  %v1719_v18 = vpop.f32.mrb[3].mxu1  ;;  %1721 = vmatpush3.xpose.msk.msra.mxu1 %vm596_vm2, %v2098_v12  ;;  %v519_v19 = vpop.f32.mrb[2].mxu0 }
  0xf6   : > { %v1711_v20 = vpop.f32.mrb[3].mxu0  ;;  %1725 = vmatprep.subr.mxu1 %v1920_v1 }
  0xf8   : > { %1723 = vmatmul.mubr.msk.f32.vlgmr.msra.gmra.mrb[4].mxu1 %vm596_vm2, %v517_v16 }
  0xf9   : > { %764 = vrot.lane.b32.xlu0 %v517_v16, %s1922_s19  ;;  %1727 = vmatprep.mubr.msk.f32.mxu1 %vm1921_vm0, %v1920_v1  ;;  %s1927_s19 = smov 72  }
  0xfd   : > { %683 = vrot.lane.b32.xlu0 %v2098_v12, %s1923_s20 }
 0x167   : > { %v767_v21 = vpop.permute.xlu0 %766 }
 0x168   : > { %1731 = vmatpush3.xpose.msk.msra.mxu0 %vm596_vm2, %v767_v21 }
 0x169   : > { %1740 = vmatprep.subr.bf16.mxu0 %v1920_v1 }
 0x16b   : > { %v765_v22 = vpop.permute.xlu0 %764 }
 0x16c   : > { %1733 = vmatmul.mubr.msk.f32.vlgmr.msra.gmra.mrb[4].mxu0 %vm596_vm2, %v765_v22 }
 0x16d   : > { %1742 = vmatprep.mubr.msk.bf16.mxu0 %vm1921_vm0, %v1920_v1  ;;  %1741 = vmatpush3.bf16.msra.mxu0 %v939_v47 }
 0x16e   : > { %1752 = vmatprep.subr.mxu0 %v1920_v1 }
 0x16f   : > { %v684_v23 = vpop.permute.xlu0 %683 }
 0x170   : > { %1726 = vmatpush3.msra.mxu1 %v684_v23 }
 0x171   : > { %1735 = vmatprep.subr.mxu1 %v1920_v1 }
 0x1cb   : > { %v669_v25 = vpop.f32.mrb[4].mxu1 }
 0x1cc   : > { %v670_v26 = vadd.f32 %v2118_v24, %v669_v25  ;;  %v1724_v27 = vpop.f32.mrb[5].mxu1  ;;  %v1196_v25 = vld [vmem:[%s2279_s7 + $0x8] sm:$0xf] }
 0x1ce   : > { %v673_v28 = vsel %vm596_vm2, %v670_v26, -inf }
 0x1cf   : > { %674 = vmax.xlane.f32.xlu1 %v673_v28 }
 0x23f   : > { %v838_v29 = vpop.f32.mrb[4].mxu0 }
 0x240   : > { %v839_v30 = vadd.f32 %v2118_v24, %v838_v29  ;;  %v1734_v31 = vpop.f32.mrb[5].mxu0 }
 0x242   : > { %v842_v32 = vsel %vm596_vm2, %v839_v30, -inf }
 0x243   : > { %843 = vmax.xlane.f32.xlu1 %v842_v32 }
 0x254   : > { %852 = vrot.lane.b32.xlu1 %v2098_v12, %s1924_s17 }
 0x258   : > { %1029 = vrot.lane.b32.xlu1 %v2098_v12, %s1925_s29 }
 0x25c   : > { %v675_v33 = vpop.xlane.xlu1 %674  ;;  %1027 = vrot.lane.b32.xlu1 %v517_v16, %s1925_s29  ;;  %s433_s29 = sand.u32 1, %s1910_s22  }
 0x25d   : > { %v676_v34 = vsub.f32 %v670_v26, %v675_v33  ;;  %v1201_v26 = vsel %vm937_vm3, %v1196_v25, 0 }
 0x25f   : > { %v677_v35 = vmul.f32 1.442695, %v676_v34 }
 0x261   : > { %1838 = vpow2.f32 %v677_v35 }
 0x26b   : > { %v1839_v36 = vpop.eup %1838 }
 0x26c   : > { %1728 = vmatmul.mubr.msk.f32.vlgmr.msra.gmra.mrb[6].mxu1 %vm596_vm2, %v1839_v36  ;;  %v679_v37 = vsel %vm596_vm2, %v1839_v36, 0.0 }
 0x26d   : > { %1737 = vmatprep.mubr.msk.f32.mxu1 %vm1921_vm0, %v1920_v1 }
 0x280   : > { %680 = vadd.xlane.f32.xlu1 %v679_v37 }
 0x291   : > { %1244 = vrot.lane.b32.xlu1 %v517_v16, %s1926_s18 }
 0x295   : > { %1332 = vrot.lane.b32.xlu1 %v2098_v12, %s1927_s19  ;;  %s1633_s19 = sshll.u32 %s433_s29, 5 }
 0x296   : > { %s2151_s20 = scalar_lea.vmem [#allocation2], %s1633_s19  ;;  %s2220_s19 = scalar_lea.sflag [#allocation3], %s433_s29 }
 0x297   : > { %s1522_s26 = sshll.u32 %s2151_s20, 4  ;;  %s2216_s26 = int_to_ptr.vmem [resolvable:$true] %s1522_s26 }
 0x298   : > { %s1856_s0 = scalar_lea.vmem %s2216_s26, 512 }
 0x299   : > { %p1857_p11 = scmp.ne.s32.totalorder %s2216_s26, %s1856_s0 }
 0x29b   : > { %p1858_p12 = pnand %p1857_p11, %p2035_p5 }
 0x29d   : > { %p1859_p13 = pneg %p1858_p12 }
 0x2d0   : > { %v844_v38 = vpop.xlane.xlu1 %843 }
 0x2d1   : > { %v845_v39 = vsub.f32 %v839_v30, %v844_v38 }
 0x2d3   : > { %v846_v40 = vmul.f32 1.442695, %v845_v39 }
 0x2d4   : > { %v853_v41 = vpop.permute.xlu1 %852 }
 0x2d5   : > { %1840 = vpow2.f32 %v846_v40  ;;  %1736 = vmatpush3.msra.mxu1 %v853_v41 }
 0x2d6   : > { %1746 = vmatprep.subr.bf16.mxu1 %v1920_v1 }
 0x2d8   : > { %v1030_v48 = vpop.permute.xlu1 %1029 }
 0x2dc   : > { %v1028_v49 = vpop.permute.xlu1 %1027 }
 0x2df   : > { %v1841_v44 = vpop.eup %1840 }
 0x2e0   : > { %1738 = vmatmul.mubr.msk.f32.vlgmr.msra.gmra.mrb[8].mxu1 %vm596_vm2, %v1841_v44  ;;  %v848_v45 = vsel %vm596_vm2, %v1841_v44, 0.0 }
 0x2e1   : > { %849 = vadd.xlane.f32.xlu0 %v848_v45  ;;  %1747 = vmatpush3.bf16.msra.mxu1 %v985_v43 }
 0x2e2   : > { %1748 = vmatprep.mubr.msk.bf16.mxu1 %vm1921_vm0, %v1920_v1  ;;  %1757 = vmatprep.subr.mxu1 %v1920_v1 }
 0x2f7   : > { %1115 = vrot.lane.b32.xlu0 %v2098_v12, %s1928_s28 }
 0x30d   : > { %v681_v50 = vpop.xlane.xlu1 %680 }
 0x30e   : > { %1842 = vrcp.f32 %v681_v50 }
 0x311   : > { %v1245_v20 = vpop.permute.xlu1 %1244 }
 0x318   : > { %v1843_v51 = vpop.eup %1842 }
 0x319   : > { %v760_v52 = vmul.f32 %v1843_v51, %v1839_v36 }
 0x31b   : > { %761 = vst.msk [vmem:[%s2151_s20] sm:$0xff] %vm596_vm2, %v760_v52 }
 0x33f   : > { %v755_v53 = vpop.f32.mrb[6].mxu1 }
 0x340   : > { %v759_v54 = vmul.f32 %v1843_v51, %v755_v53  ;;  %v1729_v55 = vpop.f32.mrb[7].mxu1 }
 0x342   : > { %v762_v56 = vpack.c.bf16 %v759_v54, %v759_v54 }
 0x344   : > { %1749 = vmatmul.mubr.msk.bf16.vlgmr.msra.gmra.mrb[12].mxu1 %vm596_vm2, %v762_v56  ;;  %v1665_v56 = vld [vmem:[%s2280_s8] ss:$0 sm:$0xff] }
 0x345   : > { %1759 = vmatprep.mubr.msk.f32.mxu1 %vm1921_vm0, %v1920_v1 }
 0x36e   : > { %v850_v57 = vpop.xlane.xlu0 %849 }
 0x36f   : > { %1844 = vrcp.f32 %v850_v57 }
 0x372   : > { %v1116_v58 = vpop.permute.xlu0 %1115 }
 0x373   : > { %1758 = vmatpush3.msra.mxu1 %v1116_v58 }
 0x374   : > { %1768 = vmatprep.subr.mxu1 %v1920_v1 }
 0x379   : > { %v1845_v59 = vpop.eup %1844 }
 0x37a   : > { %v929_v60 = vmul.f32 %v1845_v59, %v1841_v44 }
 0x37c   : > { %1652 = vst.msk [vmem:[%s2151_s20 + $0x8] sm:$0xff] %vm596_vm2, %v929_v60 }
 0x3b3   : > { %v924_v61 = vpop.f32.mrb[8].mxu1 }
 0x3b4   : > { %v928_v62 = vmul.f32 %v1845_v59, %v924_v61  ;;  %v1739_v63 = vpop.f32.mrb[9].mxu1 }
 0x3b6   : > { %v932_v0 = vpack.c.bf16 %v928_v62, %v928_v62 }
 0x3b8   : > { %1743 = vmatmul.mubr.msk.bf16.vlgmr.msra.gmra.mrb[8].mxu0 %vm596_vm2, %v932_v0 }
 0x3b9   : > { %1753 = vmatpush3.xpose.msk.msra.mxu0 %vm596_vm2, %v1030_v48  ;;  %1754 = vmatprep.mubr.msk.f32.mxu0 %vm1921_vm0, %v1920_v1 }
 0x3ba   : > { %1762 = vmatprep.subr.bf16.mxu0 %v1920_v1 }
 0x3c0   : > { %1755 = vmatmul.mubr.msk.f32.vlgmr.msra.gmra.mrb[6].mxu0 %vm596_vm2, %v1028_v49 }
 0x3c1   : > { %1764 = vmatprep.mubr.msk.bf16.mxu0 %vm1921_vm0, %v1920_v1  ;;  %1763 = vmatpush3.bf16.msra.mxu0 %v1201_v26 }
 0x3c2   : > { %1778 = vmatprep.subr.bf16.mxu0 %v1920_v1 }
 0x417   : > { %v1021_v2 = vpop.f32.mrb[12].mxu1 }
 0x418   : > { %v1750_v3 = vpop.f32.mrb[13].mxu1 }
 0x419   : > { %v1024_v4 = vpop.f32.mrb[14].mxu1 }
 0x41a   : > { %v1751_v5 = vpop.f32.mrb[15].mxu1 }
 0x48b   : > { %v975_v6 = vpop.f32.mrb[8].mxu0 }
 0x48c   : > { %v1022_v8 = vadd.f32 %v1021_v2, %v975_v6  ;;  %v1744_v9 = vpop.f32.mrb[9].mxu0 }
 0x48d   : > { %v978_v10 = vpop.f32.mrb[10].mxu0 }
 0x48e   : > { %v1745_v11 = vpop.f32.mrb[11].mxu0 }
 0x493   : > { %v1101_v13 = vpop.f32.mrb[6].mxu0 }
 0x494   : > { %v1102_v14 = vadd.f32 %v2118_v24, %v1101_v13  ;;  %v1756_v15 = vpop.f32.mrb[7].mxu0 }
 0x496   : > { %v1105_v16 = vsel %vm596_vm2, %v1102_v14, -inf }
 0x497   : > { %1106 = vmax.xlane.f32.xlu0 %v1105_v16 }
 0x4ad   : > { %1246 = vrot.lane.b32.xlu0 %v2098_v12, %s1926_s18  ;;  %v1333_v12 = vpop.permute.xlu1 %1332  ;;  %s1673_s18 = sshll.u32 %s2018_s25, 9  ;;  %s1929_s25 = smov [#allocation2]  }
 0x4ae   : > { %s2214_s17 = scalar_lea.hbm %s2284_s12, %s1673_s18 }
 0x524   : > { %v1107_v17 = vpop.xlane.xlu0 %1106 }
 0x525   : > { %v1108_v18 = vsub.f32 %v1102_v14, %v1107_v17 }
 0x527   : > { %v1109_v19 = vmul.f32 1.442695, %v1108_v18 }
 0x528   : > { %v1247_v22 = vpop.permute.xlu0 %1246 }
 0x529   : > { %1846 = vpow2.f32 %v1109_v19 }
 0x533   : > { %v1847_v21 = vpop.eup %1846 }
 0x534   : > { %1760 = vmatmul.mubr.msk.f32.vlgmr.msra.gmra.mrb[10].mxu1 %vm596_vm2, %v1847_v21  ;;  %v1111_v23 = vsel %vm596_vm2, %v1847_v21, 0.0 }
 0x535   : > { %1769 = vmatpush3.xpose.msk.msra.mxu1 %vm596_vm2, %v1247_v22  ;;  %1112 = vadd.xlane.f32.xlu1 %v1111_v23 }
 0x536   : > { %1770 = vmatprep.mubr.msk.f32.mxu1 %vm1921_vm0, %v1920_v1  ;;  %1773 = vmatprep.subr.mxu1 %v1920_v1 }
 0x538   : > { %1771 = vmatmul.mubr.msk.f32.vlgmr.msra.gmra.mrb[16].mxu1 %vm596_vm2, %v1245_v20 }
 0x539   : > { %1774 = vmatpush3.msra.mxu1 %v1333_v12  ;;  %1775 = vmatprep.mubr.msk.f32.mxu1 %vm1921_vm0, %v1920_v1 }
 0x5c2   : > { %v1113_v27 = vpop.xlane.xlu1 %1112 }
 0x5c3   : > { %1848 = vrcp.f32 %v1113_v27 }
 0x5cd   : > { %v1849_v28 = vpop.eup %1848 }
 0x5ce   : > { %v1192_v29 = vmul.f32 %v1849_v28, %v1847_v21 }
 0x5d0   : > { %1658 = vst.msk [vmem:[%s2151_s20 + $0x10] sm:$0xff] %vm596_vm2, %v1192_v29 }
 0x607   : > { %v1187_v30 = vpop.f32.mrb[10].mxu1 }
 0x608   : > { %v1191_v31 = vmul.f32 %v1849_v28, %v1187_v30  ;;  %v1761_v32 = vpop.f32.mrb[11].mxu1 }
 0x60a   : > { %v1195_v33 = vpack.c.bf16 %v1191_v31, %v1191_v31 }
 0x60b   : > { %v1318_v34 = vpop.f32.mrb[16].mxu1 }
 0x60c   : > { %v1319_v35 = vadd.f32 %v2118_v24, %v1318_v34  ;;  %1765 = vmatmul.mubr.msk.bf16.vlgmr.msra.gmra.mrb[12].mxu0 %vm596_vm2, %v1195_v33  ;;  %v1772_v36 = vpop.f32.mrb[17].mxu1 }
 0x60d   : > { %1780 = vmatprep.mubr.msk.bf16.mxu0 %vm1921_vm0, %v1920_v1  ;;  %v1413_v1 = vld [vmem:[%s2279_s7 + $0xc] sm:$0xf] }
 0x60e   : > { %v1322_v37 = vsel %vm596_vm2, %v1319_v35, -inf  ;;  %v1418_v47 = vsel %vm937_vm3, %v1413_v1, 0 }
 0x60f   : > { %1323 = vmax.xlane.f32.xlu0 %v1322_v37  ;;  %1779 = vmatpush3.bf16.msra.mxu0 %v1418_v47 }
 0x69c   : > { %v1324_v38 = vpop.xlane.xlu0 %1323 }
 0x69d   : > { %v1325_v39 = vsub.f32 %v1319_v35, %v1324_v38 }
 0x69f   : > { %v1326_v40 = vmul.f32 1.442695, %v1325_v39 }
 0x6a1   : > { %1850 = vpow2.f32 %v1326_v40 }
 0x6ab   : > { %v1851_v41 = vpop.eup %1850 }
 0x6ac   : > { %1776 = vmatmul.mubr.msk.f32.vlgmr.msra.gmra.mrb[18].mxu1 %vm596_vm2, %v1851_v41  ;;  %v1328_v42 = vsel %vm596_vm2, %v1851_v41, 0.0 }
 0x6ad   : > { %1329 = vadd.xlane.f32.xlu0 %v1328_v42 }
 0x6df   : > { %v1237_v24 = vpop.f32.mrb[12].mxu0 }
 0x6e0   : > { %v1243_v43 = vadd.f32 %v1237_v24, %v1022_v8  ;;  %v1766_v44 = vpop.f32.mrb[13].mxu0 }
 0x6e1   : > { %v1240_v45 = vpop.f32.mrb[14].mxu0 }
 0x6e2   : > { %v1767_v46 = vpop.f32.mrb[15].mxu0 }
 0x73a   : > { %v1330_v48 = vpop.xlane.xlu0 %1329 }
 0x73b   : > { %1852 = vrcp.f32 %v1330_v48 }
 0x745   : > { %v1853_v49 = vpop.eup %1852 }
 0x746   : > { %v1409_v50 = vmul.f32 %v1853_v49, %v1851_v41 }
 0x748   : > { %1663 = vst.msk [vmem:[%s2151_s20 + $0x18] sm:$0xff] %vm596_vm2, %v1409_v50  ;;  %s1860_s20 = sshll.u32 %s1929_s25, 4  ;;  %s1861_s20 = int_to_ptr.vmem [resolvable:$false] %s1860_s20 }
 0x749   : > { %s1862_s1 = scalar_lea.vmem %s1861_s20, 1024  ;;  %p1863_p0 = scmp.lt.s32.totalorder %s2216_s26, %s1861_s20 }
 0x74a   : > { %p1864_p1 = scmp.lt.s32.totalorder %s1862_s1, %s1856_s0 }
 0x74c   : > { %p1865_p2 = por %p1864_p1, %p1863_p0 }
 0x74e   : > { %p1866_p3 = pnand %p1865_p2, %p1859_p13 }
 0x77f   : > { %v1404_v51 = vpop.f32.mrb[18].mxu1 }
 0x780   : > { %v1408_v52 = vmul.f32 %v1853_v49, %v1404_v51  ;;  %v1777_v53 = vpop.f32.mrb[19].mxu1 }
 0x782   : > { %v1412_v54 = vpack.c.bf16 %v1408_v52, %v1408_v52 }
 0x784   : > { %1781 = vmatmul.mubr.msk.bf16.vlgmr.msra.gmra.mrb[16].mxu0 %vm596_vm2, %v1412_v54 }
 0x857   : > { %v1454_v55 = vpop.f32.mrb[16].mxu0 }
 0x858   : > { %v1460_v57 = vadd.f32 %v1454_v55, %v1243_v43  ;;  %v1782_v58 = vpop.f32.mrb[17].mxu0 }
 0x859   : > { %v1457_v59 = vpop.f32.mrb[18].mxu0 }
 0x85a   : > { %v1468_v60 = vadd.f32 %v1665_v56, %v1460_v57  ;;  %v1783_v61 = vpop.f32.mrb[19].mxu0 }
 0x85c   : > { %v1469_v62 = vadd.f32 %v1468_v60, %v2082_v7 }
 0x85e   : > { %v1472_v63 = vsel %vm478_vm1, %v1469_v62, 0.0 }
 0x85f   : > { %1473 = vadd.xlane.f32.xlu0 %v1472_v63 }
 0x8ec   : > { %v1474_v0 = vpop.xlane.xlu0 %1473 }
 0x8ed   : > { %v1476_v2 = vmul.f32 0.03125, %v1474_v0 }
 0x8ef   : > { %v1477_v3 = vsub.f32 %v1469_v62, %v1476_v2 }
 0x8f1   : > { %v1478_v4 = vmul.f32 %v1477_v3, %v1477_v3 }
 0x8f3   : > { %v1479_v5 = vsel %vm478_vm1, %v1478_v4, 0.0 }
 0x8f4   : > { %1480 = vadd.xlane.f32.xlu0 %v1479_v5 }
 0x8f5   : > { %1869 = shalt.err (!%p1866_p3)
}
 0x8f6   : > { %s1870_s29 = scalar_lea.hbm %s2214_s17, 512  ;;  %s1874_s16 = scalar_lea.hbm %s2284_s12, 1024 }
 0x8f7   : > { %p1871_p4 = scmp.ne.s32.totalorder %s2214_s17, %s1870_s29  ;;  %p1875_p9 = scmp.lt.u32.totalorder %s2214_s17, %s2284_s12 }
 0x8f8   : > { %p1876_p10 = scmp.lt.u32.totalorder %s1874_s16, %s1870_s29  ;;  %p1878_p12 = scmp.lt.u32.totalorder %s1870_s29, %s2214_s17 }
 0x8f9   : > { %p1872_p7 = pnand %p1871_p4, %p2035_p5 }
 0x8fa   : > { %p1877_p11 = por %p1876_p10, %p1875_p9 }
 0x8fb   : > { %p1873_p8 = pneg %p1872_p7 }
 0x8fc   : > { %p1879_p13 = por %p1878_p12, %p1877_p11 }
 0x8fe   : > { %p1880_p0 = pnand %p1879_p13, %p1873_p8 }
 0x900   : > { %1883 = shalt.err (!%p1880_p0)
}
 0x901   : > { %s1930_s0 = smov 128   ;;  %s1931_s1 = smov 8   ;;  %v1666_v10 = vld [vmem:[%s2281_s9] ss:$0 sm:$0xff] }
 0x902   : > { %1784 = dma.vmem_to_hbm [thread:$0]  (%p2035_p5), %s2216_s26, 512, %s2214_s17, %s2220_s19, %s1930_s0, %s1930_s0, %s1931_s1  }
 0x903   : > { %v1667_v13 = vld [vmem:[%s2282_s10] ss:$0 sm:$0xff]  ;;  %s450_s13 = scalar_lea.vmem %s2283_s11, %s2070_s15 }
 0x981   : > { %v1481_v7 = vpop.xlane.xlu0 %1480 }
 0x982   : > { %v1482_v6 = vmul.f32 0.03125, %v1481_v7 }
 0x984   : > { %v1483_v8 = vadd.f32 1e-05, %v1482_v6 }
 0x986   : > { %1854 = vrsqrt.f32 %v1483_v8 }
 0x990   : > { %v1855_v9 = vpop.eup %1854 }
 0x991   : > { %v1485_v11 = vmul.f32 %v1855_v9, %v1477_v3 }
 0x993   : > { %v1492_v14 = vmul.f32 %v1666_v10, %v1485_v11 }
 0x995   : > { %v1499_v15 = vadd.f32 %v1667_v13, %v1492_v14 }
 0x997   : > { %1500 = vst.msk [vmem:[%s450_s13] sm:$0xff] %vm478_vm1, %v1499_v15 }
 0x998 PF: > { %p1790_p5 = scmp.ge.s32.totalorder %s1918_s24, 2  ;;  %s1544_s26 = sand.u32 1, %s1906_s21  }
 0x999   : > { %s1545_s17 = scalar_lea.sflag [#allocation3], %s1544_s26 }
 0x99a   : > { %p1787_p1 = pnand %p1790_p5, %p2039_p6 }
 0x99c   : > { %1901 = dma.done.wait (!%p1787_p1), %s1545_s17, 512  }
 0x99d   : > { %1903 = vsyncadd (!%p1787_p1), %s1545_s17, 4294966784  ;;  %p23_p2 = scmp.ge.s32.totalorder %s2022_s27, 4   ;;  %s2291_s21 = smov %s1910_s22 }
 0x99e   : > { %s2292_s22 = smov %s1914_s23  ;;  %s2293_s23 = smov %s2033_s30 }
 0x99f   : > { %s2294_s24 = smov %s2022_s27  ;;  %25 = sbr.rel (!%p23_p2) target bundleno = 6 (0x6), region = 120 }
 0x9a6   :  { %1550 = vsyncpa [#allocation3], 1 }
 0x9a7   :  { %1552 = vsyncpa [#allocation3 + $0x1], 1 }

// kernel: decoder_forward.13
= control target key start
LH: loop header
LB: loop body
LE: loop exit
PB: predicated region body
PF: predicated region fallthrough
CT: control target
= control target key end

     0   :  { %v152_v1 = vmov 0.0   ;;  %vm153_vm0 = vmmov 0   ;;  %s204_s0 = inlined_call_operand.vmem [shape: f32[16,32], index: 0, kind: input, shape index: {}]   ;;  %s205_s1 = inlined_call_operand.vmem [shape: bf16[32,16], index: 1, kind: input, shape index: {}]   ;;  %s206_s2 = inlined_call_operand.vmem [shape: f32[1,16], index: 2, kind: input, shape index: {}]   ;;  %s207_s3 = inlined_call_operand.hbm [shape: f32[16,16], index: 3, kind: output, shape index: {}]  }
   0x1   :  { %v126_v0 = vld [vmem:[%s205_s1] sm:$0xff]   ;;  %113 = vmatprep.subr.bf16.mxu0 %v152_v1  ;;  %v127_v2 = vld [vmem:[%s205_s1 + $0x8] sm:$0xff]   ;;  %117 = vmatprep.mubr.msk.bf16.mxu0 %vm153_vm0, %v152_v1 }
   0x2   :  { %114 = vmatpush3.bf16.msra.mxu0 %v126_v0  ;;  %v16_v3 = vld [vmem:[%s204_s0] sm:$0xff]  ;;  %v17_v4 = vld [vmem:[%s204_s0 + $0x8] sm:$0xff] }
   0x3   :  { %115 = vmatprep.subr.bf16.mxu0 %v152_v1 }
   0x4   :  { %8 = vsyncpa [#allocation3], 0  ;;  %v18_v5 = vpack.c.bf16 %v17_v4, %v16_v3  ;;  %vm42_vm1 = vcmask 261120   ;;  %v106_v6 = vld [vmem:[%s206_s2] ss:$0 sm:$0xff]  ;;  %s154_s1 = smov [#allocation2]  }
   0x5   :  { %s95_s22 = sshll.u32 %s154_s1, 4  ;;  %vm87_vm2 = vcmask 130048   ;;  %s96_s22 = int_to_ptr.vmem [resolvable:$true] %s95_s22 }
   0x6   :  { %116 = vmatpush3.bf16.msra.mxu0 %v127_v2  ;;  %s128_s0 = scalar_lea.vmem %s96_s22, 256  ;;  %p133_p1 = scmp.lt.s32.totalorder %s96_s22, %s96_s22 }
   0x7   :  { %p129_p0 = scmp.ne.s32.totalorder %s96_s22, %s128_s0  ;;  %p134_p2 = scmp.lt.s32.totalorder %s128_s0, %s128_s0 }
   0x9   :  { %118 = vmatmul.mubr.msk.bf16.vlgmr.msra.gmra.mrb[0].mxu0 %vm42_vm1, %v18_v5  ;;  %p135_p3 = por %p134_p2, %p133_p1 }
   0xb   :  { %p136_p4 = pnand %p135_p3, %p129_p0 }
  0xdc   :  { %v80_v7 = vpop.f32.mrb[0].mxu0 }
  0xdd   :  { %v81_v8 = vadd.f32 %v106_v6, %v80_v7  ;;  %v119_v9 = vpop.f32.mrb[1].mxu0 }
  0xde   :  { %v83_v10 = vpop.f32.mrb[2].mxu0 }
  0xdf   :  { %88 = vst.msk [vmem:[#allocation2] sm:$0xff] %vm87_vm2, %v81_v8  ;;  %v84_v11 = vadd.f32 %v106_v6, %v83_v10  ;;  %v120_v12 = vpop.f32.mrb[3].mxu0 }
  0xe1   :  { %89 = vst.msk [vmem:[#allocation2 + $0x8] sm:$0xff] %vm87_vm2, %v84_v11 }
  0xe2   :  { %139 = shalt.err (!%p136_p4)
}
  0xe3   :  { %s140_s24 = scalar_lea.hbm %s207_s3, 256 }
  0xe4   :  { %p141_p5 = scmp.ne.s32.totalorder %s207_s3, %s140_s24  ;;  %p144_p6 = scmp.lt.u32.totalorder %s140_s24, %s207_s3 }
  0xe6   :  { %p146_p7 = pnand %p144_p6, %p141_p5 }
  0xe8   :  { %149 = shalt.err (!%p146_p7)
}
  0xe9   :  { %s155_s29 = smov 128   ;;  %s156_s30 = smov 8  }
  0xea   :  { %101 = dma.vmem_to_hbm [thread:$0]  %s96_s22, 256, %s207_s3, [#allocation3], %s155_s29, %s155_s29, %s156_s30  }
  0xeb   :  { %150 = dma.done.wait [#allocation3], 256  }
  0xec   :  { %151 = vsyncadd [#allocation3], 4294967040 }
  0xed   :  { %105 = vsyncpa [#allocation3], 1 }

</bundles_post_ra>
